<compile_context>
chip_gen: v7x
topology: tpu7x:2x2x1
jax: 0.10.0
libtpu: 0.0.40
codegen_flags: <defaults>
</compile_context>

<pallas_src>
import functools
import jax
import jax.numpy as jnp
from jax.experimental import pallas as pl
from jax.experimental.pallas import tpu as pltpu

EPS = 1e-5  # torch.nn.LayerNorm default


def _layernorm(x, g, b):
    mu = jnp.mean(x, axis=-1, keepdims=True)
    var = jnp.mean((x - mu) ** 2, axis=-1, keepdims=True)
    return (x - mu) * jax.lax.rsqrt(var + EPS) * g + b


def fused_encoder_kernel(num_layers, nhead,
                         x_ref,
                         wqkv_ref, bqkv_ref, wo_ref, bo_ref,
                         ln1g_ref, ln1b_ref, ln2g_ref, ln2b_ref,
                         w1_ref, b1_ref, w2_ref, b2_ref,
                         fng_ref, fnb_ref,
                         out_ref):
    TB, S, D = x_ref.shape
    dh = D // nhead
    scale = 1.0 / (dh ** 0.5)

    # Token slab: (TB*S, D). Activations stay in vregs/VMEM for the whole stack.
    x = x_ref[...].astype(jnp.float32).reshape(TB * S, D)

    for l in range(num_layers):  # static unroll; weights indexed once per layer
        # ---- self-attention block (pre-norm), fused QKV projection ----
        h = _layernorm(x, ln1g_ref[l], ln1b_ref[l])
        qkv = jnp.dot(h, wqkv_ref[l], preferred_element_type=jnp.float32) + bqkv_ref[l]
        q = qkv[:, 0 * D:1 * D].reshape(TB, S, D)
        k = qkv[:, 1 * D:2 * D].reshape(TB, S, D)
        v = qkv[:, 2 * D:3 * D].reshape(TB, S, D)

        head_outs = []
        for hh in range(nhead):
            sl = slice(hh * dh, (hh + 1) * dh)
            s_ = jnp.einsum('bqd,bkd->bqk', q[:, :, sl], k[:, :, sl],
                            preferred_element_type=jnp.float32) * scale
            s_ = s_ - jnp.max(s_, axis=-1, keepdims=True)
            p = jnp.exp(s_)
            p = p * pl.reciprocal(jnp.sum(p, axis=-1, keepdims=True), approx=True)
            head_outs.append(jnp.einsum('bqk,bkd->bqd', p, v[:, :, sl],
                                        preferred_element_type=jnp.float32))
        attn = jnp.concatenate(head_outs, axis=-1).reshape(TB * S, D)
        attn = jnp.dot(attn, wo_ref[l], preferred_element_type=jnp.float32) + bo_ref[l]
        x = x + attn

        # ---- feed-forward block (pre-norm), activation = relu ----
        h2 = _layernorm(x, ln2g_ref[l], ln2b_ref[l])
        f = jnp.dot(h2, w1_ref[l], preferred_element_type=jnp.float32) + b1_ref[l]
        f = jnp.maximum(f, 0.0)
        f = jnp.dot(f, w2_ref[l], preferred_element_type=jnp.float32) + b2_ref[l]
        x = x + f

    # ---- final LayerNorm, fused into the same kernel ----
    y = _layernorm(x, fng_ref[...], fnb_ref[...])
    out_ref[...] = y.reshape(TB, S, D).astype(out_ref.dtype)


def _full_spec(arr):
    nd = len(arr.shape)
    return pl.BlockSpec(arr.shape, lambda i, nd=nd: (0,) * nd)


def _choose_tb(n, s, target_rows=256):
    """Largest divisor of n with tb*s roughly >= target_rows (capped at n)."""
    tb = min(n, max(1, target_rows // s))
    while n % tb:
        tb -= 1
    return tb


def block_encoding_forward(x, params, nhead):
    """x: (B, G, S, D) float32."""
    B, G, S, D = x.shape
    N = B * G
    xf = x.reshape(N, S, D)
    layers = params['layers']
    L = len(layers)

    def stk(key):
        return jnp.stack([lp[key] for lp in layers])

    # Stack per-layer params along a leading layer axis; fuse Q/K/V weights & biases.
    wqkv = jnp.stack([jnp.concatenate([lp['wq'], lp['wk'], lp['wv']], axis=1)
                      for lp in layers])                      # (L, D, 3D)
    bqkv = jnp.stack([jnp.concatenate([lp['bq'], lp['bk'], lp['bv']], axis=1)
                      for lp in layers])                      # (L, 1, 3D)
    wo, bo = stk('wo'), stk('bo')                             # (L, D, D), (L, 1, D)
    ln1g, ln1b = stk('ln1_g'), stk('ln1_b')                   # (L, 1, D)
    ln2g, ln2b = stk('ln2_g'), stk('ln2_b')                   # (L, 1, D)
    w1, b1 = stk('w1'), stk('b1')                             # (L, D, F), (L, 1, F)
    w2, b2 = stk('w2'), stk('b2')                             # (L, F, D), (L, 1, D)
    fng, fnb = params['norm_g'], params['norm_b']             # (1, D)

    TB = _choose_tb(N, S)
    param_list = [wqkv, bqkv, wo, bo, ln1g, ln1b, ln2g, ln2b,
                  w1, b1, w2, b2, fng, fnb]
    in_specs = ([pl.BlockSpec((TB, S, D), lambda i: (i, 0, 0))]
                + [_full_spec(a) for a in param_list])
    out_specs = pl.BlockSpec((TB, S, D), lambda i: (i, 0, 0))

    out = pl.pallas_call(
        functools.partial(fused_encoder_kernel, L, nhead),
        out_shape=jax.ShapeDtypeStruct((N, S, D), x.dtype),
        grid=(N // TB,),
        in_specs=in_specs,
        out_specs=out_specs,
        compiler_params=pltpu.CompilerParams(dimension_semantics=("parallel",)),
    )(xf, *param_list)
    return out.reshape(B, G, S, D)


# ---------------------- parameter construction & reference ----------------------

def make_params(key, d_model, d_ff, num_layers):
    layers = []
    for _ in range(num_layers):
        keys = jax.random.split(key, 8)
        key = keys[0]
        lp = {
            'wq': 0.05 * jax.random.normal(keys[1], (d_model, d_model), jnp.float32),
            'wk': 0.05 * jax.random.normal(keys[2], (d_model, d_model), jnp.float32),
            'wv': 0.05 * jax.random.normal(keys[3], (d_model, d_model), jnp.float32),
            'wo': 0.05 * jax.random.normal(keys[4], (d_model, d_model), jnp.float32),
            'bq': jnp.zeros((1, d_model), jnp.float32),
            'bk': jnp.zeros((1, d_model), jnp.float32),
            'bv': jnp.zeros((1, d_model), jnp.float32),
            'bo': jnp.zeros((1, d_model), jnp.float32),
            'ln1_g': jnp.ones((1, d_model), jnp.float32),
            'ln1_b': jnp.zeros((1, d_model), jnp.float32),
            'ln2_g': jnp.ones((1, d_model), jnp.float32),
            'ln2_b': jnp.zeros((1, d_model), jnp.float32),
            'w1': 0.05 * jax.random.normal(keys[5], (d_model, d_ff), jnp.float32),
            'b1': 0.01 * jnp.ones((1, d_ff), jnp.float32),
            'w2': 0.05 * jax.random.normal(keys[6], (d_ff, d_model), jnp.float32),
            'b2': 0.01 * jnp.ones((1, d_model), jnp.float32),
        }
        layers.append(lp)
    return {'layers': layers,
            'norm_g': jnp.ones((1, d_model), jnp.float32),
            'norm_b': jnp.zeros((1, d_model), jnp.float32)}


def ref_forward(x4, params, nhead):
    B, G, S, D = x4.shape
    dh = D // nhead
    x = x4.reshape(B * G, S, D)

    def ln(z, g, b):
        mu = z.mean(-1, keepdims=True)
        var = ((z - mu) ** 2).mean(-1, keepdims=True)
        return (z - mu) / jnp.sqrt(var + EPS) * g + b

    for lp in params['layers']:
        h = ln(x, lp['ln1_g'][0], lp['ln1_b'][0])
        q = h @ lp['wq'] + lp['bq'][0]
        k = h @ lp['wk'] + lp['bk'][0]
        v = h @ lp['wv'] + lp['bv'][0]
        qh = q.reshape(-1, S, nhead, dh).transpose(0, 2, 1, 3)
        kh = k.reshape(-1, S, nhead, dh).transpose(0, 2, 1, 3)
        vh = v.reshape(-1, S, nhead, dh).transpose(0, 2, 1, 3)
        s = jnp.einsum('nhqd,nhkd->nhqk', qh, kh) / jnp.sqrt(dh)
        p = jax.nn.softmax(s, axis=-1)
        o = jnp.einsum('nhqk,nhkd->nhqd', p, vh).transpose(0, 2, 1, 3).reshape(-1, S, D)
        attn = o @ lp['wo'] + lp['bo'][0]
        x = x + attn
        h2 = ln(x, lp['ln2_g'][0], lp['ln2_b'][0])
        f = jnp.maximum(h2 @ lp['w1'] + lp['b1'][0], 0.0)
        f = f @ lp['w2'] + lp['b2'][0]
        x = x + f
    x = ln(x, params['norm_g'][0], params['norm_b'][0])
    return x.reshape(B, G, S, D)


if __name__ == "__main__":
    B, G, S = 2, 2, 8            # batch, num temporal blocks, tokens per block
    d_model, d_ff, nhead, num_layers = 32, 64, 4, 2

    key = jax.random.PRNGKey(0)
    kx, kp = jax.random.split(key)
    x = jax.random.normal(kx, (B, G, S, d_model), jnp.float32)
    params = make_params(kp, d_model, d_ff, num_layers)

    out = block_encoding_forward(x, params, nhead)
    out = jax.block_until_ready(out)

    ref = ref_forward(x, params, nhead)
    assert out.shape == (B, G, S, d_model)
    # approx reciprocal in the softmax -> allow a slightly wider (still tight) tolerance
    assert jnp.allclose(out, ref, atol=2e-3, rtol=2e-3), "mismatch vs pure-JAX reference"

    print("KERNEL_OK")
</pallas_src>

<mosaic_0001>
module attributes {stable_mosaic.version = 11 : i64} {
  func.func @fused_encoder_kernel(%arg0: i32, %arg1: memref<4x8x32xf32, #tpu.memory_space<vmem>>, %arg2: memref<2x32x96xf32, #tpu.memory_space<vmem>>, %arg3: memref<2x1x96xf32, #tpu.memory_space<vmem>>, %arg4: memref<2x32x32xf32, #tpu.memory_space<vmem>>, %arg5: memref<2x1x32xf32, #tpu.memory_space<vmem>>, %arg6: memref<2x1x32xf32, #tpu.memory_space<vmem>>, %arg7: memref<2x1x32xf32, #tpu.memory_space<vmem>>, %arg8: memref<2x1x32xf32, #tpu.memory_space<vmem>>, %arg9: memref<2x1x32xf32, #tpu.memory_space<vmem>>, %arg10: memref<2x32x64xf32, #tpu.memory_space<vmem>>, %arg11: memref<2x1x64xf32, #tpu.memory_space<vmem>>, %arg12: memref<2x64x32xf32, #tpu.memory_space<vmem>>, %arg13: memref<2x1x32xf32, #tpu.memory_space<vmem>>, %arg14: memref<1x32xf32, #tpu.memory_space<vmem>>, %arg15: memref<1x32xf32, #tpu.memory_space<vmem>>, %arg16: memref<4x8x32xf32, #tpu.memory_space<vmem>>) attributes {dimension_semantics = [#tpu.dimension_semantics<parallel>], iteration_bounds = array<i64: 1>, scalar_prefetch = 0 : i64, scratch_operands = 0 : i64, tpu.core_type = #tpu.core_type<tc>, window_params = [{transform_indices = @transform_0, window_bounds = array<i64: 4, 8, 32>}, {pipeline_mode = #tpu.pipeline_mode<synchronous>, transform_indices = @transform_1, window_bounds = array<i64: 2, 32, 96>}, {pipeline_mode = #tpu.pipeline_mode<synchronous>, transform_indices = @transform_2, window_bounds = array<i64: 2, 1, 96>}, {pipeline_mode = #tpu.pipeline_mode<synchronous>, transform_indices = @transform_3, window_bounds = array<i64: 2, 32, 32>}, {pipeline_mode = #tpu.pipeline_mode<synchronous>, transform_indices = @transform_4, window_bounds = array<i64: 2, 1, 32>}, {pipeline_mode = #tpu.pipeline_mode<synchronous>, transform_indices = @transform_5, window_bounds = array<i64: 2, 1, 32>}, {pipeline_mode = #tpu.pipeline_mode<synchronous>, transform_indices = @transform_6, window_bounds = array<i64: 2, 1, 32>}, {pipeline_mode = #tpu.pipeline_mode<synchronous>, transform_indices = @transform_7, window_bounds = array<i64: 2, 1, 32>}, {pipeline_mode = #tpu.pipeline_mode<synchronous>, transform_indices = @transform_8, window_bounds = array<i64: 2, 1, 32>}, {pipeline_mode = #tpu.pipeline_mode<synchronous>, transform_indices = @transform_9, window_bounds = array<i64: 2, 32, 64>}, {pipeline_mode = #tpu.pipeline_mode<synchronous>, transform_indices = @transform_10, window_bounds = array<i64: 2, 1, 64>}, {pipeline_mode = #tpu.pipeline_mode<synchronous>, transform_indices = @transform_11, window_bounds = array<i64: 2, 64, 32>}, {pipeline_mode = #tpu.pipeline_mode<synchronous>, transform_indices = @transform_12, window_bounds = array<i64: 2, 1, 32>}, {pipeline_mode = #tpu.pipeline_mode<synchronous>, transform_indices = @transform_13, window_bounds = array<i64: 1, 32>}, {pipeline_mode = #tpu.pipeline_mode<synchronous>, transform_indices = @transform_14, window_bounds = array<i64: 1, 32>}, {transform_indices = @transform_15, window_bounds = array<i64: 4, 8, 32>}]} {
    %c0 = arith.constant 0 : index
    %c0_0 = arith.constant 0 : index
    %c0_1 = arith.constant 0 : index
    %0 = vector.load %arg1[%c0, %c0_0, %c0_1] : memref<4x8x32xf32, #tpu.memory_space<vmem>>, vector<4x8x32xf32>
    %1 = vector.shape_cast %0 : vector<4x8x32xf32> to vector<32x32xf32>
    %c0_2 = arith.constant 0 : index
    %c0_3 = arith.constant 0 : index
    %c0_4 = arith.constant 0 : index
    %2 = vector.load %arg6[%c0_2, %c0_3, %c0_4] : memref<2x1x32xf32, #tpu.memory_space<vmem>>, vector<1x1x32xf32>
    %3 = vector.shape_cast %2 : vector<1x1x32xf32> to vector<1x32xf32>
    %c0_5 = arith.constant 0 : index
    %c0_6 = arith.constant 0 : index
    %c0_7 = arith.constant 0 : index
    %4 = vector.load %arg7[%c0_5, %c0_6, %c0_7] : memref<2x1x32xf32, #tpu.memory_space<vmem>>, vector<1x1x32xf32>
    %5 = vector.shape_cast %4 : vector<1x1x32xf32> to vector<1x32xf32>
    %cst = arith.constant dense<0.000000e+00> : vector<32xf32>
    %6 = vector.multi_reduction <add>, %1, %cst [1] : vector<32x32xf32> to vector<32xf32>
    %7 = vector.shape_cast %6 : vector<32xf32> to vector<32x1xf32>
    %cst_8 = arith.constant 3.200000e+01 : f32
    %8 = vector.broadcast %cst_8 : f32 to vector<32x1xf32>
    %9 = arith.divf %7, %8 : vector<32x1xf32>
    %10 = vector.broadcast %9 : vector<32x1xf32> to vector<32x32xf32>
    %11 = arith.subf %1, %10 : vector<32x32xf32>
    %12 = arith.mulf %11, %11 : vector<32x32xf32>
    %cst_9 = arith.constant dense<0.000000e+00> : vector<32xf32>
    %13 = vector.multi_reduction <add>, %12, %cst_9 [1] : vector<32x32xf32> to vector<32xf32>
    %14 = vector.shape_cast %13 : vector<32xf32> to vector<32x1xf32>
    %cst_10 = arith.constant 3.200000e+01 : f32
    %15 = vector.broadcast %cst_10 : f32 to vector<32x1xf32>
    %16 = arith.divf %14, %15 : vector<32x1xf32>
    %17 = vector.broadcast %9 : vector<32x1xf32> to vector<32x32xf32>
    %18 = arith.subf %1, %17 : vector<32x32xf32>
    %cst_11 = arith.constant 9.99999974E-6 : f32
    %19 = vector.broadcast %cst_11 : f32 to vector<32x1xf32>
    %20 = arith.addf %16, %19 : vector<32x1xf32>
    %21 = math.rsqrt %20 : vector<32x1xf32>
    %22 = vector.broadcast %21 : vector<32x1xf32> to vector<32x32xf32>
    %23 = arith.mulf %18, %22 : vector<32x32xf32>
    %24 = vector.broadcast %3 : vector<1x32xf32> to vector<32x32xf32>
    %25 = arith.mulf %23, %24 : vector<32x32xf32>
    %26 = vector.broadcast %5 : vector<1x32xf32> to vector<32x32xf32>
    %27 = arith.addf %25, %26 : vector<32x32xf32>
    %c0_12 = arith.constant 0 : index
    %c0_13 = arith.constant 0 : index
    %c0_14 = arith.constant 0 : index
    %28 = vector.load %arg2[%c0_12, %c0_13, %c0_14] : memref<2x32x96xf32, #tpu.memory_space<vmem>>, vector<1x32x96xf32>
    %29 = vector.shape_cast %28 : vector<1x32x96xf32> to vector<32x96xf32>
    %cst_15 = arith.constant dense<0.000000e+00> : vector<32x96xf32>
    %30 = tpu.matmul %27, %29, %cst_15 {dimension_numbers = #tpu.dot_dimension_numbers<[1], [0], [0], [1], [0, 0, 1, 1], [], []>} : vector<32x32xf32>, vector<32x96xf32>, vector<32x96xf32> -> vector<32x96xf32>
    %c0_16 = arith.constant 0 : index
    %c0_17 = arith.constant 0 : index
    %c0_18 = arith.constant 0 : index
    %31 = vector.load %arg3[%c0_16, %c0_17, %c0_18] : memref<2x1x96xf32, #tpu.memory_space<vmem>>, vector<1x1x96xf32>
    %32 = vector.shape_cast %31 : vector<1x1x96xf32> to vector<1x96xf32>
    %33 = vector.broadcast %32 : vector<1x96xf32> to vector<32x96xf32>
    %34 = arith.addf %30, %33 : vector<32x96xf32>
    %35 = vector.extract_strided_slice %34 {offsets = [0, 0], sizes = [32, 32], strides = [1, 1]} : vector<32x96xf32> to vector<32x32xf32>
    %36 = vector.shape_cast %35 : vector<32x32xf32> to vector<4x8x32xf32>
    %37 = vector.extract_strided_slice %34 {offsets = [0, 32], sizes = [32, 32], strides = [1, 1]} : vector<32x96xf32> to vector<32x32xf32>
    %38 = vector.shape_cast %37 : vector<32x32xf32> to vector<4x8x32xf32>
    %39 = vector.extract_strided_slice %34 {offsets = [0, 64], sizes = [32, 32], strides = [1, 1]} : vector<32x96xf32> to vector<32x32xf32>
    %40 = vector.shape_cast %39 : vector<32x32xf32> to vector<4x8x32xf32>
    %41 = vector.extract_strided_slice %36 {offsets = [0, 0, 0], sizes = [4, 8, 8], strides = [1, 1, 1]} : vector<4x8x32xf32> to vector<4x8x8xf32>
    %42 = vector.extract_strided_slice %38 {offsets = [0, 0, 0], sizes = [4, 8, 8], strides = [1, 1, 1]} : vector<4x8x32xf32> to vector<4x8x8xf32>
    "tpu.trace_start"() <{level = 10 : i32, message = "bqd,bkd->bqk"}> : () -> ()
    %cst_19 = arith.constant dense<0.000000e+00> : vector<4x8x8xf32>
    %43 = tpu.matmul %41, %42, %cst_19 {dimension_numbers = #tpu.dot_dimension_numbers<[2], [2], [1], [1], [0, 0, 0, 1, 1, 1], [0], [0]>} : vector<4x8x8xf32>, vector<4x8x8xf32>, vector<4x8x8xf32> -> vector<4x8x8xf32>
    "tpu.trace_stop"() : () -> ()
    %cst_20 = arith.constant 0.353553385 : f32
    %44 = vector.broadcast %cst_20 : f32 to vector<4x8x8xf32>
    %45 = arith.mulf %43, %44 : vector<4x8x8xf32>
    %cst_21 = arith.constant dense<0xFF800000> : vector<4x8xf32>
    %46 = vector.multi_reduction <maximumf>, %45, %cst_21 [2] : vector<4x8x8xf32> to vector<4x8xf32>
    %47 = vector.shape_cast %46 : vector<4x8xf32> to vector<4x8x1xf32>
    %48 = vector.broadcast %47 : vector<4x8x1xf32> to vector<4x8x8xf32>
    %49 = arith.subf %45, %48 : vector<4x8x8xf32>
    %50 = math.exp %49 : vector<4x8x8xf32>
    %cst_22 = arith.constant dense<0.000000e+00> : vector<4x8xf32>
    %51 = vector.multi_reduction <add>, %50, %cst_22 [2] : vector<4x8x8xf32> to vector<4x8xf32>
    %52 = vector.shape_cast %51 : vector<4x8xf32> to vector<4x8x1xf32>
    %53 = tpu.reciprocal %52 {approx = true} : vector<4x8x1xf32> -> vector<4x8x1xf32>
    %54 = vector.broadcast %53 : vector<4x8x1xf32> to vector<4x8x8xf32>
    %55 = arith.mulf %50, %54 : vector<4x8x8xf32>
    %56 = vector.extract_strided_slice %40 {offsets = [0, 0, 0], sizes = [4, 8, 8], strides = [1, 1, 1]} : vector<4x8x32xf32> to vector<4x8x8xf32>
    "tpu.trace_start"() <{level = 10 : i32, message = "bqk,bkd->bqd"}> : () -> ()
    %cst_23 = arith.constant dense<0.000000e+00> : vector<4x8x8xf32>
    %57 = tpu.matmul %55, %56, %cst_23 {dimension_numbers = #tpu.dot_dimension_numbers<[2], [1], [1], [2], [0, 0, 0, 1, 1, 2], [0], [0]>} : vector<4x8x8xf32>, vector<4x8x8xf32>, vector<4x8x8xf32> -> vector<4x8x8xf32>
    "tpu.trace_stop"() : () -> ()
    %58 = vector.extract_strided_slice %36 {offsets = [0, 0, 8], sizes = [4, 8, 8], strides = [1, 1, 1]} : vector<4x8x32xf32> to vector<4x8x8xf32>
    %59 = vector.extract_strided_slice %38 {offsets = [0, 0, 8], sizes = [4, 8, 8], strides = [1, 1, 1]} : vector<4x8x32xf32> to vector<4x8x8xf32>
    "tpu.trace_start"() <{level = 10 : i32, message = "bqd,bkd->bqk"}> : () -> ()
    %cst_24 = arith.constant dense<0.000000e+00> : vector<4x8x8xf32>
    %60 = tpu.matmul %58, %59, %cst_24 {dimension_numbers = #tpu.dot_dimension_numbers<[2], [2], [1], [1], [0, 0, 0, 1, 1, 1], [0], [0]>} : vector<4x8x8xf32>, vector<4x8x8xf32>, vector<4x8x8xf32> -> vector<4x8x8xf32>
    "tpu.trace_stop"() : () -> ()
    %cst_25 = arith.constant 0.353553385 : f32
    %61 = vector.broadcast %cst_25 : f32 to vector<4x8x8xf32>
    %62 = arith.mulf %60, %61 : vector<4x8x8xf32>
    %cst_26 = arith.constant dense<0xFF800000> : vector<4x8xf32>
    %63 = vector.multi_reduction <maximumf>, %62, %cst_26 [2] : vector<4x8x8xf32> to vector<4x8xf32>
    %64 = vector.shape_cast %63 : vector<4x8xf32> to vector<4x8x1xf32>
    %65 = vector.broadcast %64 : vector<4x8x1xf32> to vector<4x8x8xf32>
    %66 = arith.subf %62, %65 : vector<4x8x8xf32>
    %67 = math.exp %66 : vector<4x8x8xf32>
    %cst_27 = arith.constant dense<0.000000e+00> : vector<4x8xf32>
    %68 = vector.multi_reduction <add>, %67, %cst_27 [2] : vector<4x8x8xf32> to vector<4x8xf32>
    %69 = vector.shape_cast %68 : vector<4x8xf32> to vector<4x8x1xf32>
    %70 = tpu.reciprocal %69 {approx = true} : vector<4x8x1xf32> -> vector<4x8x1xf32>
    %71 = vector.broadcast %70 : vector<4x8x1xf32> to vector<4x8x8xf32>
    %72 = arith.mulf %67, %71 : vector<4x8x8xf32>
    %73 = vector.extract_strided_slice %40 {offsets = [0, 0, 8], sizes = [4, 8, 8], strides = [1, 1, 1]} : vector<4x8x32xf32> to vector<4x8x8xf32>
    "tpu.trace_start"() <{level = 10 : i32, message = "bqk,bkd->bqd"}> : () -> ()
    %cst_28 = arith.constant dense<0.000000e+00> : vector<4x8x8xf32>
    %74 = tpu.matmul %72, %73, %cst_28 {dimension_numbers = #tpu.dot_dimension_numbers<[2], [1], [1], [2], [0, 0, 0, 1, 1, 2], [0], [0]>} : vector<4x8x8xf32>, vector<4x8x8xf32>, vector<4x8x8xf32> -> vector<4x8x8xf32>
    "tpu.trace_stop"() : () -> ()
    %75 = vector.extract_strided_slice %36 {offsets = [0, 0, 16], sizes = [4, 8, 8], strides = [1, 1, 1]} : vector<4x8x32xf32> to vector<4x8x8xf32>
    %76 = vector.extract_strided_slice %38 {offsets = [0, 0, 16], sizes = [4, 8, 8], strides = [1, 1, 1]} : vector<4x8x32xf32> to vector<4x8x8xf32>
    "tpu.trace_start"() <{level = 10 : i32, message = "bqd,bkd->bqk"}> : () -> ()
    %cst_29 = arith.constant dense<0.000000e+00> : vector<4x8x8xf32>
    %77 = tpu.matmul %75, %76, %cst_29 {dimension_numbers = #tpu.dot_dimension_numbers<[2], [2], [1], [1], [0, 0, 0, 1, 1, 1], [0], [0]>} : vector<4x8x8xf32>, vector<4x8x8xf32>, vector<4x8x8xf32> -> vector<4x8x8xf32>
    "tpu.trace_stop"() : () -> ()
    %cst_30 = arith.constant 0.353553385 : f32
    %78 = vector.broadcast %cst_30 : f32 to vector<4x8x8xf32>
    %79 = arith.mulf %77, %78 : vector<4x8x8xf32>
    %cst_31 = arith.constant dense<0xFF800000> : vector<4x8xf32>
    %80 = vector.multi_reduction <maximumf>, %79, %cst_31 [2] : vector<4x8x8xf32> to vector<4x8xf32>
    %81 = vector.shape_cast %80 : vector<4x8xf32> to vector<4x8x1xf32>
    %82 = vector.broadcast %81 : vector<4x8x1xf32> to vector<4x8x8xf32>
    %83 = arith.subf %79, %82 : vector<4x8x8xf32>
    %84 = math.exp %83 : vector<4x8x8xf32>
    %cst_32 = arith.constant dense<0.000000e+00> : vector<4x8xf32>
    %85 = vector.multi_reduction <add>, %84, %cst_32 [2] : vector<4x8x8xf32> to vector<4x8xf32>
    %86 = vector.shape_cast %85 : vector<4x8xf32> to vector<4x8x1xf32>
    %87 = tpu.reciprocal %86 {approx = true} : vector<4x8x1xf32> -> vector<4x8x1xf32>
    %88 = vector.broadcast %87 : vector<4x8x1xf32> to vector<4x8x8xf32>
    %89 = arith.mulf %84, %88 : vector<4x8x8xf32>
    %90 = vector.extract_strided_slice %40 {offsets = [0, 0, 16], sizes = [4, 8, 8], strides = [1, 1, 1]} : vector<4x8x32xf32> to vector<4x8x8xf32>
    "tpu.trace_start"() <{level = 10 : i32, message = "bqk,bkd->bqd"}> : () -> ()
    %cst_33 = arith.constant dense<0.000000e+00> : vector<4x8x8xf32>
    %91 = tpu.matmul %89, %90, %cst_33 {dimension_numbers = #tpu.dot_dimension_numbers<[2], [1], [1], [2], [0, 0, 0, 1, 1, 2], [0], [0]>} : vector<4x8x8xf32>, vector<4x8x8xf32>, vector<4x8x8xf32> -> vector<4x8x8xf32>
    "tpu.trace_stop"() : () -> ()
    %92 = vector.extract_strided_slice %36 {offsets = [0, 0, 24], sizes = [4, 8, 8], strides = [1, 1, 1]} : vector<4x8x32xf32> to vector<4x8x8xf32>
    %93 = vector.extract_strided_slice %38 {offsets = [0, 0, 24], sizes = [4, 8, 8], strides = [1, 1, 1]} : vector<4x8x32xf32> to vector<4x8x8xf32>
    "tpu.trace_start"() <{level = 10 : i32, message = "bqd,bkd->bqk"}> : () -> ()
    %cst_34 = arith.constant dense<0.000000e+00> : vector<4x8x8xf32>
    %94 = tpu.matmul %92, %93, %cst_34 {dimension_numbers = #tpu.dot_dimension_numbers<[2], [2], [1], [1], [0, 0, 0, 1, 1, 1], [0], [0]>} : vector<4x8x8xf32>, vector<4x8x8xf32>, vector<4x8x8xf32> -> vector<4x8x8xf32>
    "tpu.trace_stop"() : () -> ()
    %cst_35 = arith.constant 0.353553385 : f32
    %95 = vector.broadcast %cst_35 : f32 to vector<4x8x8xf32>
    %96 = arith.mulf %94, %95 : vector<4x8x8xf32>
    %cst_36 = arith.constant dense<0xFF800000> : vector<4x8xf32>
    %97 = vector.multi_reduction <maximumf>, %96, %cst_36 [2] : vector<4x8x8xf32> to vector<4x8xf32>
    %98 = vector.shape_cast %97 : vector<4x8xf32> to vector<4x8x1xf32>
    %99 = vector.broadcast %98 : vector<4x8x1xf32> to vector<4x8x8xf32>
    %100 = arith.subf %96, %99 : vector<4x8x8xf32>
    %101 = math.exp %100 : vector<4x8x8xf32>
    %cst_37 = arith.constant dense<0.000000e+00> : vector<4x8xf32>
    %102 = vector.multi_reduction <add>, %101, %cst_37 [2] : vector<4x8x8xf32> to vector<4x8xf32>
    %103 = vector.shape_cast %102 : vector<4x8xf32> to vector<4x8x1xf32>
    %104 = tpu.reciprocal %103 {approx = true} : vector<4x8x1xf32> -> vector<4x8x1xf32>
    %105 = vector.broadcast %104 : vector<4x8x1xf32> to vector<4x8x8xf32>
    %106 = arith.mulf %101, %105 : vector<4x8x8xf32>
    %107 = vector.extract_strided_slice %40 {offsets = [0, 0, 24], sizes = [4, 8, 8], strides = [1, 1, 1]} : vector<4x8x32xf32> to vector<4x8x8xf32>
    "tpu.trace_start"() <{level = 10 : i32, message = "bqk,bkd->bqd"}> : () -> ()
    %cst_38 = arith.constant dense<0.000000e+00> : vector<4x8x8xf32>
    %108 = tpu.matmul %106, %107, %cst_38 {dimension_numbers = #tpu.dot_dimension_numbers<[2], [1], [1], [2], [0, 0, 0, 1, 1, 2], [0], [0]>} : vector<4x8x8xf32>, vector<4x8x8xf32>, vector<4x8x8xf32> -> vector<4x8x8xf32>
    "tpu.trace_stop"() : () -> ()
    %109 = tpu.concatenate %57, %74, %91, %108 in 2 : vector<4x8x8xf32>, vector<4x8x8xf32>, vector<4x8x8xf32>, vector<4x8x8xf32> -> vector<4x8x32xf32>
    %110 = vector.shape_cast %109 : vector<4x8x32xf32> to vector<32x32xf32>
    %c0_39 = arith.constant 0 : index
    %c0_40 = arith.constant 0 : index
    %c0_41 = arith.constant 0 : index
    %111 = vector.load %arg4[%c0_39, %c0_40, %c0_41] : memref<2x32x32xf32, #tpu.memory_space<vmem>>, vector<1x32x32xf32>
    %112 = vector.shape_cast %111 : vector<1x32x32xf32> to vector<32x32xf32>
    %cst_42 = arith.constant dense<0.000000e+00> : vector<32x32xf32>
    %113 = tpu.matmul %110, %112, %cst_42 {dimension_numbers = #tpu.dot_dimension_numbers<[1], [0], [0], [1], [0, 0, 1, 1], [], []>} : vector<32x32xf32>, vector<32x32xf32>, vector<32x32xf32> -> vector<32x32xf32>
    %c0_43 = arith.constant 0 : index
    %c0_44 = arith.constant 0 : index
    %c0_45 = arith.constant 0 : index
    %114 = vector.load %arg5[%c0_43, %c0_44, %c0_45] : memref<2x1x32xf32, #tpu.memory_space<vmem>>, vector<1x1x32xf32>
    %115 = vector.shape_cast %114 : vector<1x1x32xf32> to vector<1x32xf32>
    %116 = vector.broadcast %115 : vector<1x32xf32> to vector<32x32xf32>
    %117 = arith.addf %113, %116 : vector<32x32xf32>
    %118 = arith.addf %1, %117 : vector<32x32xf32>
    %c0_46 = arith.constant 0 : index
    %c0_47 = arith.constant 0 : index
    %c0_48 = arith.constant 0 : index
    %119 = vector.load %arg8[%c0_46, %c0_47, %c0_48] : memref<2x1x32xf32, #tpu.memory_space<vmem>>, vector<1x1x32xf32>
    %120 = vector.shape_cast %119 : vector<1x1x32xf32> to vector<1x32xf32>
    %c0_49 = arith.constant 0 : index
    %c0_50 = arith.constant 0 : index
    %c0_51 = arith.constant 0 : index
    %121 = vector.load %arg9[%c0_49, %c0_50, %c0_51] : memref<2x1x32xf32, #tpu.memory_space<vmem>>, vector<1x1x32xf32>
    %122 = vector.shape_cast %121 : vector<1x1x32xf32> to vector<1x32xf32>
    %cst_52 = arith.constant dense<0.000000e+00> : vector<32xf32>
    %123 = vector.multi_reduction <add>, %118, %cst_52 [1] : vector<32x32xf32> to vector<32xf32>
    %124 = vector.shape_cast %123 : vector<32xf32> to vector<32x1xf32>
    %cst_53 = arith.constant 3.200000e+01 : f32
    %125 = vector.broadcast %cst_53 : f32 to vector<32x1xf32>
    %126 = arith.divf %124, %125 : vector<32x1xf32>
    %127 = vector.broadcast %126 : vector<32x1xf32> to vector<32x32xf32>
    %128 = arith.subf %118, %127 : vector<32x32xf32>
    %129 = arith.mulf %128, %128 : vector<32x32xf32>
    %cst_54 = arith.constant dense<0.000000e+00> : vector<32xf32>
    %130 = vector.multi_reduction <add>, %129, %cst_54 [1] : vector<32x32xf32> to vector<32xf32>
    %131 = vector.shape_cast %130 : vector<32xf32> to vector<32x1xf32>
    %cst_55 = arith.constant 3.200000e+01 : f32
    %132 = vector.broadcast %cst_55 : f32 to vector<32x1xf32>
    %133 = arith.divf %131, %132 : vector<32x1xf32>
    %134 = vector.broadcast %126 : vector<32x1xf32> to vector<32x32xf32>
    %135 = arith.subf %118, %134 : vector<32x32xf32>
    %cst_56 = arith.constant 9.99999974E-6 : f32
    %136 = vector.broadcast %cst_56 : f32 to vector<32x1xf32>
    %137 = arith.addf %133, %136 : vector<32x1xf32>
    %138 = math.rsqrt %137 : vector<32x1xf32>
    %139 = vector.broadcast %138 : vector<32x1xf32> to vector<32x32xf32>
    %140 = arith.mulf %135, %139 : vector<32x32xf32>
    %141 = vector.broadcast %120 : vector<1x32xf32> to vector<32x32xf32>
    %142 = arith.mulf %140, %141 : vector<32x32xf32>
    %143 = vector.broadcast %122 : vector<1x32xf32> to vector<32x32xf32>
    %144 = arith.addf %142, %143 : vector<32x32xf32>
    %c0_57 = arith.constant 0 : index
    %c0_58 = arith.constant 0 : index
    %c0_59 = arith.constant 0 : index
    %145 = vector.load %arg10[%c0_57, %c0_58, %c0_59] : memref<2x32x64xf32, #tpu.memory_space<vmem>>, vector<1x32x64xf32>
    %146 = vector.shape_cast %145 : vector<1x32x64xf32> to vector<32x64xf32>
    %cst_60 = arith.constant dense<0.000000e+00> : vector<32x64xf32>
    %147 = tpu.matmul %144, %146, %cst_60 {dimension_numbers = #tpu.dot_dimension_numbers<[1], [0], [0], [1], [0, 0, 1, 1], [], []>} : vector<32x32xf32>, vector<32x64xf32>, vector<32x64xf32> -> vector<32x64xf32>
    %c0_61 = arith.constant 0 : index
    %c0_62 = arith.constant 0 : index
    %c0_63 = arith.constant 0 : index
    %148 = vector.load %arg11[%c0_61, %c0_62, %c0_63] : memref<2x1x64xf32, #tpu.memory_space<vmem>>, vector<1x1x64xf32>
    %149 = vector.shape_cast %148 : vector<1x1x64xf32> to vector<1x64xf32>
    %150 = vector.broadcast %149 : vector<1x64xf32> to vector<32x64xf32>
    %151 = arith.addf %147, %150 : vector<32x64xf32>
    %cst_64 = arith.constant 0.000000e+00 : f32
    %152 = vector.broadcast %cst_64 : f32 to vector<32x64xf32>
    %153 = arith.maximumf %151, %152 : vector<32x64xf32>
    %c0_65 = arith.constant 0 : index
    %c0_66 = arith.constant 0 : index
    %c0_67 = arith.constant 0 : index
    %154 = vector.load %arg12[%c0_65, %c0_66, %c0_67] : memref<2x64x32xf32, #tpu.memory_space<vmem>>, vector<1x64x32xf32>
    %155 = vector.shape_cast %154 : vector<1x64x32xf32> to vector<64x32xf32>
    %cst_68 = arith.constant dense<0.000000e+00> : vector<32x32xf32>
    %156 = tpu.matmul %153, %155, %cst_68 {dimension_numbers = #tpu.dot_dimension_numbers<[1], [0], [0], [1], [0, 0, 1, 1], [], []>} : vector<32x64xf32>, vector<64x32xf32>, vector<32x32xf32> -> vector<32x32xf32>
    %c0_69 = arith.constant 0 : index
    %c0_70 = arith.constant 0 : index
    %c0_71 = arith.constant 0 : index
    %157 = vector.load %arg13[%c0_69, %c0_70, %c0_71] : memref<2x1x32xf32, #tpu.memory_space<vmem>>, vector<1x1x32xf32>
    %158 = vector.shape_cast %157 : vector<1x1x32xf32> to vector<1x32xf32>
    %159 = vector.broadcast %158 : vector<1x32xf32> to vector<32x32xf32>
    %160 = arith.addf %156, %159 : vector<32x32xf32>
    %161 = arith.addf %118, %160 : vector<32x32xf32>
    %c1 = arith.constant 1 : index
    %c0_72 = arith.constant 0 : index
    %c0_73 = arith.constant 0 : index
    %162 = vector.load %arg6[%c1, %c0_72, %c0_73] : memref<2x1x32xf32, #tpu.memory_space<vmem>>, vector<1x1x32xf32>
    %163 = vector.shape_cast %162 : vector<1x1x32xf32> to vector<1x32xf32>
    %c1_74 = arith.constant 1 : index
    %c0_75 = arith.constant 0 : index
    %c0_76 = arith.constant 0 : index
    %164 = vector.load %arg7[%c1_74, %c0_75, %c0_76] : memref<2x1x32xf32, #tpu.memory_space<vmem>>, vector<1x1x32xf32>
    %165 = vector.shape_cast %164 : vector<1x1x32xf32> to vector<1x32xf32>
    %cst_77 = arith.constant dense<0.000000e+00> : vector<32xf32>
    %166 = vector.multi_reduction <add>, %161, %cst_77 [1] : vector<32x32xf32> to vector<32xf32>
    %167 = vector.shape_cast %166 : vector<32xf32> to vector<32x1xf32>
    %cst_78 = arith.constant 3.200000e+01 : f32
    %168 = vector.broadcast %cst_78 : f32 to vector<32x1xf32>
    %169 = arith.divf %167, %168 : vector<32x1xf32>
    %170 = vector.broadcast %169 : vector<32x1xf32> to vector<32x32xf32>
    %171 = arith.subf %161, %170 : vector<32x32xf32>
    %172 = arith.mulf %171, %171 : vector<32x32xf32>
    %cst_79 = arith.constant dense<0.000000e+00> : vector<32xf32>
    %173 = vector.multi_reduction <add>, %172, %cst_79 [1] : vector<32x32xf32> to vector<32xf32>
    %174 = vector.shape_cast %173 : vector<32xf32> to vector<32x1xf32>
    %cst_80 = arith.constant 3.200000e+01 : f32
    %175 = vector.broadcast %cst_80 : f32 to vector<32x1xf32>
    %176 = arith.divf %174, %175 : vector<32x1xf32>
    %177 = vector.broadcast %169 : vector<32x1xf32> to vector<32x32xf32>
    %178 = arith.subf %161, %177 : vector<32x32xf32>
    %cst_81 = arith.constant 9.99999974E-6 : f32
    %179 = vector.broadcast %cst_81 : f32 to vector<32x1xf32>
    %180 = arith.addf %176, %179 : vector<32x1xf32>
    %181 = math.rsqrt %180 : vector<32x1xf32>
    %182 = vector.broadcast %181 : vector<32x1xf32> to vector<32x32xf32>
    %183 = arith.mulf %178, %182 : vector<32x32xf32>
    %184 = vector.broadcast %163 : vector<1x32xf32> to vector<32x32xf32>
    %185 = arith.mulf %183, %184 : vector<32x32xf32>
    %186 = vector.broadcast %165 : vector<1x32xf32> to vector<32x32xf32>
    %187 = arith.addf %185, %186 : vector<32x32xf32>
    %c1_82 = arith.constant 1 : index
    %c0_83 = arith.constant 0 : index
    %c0_84 = arith.constant 0 : index
    %188 = vector.load %arg2[%c1_82, %c0_83, %c0_84] : memref<2x32x96xf32, #tpu.memory_space<vmem>>, vector<1x32x96xf32>
    %189 = vector.shape_cast %188 : vector<1x32x96xf32> to vector<32x96xf32>
    %cst_85 = arith.constant dense<0.000000e+00> : vector<32x96xf32>
    %190 = tpu.matmul %187, %189, %cst_85 {dimension_numbers = #tpu.dot_dimension_numbers<[1], [0], [0], [1], [0, 0, 1, 1], [], []>} : vector<32x32xf32>, vector<32x96xf32>, vector<32x96xf32> -> vector<32x96xf32>
    %c1_86 = arith.constant 1 : index
    %c0_87 = arith.constant 0 : index
    %c0_88 = arith.constant 0 : index
    %191 = vector.load %arg3[%c1_86, %c0_87, %c0_88] : memref<2x1x96xf32, #tpu.memory_space<vmem>>, vector<1x1x96xf32>
    %192 = vector.shape_cast %191 : vector<1x1x96xf32> to vector<1x96xf32>
    %193 = vector.broadcast %192 : vector<1x96xf32> to vector<32x96xf32>
    %194 = arith.addf %190, %193 : vector<32x96xf32>
    %195 = vector.extract_strided_slice %194 {offsets = [0, 0], sizes = [32, 32], strides = [1, 1]} : vector<32x96xf32> to vector<32x32xf32>
    %196 = vector.shape_cast %195 : vector<32x32xf32> to vector<4x8x32xf32>
    %197 = vector.extract_strided_slice %194 {offsets = [0, 32], sizes = [32, 32], strides = [1, 1]} : vector<32x96xf32> to vector<32x32xf32>
    %198 = vector.shape_cast %197 : vector<32x32xf32> to vector<4x8x32xf32>
    %199 = vector.extract_strided_slice %194 {offsets = [0, 64], sizes = [32, 32], strides = [1, 1]} : vector<32x96xf32> to vector<32x32xf32>
    %200 = vector.shape_cast %199 : vector<32x32xf32> to vector<4x8x32xf32>
    %201 = vector.extract_strided_slice %196 {offsets = [0, 0, 0], sizes = [4, 8, 8], strides = [1, 1, 1]} : vector<4x8x32xf32> to vector<4x8x8xf32>
    %202 = vector.extract_strided_slice %198 {offsets = [0, 0, 0], sizes = [4, 8, 8], strides = [1, 1, 1]} : vector<4x8x32xf32> to vector<4x8x8xf32>
    "tpu.trace_start"() <{level = 10 : i32, message = "bqd,bkd->bqk"}> : () -> ()
    %cst_89 = arith.constant dense<0.000000e+00> : vector<4x8x8xf32>
    %203 = tpu.matmul %201, %202, %cst_89 {dimension_numbers = #tpu.dot_dimension_numbers<[2], [2], [1], [1], [0, 0, 0, 1, 1, 1], [0], [0]>} : vector<4x8x8xf32>, vector<4x8x8xf32>, vector<4x8x8xf32> -> vector<4x8x8xf32>
    "tpu.trace_stop"() : () -> ()
    %cst_90 = arith.constant 0.353553385 : f32
    %204 = vector.broadcast %cst_90 : f32 to vector<4x8x8xf32>
    %205 = arith.mulf %203, %204 : vector<4x8x8xf32>
    %cst_91 = arith.constant dense<0xFF800000> : vector<4x8xf32>
    %206 = vector.multi_reduction <maximumf>, %205, %cst_91 [2] : vector<4x8x8xf32> to vector<4x8xf32>
    %207 = vector.shape_cast %206 : vector<4x8xf32> to vector<4x8x1xf32>
    %208 = vector.broadcast %207 : vector<4x8x1xf32> to vector<4x8x8xf32>
    %209 = arith.subf %205, %208 : vector<4x8x8xf32>
    %210 = math.exp %209 : vector<4x8x8xf32>
    %cst_92 = arith.constant dense<0.000000e+00> : vector<4x8xf32>
    %211 = vector.multi_reduction <add>, %210, %cst_92 [2] : vector<4x8x8xf32> to vector<4x8xf32>
    %212 = vector.shape_cast %211 : vector<4x8xf32> to vector<4x8x1xf32>
    %213 = tpu.reciprocal %212 {approx = true} : vector<4x8x1xf32> -> vector<4x8x1xf32>
    %214 = vector.broadcast %213 : vector<4x8x1xf32> to vector<4x8x8xf32>
    %215 = arith.mulf %210, %214 : vector<4x8x8xf32>
    %216 = vector.extract_strided_slice %200 {offsets = [0, 0, 0], sizes = [4, 8, 8], strides = [1, 1, 1]} : vector<4x8x32xf32> to vector<4x8x8xf32>
    "tpu.trace_start"() <{level = 10 : i32, message = "bqk,bkd->bqd"}> : () -> ()
    %cst_93 = arith.constant dense<0.000000e+00> : vector<4x8x8xf32>
    %217 = tpu.matmul %215, %216, %cst_93 {dimension_numbers = #tpu.dot_dimension_numbers<[2], [1], [1], [2], [0, 0, 0, 1, 1, 2], [0], [0]>} : vector<4x8x8xf32>, vector<4x8x8xf32>, vector<4x8x8xf32> -> vector<4x8x8xf32>
    "tpu.trace_stop"() : () -> ()
    %218 = vector.extract_strided_slice %196 {offsets = [0, 0, 8], sizes = [4, 8, 8], strides = [1, 1, 1]} : vector<4x8x32xf32> to vector<4x8x8xf32>
    %219 = vector.extract_strided_slice %198 {offsets = [0, 0, 8], sizes = [4, 8, 8], strides = [1, 1, 1]} : vector<4x8x32xf32> to vector<4x8x8xf32>
    "tpu.trace_start"() <{level = 10 : i32, message = "bqd,bkd->bqk"}> : () -> ()
    %cst_94 = arith.constant dense<0.000000e+00> : vector<4x8x8xf32>
    %220 = tpu.matmul %218, %219, %cst_94 {dimension_numbers = #tpu.dot_dimension_numbers<[2], [2], [1], [1], [0, 0, 0, 1, 1, 1], [0], [0]>} : vector<4x8x8xf32>, vector<4x8x8xf32>, vector<4x8x8xf32> -> vector<4x8x8xf32>
    "tpu.trace_stop"() : () -> ()
    %cst_95 = arith.constant 0.353553385 : f32
    %221 = vector.broadcast %cst_95 : f32 to vector<4x8x8xf32>
    %222 = arith.mulf %220, %221 : vector<4x8x8xf32>
    %cst_96 = arith.constant dense<0xFF800000> : vector<4x8xf32>
    %223 = vector.multi_reduction <maximumf>, %222, %cst_96 [2] : vector<4x8x8xf32> to vector<4x8xf32>
    %224 = vector.shape_cast %223 : vector<4x8xf32> to vector<4x8x1xf32>
    %225 = vector.broadcast %224 : vector<4x8x1xf32> to vector<4x8x8xf32>
    %226 = arith.subf %222, %225 : vector<4x8x8xf32>
    %227 = math.exp %226 : vector<4x8x8xf32>
    %cst_97 = arith.constant dense<0.000000e+00> : vector<4x8xf32>
    %228 = vector.multi_reduction <add>, %227, %cst_97 [2] : vector<4x8x8xf32> to vector<4x8xf32>
    %229 = vector.shape_cast %228 : vector<4x8xf32> to vector<4x8x1xf32>
    %230 = tpu.reciprocal %229 {approx = true} : vector<4x8x1xf32> -> vector<4x8x1xf32>
    %231 = vector.broadcast %230 : vector<4x8x1xf32> to vector<4x8x8xf32>
    %232 = arith.mulf %227, %231 : vector<4x8x8xf32>
    %233 = vector.extract_strided_slice %200 {offsets = [0, 0, 8], sizes = [4, 8, 8], strides = [1, 1, 1]} : vector<4x8x32xf32> to vector<4x8x8xf32>
    "tpu.trace_start"() <{level = 10 : i32, message = "bqk,bkd->bqd"}> : () -> ()
    %cst_98 = arith.constant dense<0.000000e+00> : vector<4x8x8xf32>
    %234 = tpu.matmul %232, %233, %cst_98 {dimension_numbers = #tpu.dot_dimension_numbers<[2], [1], [1], [2], [0, 0, 0, 1, 1, 2], [0], [0]>} : vector<4x8x8xf32>, vector<4x8x8xf32>, vector<4x8x8xf32> -> vector<4x8x8xf32>
    "tpu.trace_stop"() : () -> ()
    %235 = vector.extract_strided_slice %196 {offsets = [0, 0, 16], sizes = [4, 8, 8], strides = [1, 1, 1]} : vector<4x8x32xf32> to vector<4x8x8xf32>
    %236 = vector.extract_strided_slice %198 {offsets = [0, 0, 16], sizes = [4, 8, 8], strides = [1, 1, 1]} : vector<4x8x32xf32> to vector<4x8x8xf32>
    "tpu.trace_start"() <{level = 10 : i32, message = "bqd,bkd->bqk"}> : () -> ()
    %cst_99 = arith.constant dense<0.000000e+00> : vector<4x8x8xf32>
    %237 = tpu.matmul %235, %236, %cst_99 {dimension_numbers = #tpu.dot_dimension_numbers<[2], [2], [1], [1], [0, 0, 0, 1, 1, 1], [0], [0]>} : vector<4x8x8xf32>, vector<4x8x8xf32>, vector<4x8x8xf32> -> vector<4x8x8xf32>
    "tpu.trace_stop"() : () -> ()
    %cst_100 = arith.constant 0.353553385 : f32
    %238 = vector.broadcast %cst_100 : f32 to vector<4x8x8xf32>
    %239 = arith.mulf %237, %238 : vector<4x8x8xf32>
    %cst_101 = arith.constant dense<0xFF800000> : vector<4x8xf32>
    %240 = vector.multi_reduction <maximumf>, %239, %cst_101 [2] : vector<4x8x8xf32> to vector<4x8xf32>
    %241 = vector.shape_cast %240 : vector<4x8xf32> to vector<4x8x1xf32>
    %242 = vector.broadcast %241 : vector<4x8x1xf32> to vector<4x8x8xf32>
    %243 = arith.subf %239, %242 : vector<4x8x8xf32>
    %244 = math.exp %243 : vector<4x8x8xf32>
    %cst_102 = arith.constant dense<0.000000e+00> : vector<4x8xf32>
    %245 = vector.multi_reduction <add>, %244, %cst_102 [2] : vector<4x8x8xf32> to vector<4x8xf32>
    %246 = vector.shape_cast %245 : vector<4x8xf32> to vector<4x8x1xf32>
    %247 = tpu.reciprocal %246 {approx = true} : vector<4x8x1xf32> -> vector<4x8x1xf32>
    %248 = vector.broadcast %247 : vector<4x8x1xf32> to vector<4x8x8xf32>
    %249 = arith.mulf %244, %248 : vector<4x8x8xf32>
    %250 = vector.extract_strided_slice %200 {offsets = [0, 0, 16], sizes = [4, 8, 8], strides = [1, 1, 1]} : vector<4x8x32xf32> to vector<4x8x8xf32>
    "tpu.trace_start"() <{level = 10 : i32, message = "bqk,bkd->bqd"}> : () -> ()
    %cst_103 = arith.constant dense<0.000000e+00> : vector<4x8x8xf32>
    %251 = tpu.matmul %249, %250, %cst_103 {dimension_numbers = #tpu.dot_dimension_numbers<[2], [1], [1], [2], [0, 0, 0, 1, 1, 2], [0], [0]>} : vector<4x8x8xf32>, vector<4x8x8xf32>, vector<4x8x8xf32> -> vector<4x8x8xf32>
    "tpu.trace_stop"() : () -> ()
    %252 = vector.extract_strided_slice %196 {offsets = [0, 0, 24], sizes = [4, 8, 8], strides = [1, 1, 1]} : vector<4x8x32xf32> to vector<4x8x8xf32>
    %253 = vector.extract_strided_slice %198 {offsets = [0, 0, 24], sizes = [4, 8, 8], strides = [1, 1, 1]} : vector<4x8x32xf32> to vector<4x8x8xf32>
    "tpu.trace_start"() <{level = 10 : i32, message = "bqd,bkd->bqk"}> : () -> ()
    %cst_104 = arith.constant dense<0.000000e+00> : vector<4x8x8xf32>
    %254 = tpu.matmul %252, %253, %cst_104 {dimension_numbers = #tpu.dot_dimension_numbers<[2], [2], [1], [1], [0, 0, 0, 1, 1, 1], [0], [0]>} : vector<4x8x8xf32>, vector<4x8x8xf32>, vector<4x8x8xf32> -> vector<4x8x8xf32>
    "tpu.trace_stop"() : () -> ()
    %cst_105 = arith.constant 0.353553385 : f32
    %255 = vector.broadcast %cst_105 : f32 to vector<4x8x8xf32>
    %256 = arith.mulf %254, %255 : vector<4x8x8xf32>
    %cst_106 = arith.constant dense<0xFF800000> : vector<4x8xf32>
    %257 = vector.multi_reduction <maximumf>, %256, %cst_106 [2] : vector<4x8x8xf32> to vector<4x8xf32>
    %258 = vector.shape_cast %257 : vector<4x8xf32> to vector<4x8x1xf32>
    %259 = vector.broadcast %258 : vector<4x8x1xf32> to vector<4x8x8xf32>
    %260 = arith.subf %256, %259 : vector<4x8x8xf32>
    %261 = math.exp %260 : vector<4x8x8xf32>
    %cst_107 = arith.constant dense<0.000000e+00> : vector<4x8xf32>
    %262 = vector.multi_reduction <add>, %261, %cst_107 [2] : vector<4x8x8xf32> to vector<4x8xf32>
    %263 = vector.shape_cast %262 : vector<4x8xf32> to vector<4x8x1xf32>
    %264 = tpu.reciprocal %263 {approx = true} : vector<4x8x1xf32> -> vector<4x8x1xf32>
    %265 = vector.broadcast %264 : vector<4x8x1xf32> to vector<4x8x8xf32>
    %266 = arith.mulf %261, %265 : vector<4x8x8xf32>
    %267 = vector.extract_strided_slice %200 {offsets = [0, 0, 24], sizes = [4, 8, 8], strides = [1, 1, 1]} : vector<4x8x32xf32> to vector<4x8x8xf32>
    "tpu.trace_start"() <{level = 10 : i32, message = "bqk,bkd->bqd"}> : () -> ()
    %cst_108 = arith.constant dense<0.000000e+00> : vector<4x8x8xf32>
    %268 = tpu.matmul %266, %267, %cst_108 {dimension_numbers = #tpu.dot_dimension_numbers<[2], [1], [1], [2], [0, 0, 0, 1, 1, 2], [0], [0]>} : vector<4x8x8xf32>, vector<4x8x8xf32>, vector<4x8x8xf32> -> vector<4x8x8xf32>
    "tpu.trace_stop"() : () -> ()
    %269 = tpu.concatenate %217, %234, %251, %268 in 2 : vector<4x8x8xf32>, vector<4x8x8xf32>, vector<4x8x8xf32>, vector<4x8x8xf32> -> vector<4x8x32xf32>
    %270 = vector.shape_cast %269 : vector<4x8x32xf32> to vector<32x32xf32>
    %c1_109 = arith.constant 1 : index
    %c0_110 = arith.constant 0 : index
    %c0_111 = arith.constant 0 : index
    %271 = vector.load %arg4[%c1_109, %c0_110, %c0_111] : memref<2x32x32xf32, #tpu.memory_space<vmem>>, vector<1x32x32xf32>
    %272 = vector.shape_cast %271 : vector<1x32x32xf32> to vector<32x32xf32>
    %cst_112 = arith.constant dense<0.000000e+00> : vector<32x32xf32>
    %273 = tpu.matmul %270, %272, %cst_112 {dimension_numbers = #tpu.dot_dimension_numbers<[1], [0], [0], [1], [0, 0, 1, 1], [], []>} : vector<32x32xf32>, vector<32x32xf32>, vector<32x32xf32> -> vector<32x32xf32>
    %c1_113 = arith.constant 1 : index
    %c0_114 = arith.constant 0 : index
    %c0_115 = arith.constant 0 : index
    %274 = vector.load %arg5[%c1_113, %c0_114, %c0_115] : memref<2x1x32xf32, #tpu.memory_space<vmem>>, vector<1x1x32xf32>
    %275 = vector.shape_cast %274 : vector<1x1x32xf32> to vector<1x32xf32>
    %276 = vector.broadcast %275 : vector<1x32xf32> to vector<32x32xf32>
    %277 = arith.addf %273, %276 : vector<32x32xf32>
    %278 = arith.addf %161, %277 : vector<32x32xf32>
    %c1_116 = arith.constant 1 : index
    %c0_117 = arith.constant 0 : index
    %c0_118 = arith.constant 0 : index
    %279 = vector.load %arg8[%c1_116, %c0_117, %c0_118] : memref<2x1x32xf32, #tpu.memory_space<vmem>>, vector<1x1x32xf32>
    %280 = vector.shape_cast %279 : vector<1x1x32xf32> to vector<1x32xf32>
    %c1_119 = arith.constant 1 : index
    %c0_120 = arith.constant 0 : index
    %c0_121 = arith.constant 0 : index
    %281 = vector.load %arg9[%c1_119, %c0_120, %c0_121] : memref<2x1x32xf32, #tpu.memory_space<vmem>>, vector<1x1x32xf32>
    %282 = vector.shape_cast %281 : vector<1x1x32xf32> to vector<1x32xf32>
    %cst_122 = arith.constant dense<0.000000e+00> : vector<32xf32>
    %283 = vector.multi_reduction <add>, %278, %cst_122 [1] : vector<32x32xf32> to vector<32xf32>
    %284 = vector.shape_cast %283 : vector<32xf32> to vector<32x1xf32>
    %cst_123 = arith.constant 3.200000e+01 : f32
    %285 = vector.broadcast %cst_123 : f32 to vector<32x1xf32>
    %286 = arith.divf %284, %285 : vector<32x1xf32>
    %287 = vector.broadcast %286 : vector<32x1xf32> to vector<32x32xf32>
    %288 = arith.subf %278, %287 : vector<32x32xf32>
    %289 = arith.mulf %288, %288 : vector<32x32xf32>
    %cst_124 = arith.constant dense<0.000000e+00> : vector<32xf32>
    %290 = vector.multi_reduction <add>, %289, %cst_124 [1] : vector<32x32xf32> to vector<32xf32>
    %291 = vector.shape_cast %290 : vector<32xf32> to vector<32x1xf32>
    %cst_125 = arith.constant 3.200000e+01 : f32
    %292 = vector.broadcast %cst_125 : f32 to vector<32x1xf32>
    %293 = arith.divf %291, %292 : vector<32x1xf32>
    %294 = vector.broadcast %286 : vector<32x1xf32> to vector<32x32xf32>
    %295 = arith.subf %278, %294 : vector<32x32xf32>
    %cst_126 = arith.constant 9.99999974E-6 : f32
    %296 = vector.broadcast %cst_126 : f32 to vector<32x1xf32>
    %297 = arith.addf %293, %296 : vector<32x1xf32>
    %298 = math.rsqrt %297 : vector<32x1xf32>
    %299 = vector.broadcast %298 : vector<32x1xf32> to vector<32x32xf32>
    %300 = arith.mulf %295, %299 : vector<32x32xf32>
    %301 = vector.broadcast %280 : vector<1x32xf32> to vector<32x32xf32>
    %302 = arith.mulf %300, %301 : vector<32x32xf32>
    %303 = vector.broadcast %282 : vector<1x32xf32> to vector<32x32xf32>
    %304 = arith.addf %302, %303 : vector<32x32xf32>
    %c1_127 = arith.constant 1 : index
    %c0_128 = arith.constant 0 : index
    %c0_129 = arith.constant 0 : index
    %305 = vector.load %arg10[%c1_127, %c0_128, %c0_129] : memref<2x32x64xf32, #tpu.memory_space<vmem>>, vector<1x32x64xf32>
    %306 = vector.shape_cast %305 : vector<1x32x64xf32> to vector<32x64xf32>
    %cst_130 = arith.constant dense<0.000000e+00> : vector<32x64xf32>
    %307 = tpu.matmul %304, %306, %cst_130 {dimension_numbers = #tpu.dot_dimension_numbers<[1], [0], [0], [1], [0, 0, 1, 1], [], []>} : vector<32x32xf32>, vector<32x64xf32>, vector<32x64xf32> -> vector<32x64xf32>
    %c1_131 = arith.constant 1 : index
    %c0_132 = arith.constant 0 : index
    %c0_133 = arith.constant 0 : index
    %308 = vector.load %arg11[%c1_131, %c0_132, %c0_133] : memref<2x1x64xf32, #tpu.memory_space<vmem>>, vector<1x1x64xf32>
    %309 = vector.shape_cast %308 : vector<1x1x64xf32> to vector<1x64xf32>
    %310 = vector.broadcast %309 : vector<1x64xf32> to vector<32x64xf32>
    %311 = arith.addf %307, %310 : vector<32x64xf32>
    %cst_134 = arith.constant 0.000000e+00 : f32
    %312 = vector.broadcast %cst_134 : f32 to vector<32x64xf32>
    %313 = arith.maximumf %311, %312 : vector<32x64xf32>
    %c1_135 = arith.constant 1 : index
    %c0_136 = arith.constant 0 : index
    %c0_137 = arith.constant 0 : index
    %314 = vector.load %arg12[%c1_135, %c0_136, %c0_137] : memref<2x64x32xf32, #tpu.memory_space<vmem>>, vector<1x64x32xf32>
    %315 = vector.shape_cast %314 : vector<1x64x32xf32> to vector<64x32xf32>
    %cst_138 = arith.constant dense<0.000000e+00> : vector<32x32xf32>
    %316 = tpu.matmul %313, %315, %cst_138 {dimension_numbers = #tpu.dot_dimension_numbers<[1], [0], [0], [1], [0, 0, 1, 1], [], []>} : vector<32x64xf32>, vector<64x32xf32>, vector<32x32xf32> -> vector<32x32xf32>
    %c1_139 = arith.constant 1 : index
    %c0_140 = arith.constant 0 : index
    %c0_141 = arith.constant 0 : index
    %317 = vector.load %arg13[%c1_139, %c0_140, %c0_141] : memref<2x1x32xf32, #tpu.memory_space<vmem>>, vector<1x1x32xf32>
    %318 = vector.shape_cast %317 : vector<1x1x32xf32> to vector<1x32xf32>
    %319 = vector.broadcast %318 : vector<1x32xf32> to vector<32x32xf32>
    %320 = arith.addf %316, %319 : vector<32x32xf32>
    %321 = arith.addf %278, %320 : vector<32x32xf32>
    %c0_142 = arith.constant 0 : index
    %c0_143 = arith.constant 0 : index
    %322 = vector.load %arg14[%c0_142, %c0_143] : memref<1x32xf32, #tpu.memory_space<vmem>>, vector<1x32xf32>
    %c0_144 = arith.constant 0 : index
    %c0_145 = arith.constant 0 : index
    %323 = vector.load %arg15[%c0_144, %c0_145] : memref<1x32xf32, #tpu.memory_space<vmem>>, vector<1x32xf32>
    %cst_146 = arith.constant dense<0.000000e+00> : vector<32xf32>
    %324 = vector.multi_reduction <add>, %321, %cst_146 [1] : vector<32x32xf32> to vector<32xf32>
    %325 = vector.shape_cast %324 : vector<32xf32> to vector<32x1xf32>
    %cst_147 = arith.constant 3.200000e+01 : f32
    %326 = vector.broadcast %cst_147 : f32 to vector<32x1xf32>
    %327 = arith.divf %325, %326 : vector<32x1xf32>
    %328 = vector.broadcast %327 : vector<32x1xf32> to vector<32x32xf32>
    %329 = arith.subf %321, %328 : vector<32x32xf32>
    %330 = arith.mulf %329, %329 : vector<32x32xf32>
    %cst_148 = arith.constant dense<0.000000e+00> : vector<32xf32>
    %331 = vector.multi_reduction <add>, %330, %cst_148 [1] : vector<32x32xf32> to vector<32xf32>
    %332 = vector.shape_cast %331 : vector<32xf32> to vector<32x1xf32>
    %cst_149 = arith.constant 3.200000e+01 : f32
    %333 = vector.broadcast %cst_149 : f32 to vector<32x1xf32>
    %334 = arith.divf %332, %333 : vector<32x1xf32>
    %335 = vector.broadcast %327 : vector<32x1xf32> to vector<32x32xf32>
    %336 = arith.subf %321, %335 : vector<32x32xf32>
    %cst_150 = arith.constant 9.99999974E-6 : f32
    %337 = vector.broadcast %cst_150 : f32 to vector<32x1xf32>
    %338 = arith.addf %334, %337 : vector<32x1xf32>
    %339 = math.rsqrt %338 : vector<32x1xf32>
    %340 = vector.broadcast %339 : vector<32x1xf32> to vector<32x32xf32>
    %341 = arith.mulf %336, %340 : vector<32x32xf32>
    %342 = vector.broadcast %322 : vector<1x32xf32> to vector<32x32xf32>
    %343 = arith.mulf %341, %342 : vector<32x32xf32>
    %344 = vector.broadcast %323 : vector<1x32xf32> to vector<32x32xf32>
    %345 = arith.addf %343, %344 : vector<32x32xf32>
    %346 = vector.shape_cast %345 : vector<32x32xf32> to vector<4x8x32xf32>
    %c0_151 = arith.constant 0 : index
    %c0_152 = arith.constant 0 : index
    %c0_153 = arith.constant 0 : index
    %347 = vector.load %arg16[%c0_151, %c0_152, %c0_153] : memref<4x8x32xf32, #tpu.memory_space<vmem>>, vector<4x8x32xf32>
    tpu.vector_store %arg16[%c0_151, %c0_152, %c0_153], %346 {strides = array<i32>} : memref<4x8x32xf32, #tpu.memory_space<vmem>>, vector<4x8x32xf32>,
    return
  }
  func.func @transform_0(%arg0: i32) -> (i32, i32, i32) {
    %c0_i32 = arith.constant 0 : i32
    %c0_i32_0 = arith.constant 0 : i32
    %c0_i32_1 = arith.constant 0 : i32
    return %arg0, %c0_i32, %c0_i32_0 : i32, i32, i32
  }
  func.func @transform_1(%arg0: i32) -> (i32, i32, i32) {
    %c0_i32 = arith.constant 0 : i32
    %c0_i32_0 = arith.constant 0 : i32
    %c0_i32_1 = arith.constant 0 : i32
    %c0_i32_2 = arith.constant 0 : i32
    return %c0_i32, %c0_i32_0, %c0_i32_1 : i32, i32, i32
  }
  func.func @transform_2(%arg0: i32) -> (i32, i32, i32) {
    %c0_i32 = arith.constant 0 : i32
    %c0_i32_0 = arith.constant 0 : i32
    %c0_i32_1 = arith.constant 0 : i32
    %c0_i32_2 = arith.constant 0 : i32
    return %c0_i32, %c0_i32_0, %c0_i32_1 : i32, i32, i32
  }
  func.func @transform_3(%arg0: i32) -> (i32, i32, i32) {
    %c0_i32 = arith.constant 0 : i32
    %c0_i32_0 = arith.constant 0 : i32
    %c0_i32_1 = arith.constant 0 : i32
    %c0_i32_2 = arith.constant 0 : i32
    return %c0_i32, %c0_i32_0, %c0_i32_1 : i32, i32, i32
  }
  func.func @transform_4(%arg0: i32) -> (i32, i32, i32) {
    %c0_i32 = arith.constant 0 : i32
    %c0_i32_0 = arith.constant 0 : i32
    %c0_i32_1 = arith.constant 0 : i32
    %c0_i32_2 = arith.constant 0 : i32
    return %c0_i32, %c0_i32_0, %c0_i32_1 : i32, i32, i32
  }
  func.func @transform_5(%arg0: i32) -> (i32, i32, i32) {
    %c0_i32 = arith.constant 0 : i32
    %c0_i32_0 = arith.constant 0 : i32
    %c0_i32_1 = arith.constant 0 : i32
    %c0_i32_2 = arith.constant 0 : i32
    return %c0_i32, %c0_i32_0, %c0_i32_1 : i32, i32, i32
  }
  func.func @transform_6(%arg0: i32) -> (i32, i32, i32) {
    %c0_i32 = arith.constant 0 : i32
    %c0_i32_0 = arith.constant 0 : i32
    %c0_i32_1 = arith.constant 0 : i32
    %c0_i32_2 = arith.constant 0 : i32
    return %c0_i32, %c0_i32_0, %c0_i32_1 : i32, i32, i32
  }
  func.func @transform_7(%arg0: i32) -> (i32, i32, i32) {
    %c0_i32 = arith.constant 0 : i32
    %c0_i32_0 = arith.constant 0 : i32
    %c0_i32_1 = arith.constant 0 : i32
    %c0_i32_2 = arith.constant 0 : i32
    return %c0_i32, %c0_i32_0, %c0_i32_1 : i32, i32, i32
  }
  func.func @transform_8(%arg0: i32) -> (i32, i32, i32) {
    %c0_i32 = arith.constant 0 : i32
    %c0_i32_0 = arith.constant 0 : i32
    %c0_i32_1 = arith.constant 0 : i32
    %c0_i32_2 = arith.constant 0 : i32
    return %c0_i32, %c0_i32_0, %c0_i32_1 : i32, i32, i32
  }
  func.func @transform_9(%arg0: i32) -> (i32, i32, i32) {
    %c0_i32 = arith.constant 0 : i32
    %c0_i32_0 = arith.constant 0 : i32
    %c0_i32_1 = arith.constant 0 : i32
    %c0_i32_2 = arith.constant 0 : i32
    return %c0_i32, %c0_i32_0, %c0_i32_1 : i32, i32, i32
  }
  func.func @transform_10(%arg0: i32) -> (i32, i32, i32) {
    %c0_i32 = arith.constant 0 : i32
    %c0_i32_0 = arith.constant 0 : i32
    %c0_i32_1 = arith.constant 0 : i32
    %c0_i32_2 = arith.constant 0 : i32
    return %c0_i32, %c0_i32_0, %c0_i32_1 : i32, i32, i32
  }
  func.func @transform_11(%arg0: i32) -> (i32, i32, i32) {
    %c0_i32 = arith.constant 0 : i32
    %c0_i32_0 = arith.constant 0 : i32
    %c0_i32_1 = arith.constant 0 : i32
    %c0_i32_2 = arith.constant 0 : i32
    return %c0_i32, %c0_i32_0, %c0_i32_1 : i32, i32, i32
  }
  func.func @transform_12(%arg0: i32) -> (i32, i32, i32) {
    %c0_i32 = arith.constant 0 : i32
    %c0_i32_0 = arith.constant 0 : i32
    %c0_i32_1 = arith.constant 0 : i32
    %c0_i32_2 = arith.constant 0 : i32
    return %c0_i32, %c0_i32_0, %c0_i32_1 : i32, i32, i32
  }
  func.func @transform_13(%arg0: i32) -> (i32, i32) {
    %c0_i32 = arith.constant 0 : i32
    %c0_i32_0 = arith.constant 0 : i32
    %c0_i32_1 = arith.constant 0 : i32
    return %c0_i32, %c0_i32_0 : i32, i32
  }
  func.func @transform_14(%arg0: i32) -> (i32, i32) {
    %c0_i32 = arith.constant 0 : i32
    %c0_i32_0 = arith.constant 0 : i32
    %c0_i32_1 = arith.constant 0 : i32
    return %c0_i32, %c0_i32_0 : i32, i32
  }
  func.func @transform_15(%arg0: i32) -> (i32, i32, i32) {
    %c0_i32 = arith.constant 0 : i32
    %c0_i32_0 = arith.constant 0 : i32
    %c0_i32_1 = arith.constant 0 : i32
    return %arg0, %c0_i32, %c0_i32_0 : i32, i32, i32
  }
}

</mosaic_0001>

<bundles_post_ra>
// kernel: tpu_custom_call.1
= control target key start
LH: loop header
LB: loop body
LE: loop exit
PB: predicated region body
PF: predicated region fallthrough
CT: control target
= control target key end

     0   :  { %20 = vsyncpa [#allocation3], 0  ;;  %s9051_s0 = inlined_call_operand.hbm [shape: f32[4,8,32], index: 0, kind: input, shape index: {}]   ;;  %s9052_s1 = inlined_call_operand.vmem [shape: f32[2,32,96], index: 1, kind: input, shape index: {}]   ;;  %s9053_s2 = inlined_call_operand.vmem [shape: f32[2,1,96], index: 2, kind: input, shape index: {}]   ;;  %s9054_s3 = inlined_call_operand.vmem [shape: f32[2,32,32], index: 3, kind: input, shape index: {}]   ;;  %s9055_s4 = inlined_call_operand.vmem [shape: f32[2,1,32], index: 4, kind: input, shape index: {}]   ;;  %s9056_s5 = inlined_call_operand.vmem [shape: f32[2,1,32], index: 5, kind: input, shape index: {}]   ;;  %s9057_s6 = inlined_call_operand.vmem [shape: f32[2,1,32], index: 6, kind: input, shape index: {}]   ;;  %s9058_s7 = inlined_call_operand.vmem [shape: f32[2,1,32], index: 7, kind: input, shape index: {}]   ;;  %s9059_s8 = inlined_call_operand.vmem [shape: f32[2,1,32], index: 8, kind: input, shape index: {}]   ;;  %s9060_s9 = inlined_call_operand.vmem [shape: f32[2,32,64], index: 9, kind: input, shape index: {}]   ;;  %s9061_s10 = inlined_call_operand.vmem [shape: f32[2,1,64], index: 10, kind: input, shape index: {}]   ;;  %s9062_s11 = inlined_call_operand.vmem [shape: f32[2,64,32], index: 11, kind: input, shape index: {}]   ;;  %s9063_s12 = inlined_call_operand.vmem [shape: f32[2,1,32], index: 12, kind: input, shape index: {}]   ;;  %s9064_s13 = inlined_call_operand.vmem [shape: f32[1,32], index: 13, kind: input, shape index: {}]   ;;  %s9065_s14 = inlined_call_operand.vmem [shape: f32[1,32], index: 14, kind: input, shape index: {}]   ;;  %s9066_s15 = inlined_call_operand.hbm [shape: f32[4,8,32], index: 15, kind: output, shape index: {}]  }
   0x1   :  { %21 = vsyncpa [#allocation4], 0  ;;  %s7939_s18 = smov [#allocation2]   ;;  %s7891_s22 = scalar_lea.hbm %s9051_s0, 512 }
   0x2   :  { %s27_s19 = sshll.u32 %s7939_s18, 4  ;;  %p7892_p0 = scmp.ne.s32.totalorder %s9051_s0, %s7891_s22  ;;  %s28_s19 = int_to_ptr.vmem [resolvable:$true] %s27_s19 }
   0x3   :  { %p7895_p1 = scmp.lt.u32.totalorder %s7891_s22, %s9051_s0 }
   0x5   :  { %p7897_p2 = pnand %p7895_p1, %p7892_p0 }
   0x7   :  { %7900 = shalt.err (!%p7897_p2)
}
   0x8   :  { %s7901_s27 = scalar_lea.vmem %s28_s19, 512  ;;  %p7906_p4 = scmp.lt.s32.totalorder %s28_s19, %s28_s19 }
   0x9   :  { %p7902_p3 = scmp.ne.s32.totalorder %s28_s19, %s7901_s27  ;;  %p7907_p5 = scmp.lt.s32.totalorder %s7901_s27, %s7901_s27 }
   0xb   :  { %p7908_p6 = por %p7907_p5, %p7906_p4 }
   0xd   :  { %p7909_p7 = pnand %p7908_p6, %p7902_p3 }
   0xf   :  { %7912 = shalt.err (!%p7909_p7)
}
  0x10   :  { %s9067_s28 = smov 128   ;;  %s7941_s29 = smov 8  }
  0x11   :  { %33 = dma.hbm_to_vmem [thread:$0]  %s9051_s0, 512, %s28_s19, [#allocation3], %s9067_s28, %s9067_s28, %s7941_s29  }
  0x12   :  { %7935 = dma.done.wait [#allocation3], 512  }
  0x13   :  { %7936 = vsyncadd [#allocation3], 4294966784  ;;  %vm71_vm0 = vcmask 261120   ;;  %v65_v0 = vld [vmem:[#allocation2] sm:$0xff]  ;;  %v67_v1 = vld [vmem:[#allocation2 + $0x10] sm:$0xff]  ;;  %vm7943_vm1 = vmmov 0  }
  0x14   :  { %v66_v2 = vld [vmem:[#allocation2 + $0x8] sm:$0xff]  ;;  %v72_v3 = vsel %vm71_vm0, %v65_v0, 0.0  ;;  %v78_v4 = vsel %vm71_vm0, %v67_v1, 0.0  ;;  %v68_v5 = vld [vmem:[#allocation2 + $0x18] sm:$0xff]  ;;  %v145_v28 = vld [vmem:[%s9052_s1] sm:$0xff]  ;;  %s7944_s0 = smov 96  }
  0x15   :  { %73 = vadd.xlane.f32.xlu0 %v72_v3  ;;  %79 = vadd.xlane.f32.xlu1 %v78_v4  ;;  %v75_v6 = vsel %vm71_vm0, %v66_v2, 0.0  ;;  %v81_v7 = vsel %vm71_vm0, %v68_v5, 0.0  ;;  %v146_v29 = vld [vmem:[%s9052_s1 + $0x8] sm:$0xff]  ;;  %v147_v30 = vld [vmem:[%s9052_s1 + $0x10] sm:$0xff]  ;;  %v148_v32 = vld [vmem:[%s9052_s1 + $0x18] sm:$0xff]  ;;  %vm256_vm2 = vcmask 64512  }
  0x16   :  { %v7620_v31 = vpack.c.bf16 %v146_v29, %v145_v28  ;;  %v7624_v33 = vpack.c.bf16 %v148_v32, %v147_v30  ;;  %v6798_v47 = vld [vmem:[%s9056_s5] ss:$0 sm:$0xff]  ;;  %s7945_s17 = smov 64   ;;  %s7946_s18 = smov 88   ;;  %vm2958_vm3 = vcmask 130048   ;;  %vm2963_vm4 = vcmask 195584  }
  0x17   :  { %v6799_v49 = vld [vmem:[%s9057_s6] ss:$0 sm:$0xff]  ;;  %s7947_s19 = smov 120   ;;  %s7948_s20 = smov 56   ;;  %vm3281_vm5 = vcmask 523264  }
  0x18   :  { %7621 = vmatprep.subr.bf16.mxu0 %v7620_v31  ;;  %s9078_s21 = smov 80   ;;  %s9076_s22 = smov 112  }
  0x19   :  { %76 = vadd.xlane.f32.xlu0 %v75_v6  ;;  %82 = vadd.xlane.f32.xlu1 %v81_v7  ;;  %s9074_s23 = smov 48   ;;  %s9072_s24 = smov 72  }
  0x1a   :  { %7623 = vmatpush3.bf16.msra.mxu0 %v7620_v31  ;;  %s9070_s25 = smov 104   ;;  %s9068_s26 = smov 40  }
  0x1b   :  { %7625 = vmatprep.subr.bf16.mxu0 %v7624_v33  ;;  %s9082_s27 = smov 16   ;;  %s9091_s30 = smov 24  }
  0x1e   :  { %7627 = vmatpush3.bf16.msra.mxu0 %v7624_v33 }
  0xa2   :  { %v74_v8 = vpop.xlane.xlu0 %73  ;;  %v80_v9 = vpop.xlane.xlu1 %79 }
  0xa3   :  { %v85_v10 = vmul.f32 0.03125, %v74_v8  ;;  %v87_v11 = vmul.f32 0.03125, %v80_v9 }
  0xa5   :  { %v89_v12 = vsub.f32 %v65_v0, %v85_v10  ;;  %v91_v13 = vsub.f32 %v67_v1, %v87_v11  ;;  %v7942_v0 = vmov 0.0   ;;  %v6800_v1 = vld [vmem:[%s9053_s2] ss:$0 sm:$0xff] }
  0xa6   :  { %v77_v14 = vpop.xlane.xlu0 %76  ;;  %v83_v15 = vpop.xlane.xlu1 %82  ;;  %7191 = vmatprep.subr.mxu1 %v7942_v0  ;;  %7186 = vmatprep.subr.mxu0 %v7942_v0 }
  0xa7   :  { %v86_v16 = vmul.f32 0.03125, %v77_v14  ;;  %v88_v17 = vmul.f32 0.03125, %v83_v15  ;;  %v93_v18 = vmul.f32 %v89_v12, %v89_v12  ;;  %v95_v19 = vmul.f32 %v91_v13, %v91_v13  ;;  %7193 = vmatprep.mubr.msk.f32.mxu1 %vm7943_vm1, %v7942_v0 }
  0xa9   :  { %v90_v20 = vsub.f32 %v66_v2, %v86_v16  ;;  %v92_v21 = vsub.f32 %v68_v5, %v88_v17  ;;  %v97_v22 = vsel %vm71_vm0, %v93_v18, 0.0  ;;  %v103_v23 = vsel %vm71_vm0, %v95_v19, 0.0 }
  0xaa   :  { %98 = vadd.xlane.f32.xlu0 %v97_v22 }
  0xab   :  { %v94_v24 = vmul.f32 %v90_v20, %v90_v20  ;;  %v96_v25 = vmul.f32 %v92_v21, %v92_v21 }
  0xad   :  { %v100_v26 = vsel %vm71_vm0, %v94_v24, 0.0  ;;  %v106_v27 = vsel %vm71_vm0, %v96_v25, 0.0 }
  0xae   :  { %104 = vadd.xlane.f32.xlu0 %v103_v23  ;;  %101 = vadd.xlane.f32.xlu1 %v100_v26 }
  0xb2   :  { %107 = vadd.xlane.f32.xlu1 %v106_v27 }
 0x137   :  { %v99_v34 = vpop.xlane.xlu0 %98 }
 0x138   :  { %v109_v35 = vmul.f32 0.03125, %v99_v34 }
 0x13a   :  { %v113_v36 = vadd.f32 1e-05, %v109_v35 }
 0x13b   :  { %v102_v37 = vpop.xlane.xlu1 %101  ;;  %v105_v38 = vpop.xlane.xlu0 %104 }
 0x13c   :  { %7719 = vrsqrt.f32 %v113_v36  ;;  %v110_v39 = vmul.f32 0.03125, %v102_v37  ;;  %v111_v40 = vmul.f32 0.03125, %v105_v38 }
 0x13e   :  { %v114_v41 = vadd.f32 1e-05, %v110_v39  ;;  %v115_v42 = vadd.f32 1e-05, %v111_v40 }
 0x13f   :  { %v108_v43 = vpop.xlane.xlu1 %107 }
 0x140   :  { %7721 = vrsqrt.f32 %v114_v41  ;;  %v112_v44 = vmul.f32 0.03125, %v108_v43 }
 0x141   :  { %7723 = vrsqrt.f32 %v115_v42 }
 0x142   :  { %v116_v45 = vadd.f32 1e-05, %v112_v44 }
 0x144   :  { %7725 = vrsqrt.f32 %v116_v45 }
 0x146   :  { %v7720_v46 = vpop.eup %7719 }
 0x147   :  { %v121_v48 = vmul.f32 %v7720_v46, %v89_v12 }
 0x149   :  { %v131_v50 = vmul.f32 %v6798_v47, %v121_v48 }
 0x14a   :  { %v7722_v51 = vpop.eup %7721 }
 0x14b   :  { %v7724_v52 = vpop.eup %7723  ;;  %v141_v53 = vadd.f32 %v6799_v49, %v131_v50  ;;  %v122_v54 = vmul.f32 %v7722_v51, %v90_v20 }
 0x14c   :  { %v123_v55 = vmul.f32 %v7724_v52, %v91_v13 }
 0x14d   :  { %7180 = vmatprep.mubr.msk.f32.mxu0 %vm71_vm0, %v141_v53  ;;  %v132_v56 = vmul.f32 %v6798_v47, %v122_v54 }
 0x14e   :  { %v7726_v57 = vpop.eup %7725  ;;  %v133_v58 = vmul.f32 %v6798_v47, %v123_v55 }
 0x14f   :  { %v142_v59 = vadd.f32 %v6799_v49, %v132_v56  ;;  %v124_v60 = vmul.f32 %v7726_v57, %v92_v21 }
 0x150   :  { %v143_v61 = vadd.f32 %v6799_v49, %v133_v58 }
 0x151   :  { %7181 = vmatmul.mubr.msk.f32.vlgmr.msra.gmra.mrb[0].mxu0 %vm71_vm0, %v142_v59  ;;  %v134_v62 = vmul.f32 %v6798_v47, %v124_v60 }
 0x152   :  { %7183 = vmatprep.mubr.msk.f32.mxu0 %vm71_vm0, %v143_v61 }
 0x153   :  { %v144_v63 = vadd.f32 %v6799_v49, %v134_v62 }
 0x155   :  { %7184 = vmatmul.mubr.msk.f32.gmra.mrb[2].mxu0 %vm71_vm0, %v144_v63 }
 0x156   :  { %7188 = vmatprep.mubr.msk.f32.mxu0 %vm7943_vm1, %v7942_v0 }
 0x224   :  { %v7182_v2 = vpop.f32.mrb[0].mxu0 }
 0x225   :  { %v8092_v3 = vadd.f32 %v7182_v2, %v6800_v1  ;;  %v234_v4 = vpop.f32.mrb[1].mxu0 }
 0x226   :  { %v8094_v5 = vadd.f32 %v6800_v1, %v234_v4 }
 0x227   :  { %332 = vrot.lane.b32.xlu1 %v8092_v3, %s7944_s0 }
 0x228   :  { %254 = vrot.lane.b32.xlu0 %v8094_v5, %s7944_s0  ;;  %v7185_v6 = vpop.f32.mrb[2].mxu0 }
 0x229   :  { %v244_v7 = vpop.f32.mrb[3].mxu0  ;;  %v8104_v9 = vadd.f32 %v7185_v6, %v6800_v1 }
 0x22a   :  { %v8100_v8 = vadd.f32 %v6800_v1, %v244_v7 }
 0x22c   :  { %409 = vrot.lane.b32.xlu1 %v8100_v8, %s7944_s0 }
 0x230   :  { %486 = vrot.lane.b32.xlu1 %v8104_v9, %s7944_s0 }
 0x299   :  { %v333_v10 = vpop.permute.xlu1 %332 }
 0x29a   :  { %7192 = vmatpush3.xpose.msk.msra.mxu1 %vm256_vm2, %v333_v10  ;;  %v255_v11 = vpop.permute.xlu0 %254 }
 0x29b   :  { %7187 = vmatpush3.xpose.msk.msra.mxu0 %vm256_vm2, %v255_v11  ;;  %7196 = vmatprep.subr.mxu1 %v7942_v0 }
 0x29c   :  { %7201 = vmatprep.subr.mxu0 %v7942_v0 }
 0x29d   :  { %7194 = vmatmul.mubr.msk.f32.vlgmr.msra.gmra.mrb[0].mxu1 %vm256_vm2, %v8092_v3 }
 0x29e   :  { %v410_v12 = vpop.permute.xlu1 %409  ;;  %7189 = vmatmul.mubr.msk.f32.vlgmr.msra.gmra.mrb[4].mxu0 %vm256_vm2, %v8094_v5  ;;  %7198 = vmatprep.mubr.msk.f32.mxu1 %vm7943_vm1, %v7942_v0 }
 0x29f   :  { %7197 = vmatpush3.xpose.msk.msra.mxu1 %vm256_vm2, %v410_v12  ;;  %7203 = vmatprep.mubr.msk.f32.mxu0 %vm7943_vm1, %v7942_v0 }
 0x2a0   :  { %7206 = vmatprep.subr.mxu1 %v7942_v0 }
 0x2a2   :  { %7199 = vmatmul.mubr.msk.f32.vlgmr.msra.gmra.mrb[2].mxu1 %vm256_vm2, %v8100_v8  ;;  %v487_v13 = vpop.permute.xlu1 %486 }
 0x2a3   :  { %7202 = vmatpush3.xpose.msk.msra.mxu0 %vm256_vm2, %v487_v13  ;;  %7208 = vmatprep.mubr.msk.f32.mxu1 %vm7943_vm1, %v7942_v0 }
 0x2a4   :  { %7211 = vmatprep.subr.mxu0 %v7942_v0 }
 0x2a6   :  { %7204 = vmatmul.mubr.msk.f32.vlgmr.msra.gmra.mrb[6].mxu0 %vm256_vm2, %v8104_v9 }
 0x2a7   :  { %7213 = vmatprep.mubr.msk.f32.mxu0 %vm7943_vm1, %v7942_v0 }
 0x370   :  { %v404_v14 = vpop.f32.mrb[0].mxu1 }
 0x371   :  { %v563_v15 = vmul.f32 0.35355338, %v404_v14  ;;  %v327_v16 = vpop.f32.mrb[4].mxu0  ;;  %v7195_v17 = vpop.f32.mrb[1].mxu1 }
 0x372   :  { %v562_v18 = vmul.f32 0.35355338, %v327_v16  ;;  %v7190_v19 = vpop.f32.mrb[5].mxu0 }
 0x373   :  { %v569_v20 = vsel %vm256_vm2, %v563_v15, -inf }
 0x374   :  { %570 = vmax.xlane.f32.xlu1 %v569_v20  ;;  %v566_v21 = vsel %vm256_vm2, %v562_v18, -inf }
 0x375   :  { %v481_v22 = vpop.f32.mrb[2].mxu1  ;;  %567 = vmax.xlane.f32.xlu0 %v566_v21 }
 0x376   :  { %v564_v23 = vmul.f32 0.35355338, %v481_v22  ;;  %v7200_v24 = vpop.f32.mrb[3].mxu1 }
 0x378   :  { %v572_v25 = vsel %vm256_vm2, %v564_v23, -inf }
 0x379   :  { %573 = vmax.xlane.f32.xlu0 %v572_v25  ;;  %v558_v26 = vpop.f32.mrb[6].mxu0 }
 0x37a   :  { %v565_v27 = vmul.f32 0.35355338, %v558_v26  ;;  %v7205_v28 = vpop.f32.mrb[7].mxu0 }
 0x37c   :  { %v575_v29 = vsel %vm256_vm2, %v565_v27, -inf }
 0x37d   :  { %576 = vmax.xlane.f32.xlu0 %v575_v29 }
 0x385   :  { %686 = vrot.lane.b32.xlu1 %v8092_v3, %s7945_s17 }
 0x389   :  { %762 = vrot.lane.b32.xlu1 %v8100_v8, %s7945_s17 }
 0x38d   :  { %838 = vrot.lane.b32.xlu1 %v8104_v9, %s7945_s17 }
 0x391   :  { %994 = vrot.lane.b32.xlu1 %v8092_v3, %s7946_s18 }
 0x393   :  { %610 = vrot.lane.b32.xlu0 %v8094_v5, %s7945_s17 }
 0x397   :  { %916 = vrot.lane.b32.xlu0 %v8094_v5, %s7946_s18 }
 0x401   :  { %v571_v30 = vpop.xlane.xlu1 %570 }
 0x402   :  { %v579_v31 = vsub.f32 %v563_v15, %v571_v30  ;;  %v568_v32 = vpop.xlane.xlu0 %567 }
 0x403   :  { %v578_v33 = vsub.f32 %v562_v18, %v568_v32 }
 0x404   :  { %v584_v34 = vmul.f32 1.442695, %v579_v31 }
 0x405   :  { %v582_v35 = vmul.f32 1.442695, %v578_v33  ;;  %v687_v36 = vpop.permute.xlu1 %686 }
 0x406   :  { %7727 = vpow2.f32 %v584_v34  ;;  %7212 = vmatpush3.msra.mxu0 %v687_v36  ;;  %v574_v37 = vpop.xlane.xlu0 %573 }
 0x407   :  { %7729 = vpow2.f32 %v582_v35  ;;  %v580_v38 = vsub.f32 %v564_v23, %v574_v37  ;;  %7221 = vmatprep.subr.mxu0 %v7942_v0 }
 0x409   :  { %v586_v39 = vmul.f32 1.442695, %v580_v38  ;;  %v763_v52 = vpop.permute.xlu1 %762 }
 0x40a   :  { %v577_v40 = vpop.xlane.xlu0 %576 }
 0x40b   :  { %7731 = vpow2.f32 %v586_v39  ;;  %v581_v48 = vsub.f32 %v565_v27, %v577_v40 }
 0x40d   :  { %v588_v49 = vmul.f32 1.442695, %v581_v48  ;;  %v839_v53 = vpop.permute.xlu1 %838 }
 0x40e   :  { %v611_v41 = vpop.permute.xlu0 %610 }
 0x40f   :  { %7207 = vmatpush3.msra.mxu1 %v611_v41  ;;  %7733 = vpow2.f32 %v588_v49 }
 0x410   :  { %v7728_v42 = vpop.eup %7727  ;;  %7216 = vmatprep.subr.mxu1 %v7942_v0 }
 0x411   :  { %v7730_v43 = vpop.eup %7729  ;;  %v593_v44 = vsel %vm256_vm2, %v7728_v42, 0.0  ;;  %v995_v54 = vpop.permute.xlu1 %994 }
 0x412   :  { %594 = vadd.xlane.f32.xlu1 %v593_v44  ;;  %v590_v45 = vsel %vm256_vm2, %v7730_v43, 0.0  ;;  %v917_v55 = vpop.permute.xlu0 %916 }
 0x413   :  { %591 = vadd.xlane.f32.xlu0 %v590_v45 }
 0x415   :  { %v7732_v46 = vpop.eup %7731 }
 0x416   :  { %v596_v47 = vsel %vm256_vm2, %v7732_v46, 0.0 }
 0x417   :  { %597 = vadd.xlane.f32.xlu0 %v596_v47 }
 0x419   :  { %v7734_v50 = vpop.eup %7733 }
 0x41a   :  { %v599_v51 = vsel %vm256_vm2, %v7734_v50, 0.0 }
 0x423   :  { %992 = vrot.lane.b32.xlu1 %v8092_v3, %s7947_s19 }
 0x42d   :  { %914 = vrot.lane.b32.xlu0 %v8094_v5, %s7947_s19 }
 0x431   :  { %1072 = vrot.lane.b32.xlu0 %v8100_v8, %s7946_s18 }
 0x435   :  { %1070 = vrot.lane.b32.xlu0 %v8100_v8, %s7947_s19 }
 0x447   :  { %600 = vadd.xlane.f32.xlu1 %v599_v51 }
 0x458   :  { %1150 = vrot.lane.b32.xlu1 %v8104_v9, %s7946_s18 }
 0x45c   :  { %1148 = vrot.lane.b32.xlu1 %v8104_v9, %s7947_s19 }
 0x49f   :  { %v595_v56 = vpop.xlane.xlu1 %594 }
 0x4a0   :  { %7735 = vrcp.f32 %v595_v56  ;;  %v592_v57 = vpop.xlane.xlu0 %591 }
 0x4a1   :  { %7737 = vrcp.f32 %v592_v57 }
 0x4a3   :  { %v993_v7 = vpop.permute.xlu1 %992 }
 0x4a4   :  { %v598_v58 = vpop.xlane.xlu0 %597 }
 0x4a5   :  { %7739 = vrcp.f32 %v598_v58 }
 0x4a8   :  { %v915_v1 = vpop.permute.xlu0 %914 }
 0x4aa   :  { %v7736_v59 = vpop.eup %7735 }
 0x4ab   :  { %v7738_v60 = vpop.eup %7737  ;;  %v607_v61 = vmul.f32 %v7736_v59, %v7728_v42 }
 0x4ac   :  { %v606_v62 = vmul.f32 %v7738_v60, %v7730_v43  ;;  %v1073_v4 = vpop.permute.xlu0 %1072 }
 0x4ad   :  { %7214 = vmatmul.mubr.msk.f32.vlgmr.msra.gmra.mrb[8].mxu0 %vm256_vm2, %v607_v61 }
 0x4ae   :  { %7222 = vmatpush3.msra.mxu0 %v839_v53  ;;  %7209 = vmatmul.mubr.msk.f32.vlgmr.msra.gmra.mrb[4].mxu1 %vm256_vm2, %v606_v62 }
 0x4af   :  { %v7740_v63 = vpop.eup %7739  ;;  %7217 = vmatpush3.msra.mxu1 %v763_v52  ;;  %7218 = vmatprep.mubr.msk.f32.mxu1 %vm7943_vm1, %v7942_v0 }
 0x4b0   :  { %v608_v2 = vmul.f32 %v7740_v63, %v7732_v46  ;;  %7226 = vmatprep.subr.mxu1 %v7942_v0  ;;  %7223 = vmatprep.mubr.msk.f32.mxu0 %vm7943_vm1, %v7942_v0  ;;  %v1071_v6 = vpop.permute.xlu0 %1070 }
 0x4b1   :  { %7231 = vmatprep.subr.mxu0 %v7942_v0 }
 0x4b2   :  { %7219 = vmatmul.mubr.msk.f32.vlgmr.msra.gmra.mrb[6].mxu1 %vm256_vm2, %v608_v2 }
 0x4b3   :  { %7228 = vmatprep.mubr.msk.f32.mxu1 %vm7943_vm1, %v7942_v0 }
 0x4b6   :  { %7227 = vmatpush3.xpose.msk.msra.mxu1 %vm256_vm2, %v917_v55 }
 0x4b7   :  { %7236 = vmatprep.subr.mxu1 %v7942_v0 }
 0x4b9   :  { %7229 = vmatmul.mubr.msk.f32.vlgmr.msra.gmra.mrb[8].mxu1 %vm256_vm2, %v915_v1 }
 0x4ba   :  { %7237 = vmatpush3.xpose.msk.msra.mxu1 %vm256_vm2, %v1073_v4  ;;  %7238 = vmatprep.mubr.msk.f32.mxu1 %vm7943_vm1, %v7942_v0 }
 0x4bb   :  { %7246 = vmatprep.subr.mxu1 %v7942_v0 }
 0x4bd   :  { %7239 = vmatmul.mubr.msk.f32.vlgmr.msra.gmra.mrb[10].mxu1 %vm256_vm2, %v1071_v6 }
 0x4be   :  { %7248 = vmatprep.mubr.msk.f32.mxu1 %vm7943_vm1, %v7942_v0 }
 0x4d4   :  { %v601_v10 = vpop.xlane.xlu1 %600 }
 0x4d5   :  { %7741 = vrcp.f32 %v601_v10 }
 0x4d8   :  { %v1151_v13 = vpop.permute.xlu1 %1150 }
 0x4dc   :  { %v1149_v14 = vpop.permute.xlu1 %1148 }
 0x4df   :  { %v7742_v11 = vpop.eup %7741 }
 0x4e0   :  { %v609_v12 = vmul.f32 %v7742_v11, %v7734_v50 }
 0x4e2   :  { %7224 = vmatmul.mubr.msk.f32.vlgmr.msra.gmra.mrb[10].mxu0 %vm256_vm2, %v609_v12 }
 0x4e3   :  { %7232 = vmatpush3.xpose.msk.msra.mxu0 %vm256_vm2, %v995_v54  ;;  %7233 = vmatprep.mubr.msk.f32.mxu0 %vm7943_vm1, %v7942_v0 }
 0x4e4   :  { %7241 = vmatprep.subr.mxu0 %v7942_v0 }
 0x4e6   :  { %7234 = vmatmul.mubr.msk.f32.vlgmr.msra.gmra.mrb[12].mxu0 %vm256_vm2, %v993_v7 }
 0x4e7   :  { %7242 = vmatpush3.xpose.msk.msra.mxu0 %vm256_vm2, %v1151_v13  ;;  %7243 = vmatprep.mubr.msk.f32.mxu0 %vm7943_vm1, %v7942_v0 }
 0x4e8   :  { %7251 = vmatprep.subr.mxu0 %v7942_v0 }
 0x4ea   :  { %7244 = vmatmul.mubr.msk.f32.vlgmr.msra.gmra.mrb[14].mxu0 %vm256_vm2, %v1149_v14 }
 0x4eb   :  { %7253 = vmatprep.mubr.msk.f32.mxu0 %vm7943_vm1, %v7942_v0 }
 0x580   :  { %v8200_v15 = vpop.f32.mrb[8].mxu0 }
 0x581   :  { %v8202_v16 = vpop.f32.mrb[4].mxu1  ;;  %v7215_v17 = vpop.f32.mrb[9].mxu0 }
 0x582   :  { %v7210_v18 = vpop.f32.mrb[5].mxu1 }
 0x585   :  { %v8204_v19 = vpop.f32.mrb[6].mxu1 }
 0x586   :  { %v7220_v20 = vpop.f32.mrb[7].mxu1 }
 0x58c   :  { %v988_v21 = vpop.f32.mrb[8].mxu1 }
 0x58d   :  { %v1226_v22 = vmul.f32 0.35355338, %v988_v21  ;;  %v7230_v23 = vpop.f32.mrb[9].mxu1 }
 0x58f   :  { %v1230_v24 = vsel %vm256_vm2, %v1226_v22, -inf }
 0x590   :  { %1231 = vmax.xlane.f32.xlu0 %v1230_v24  ;;  %v1144_v25 = vpop.f32.mrb[10].mxu1 }
 0x591   :  { %v1228_v26 = vmul.f32 0.35355338, %v1144_v25  ;;  %v7240_v27 = vpop.f32.mrb[11].mxu1 }
 0x593   :  { %v1236_v28 = vsel %vm256_vm2, %v1228_v26, -inf }
 0x594   :  { %1237 = vmax.xlane.f32.xlu0 %v1236_v28 }
 0x5b5   :  { %v8208_v29 = vpop.f32.mrb[10].mxu0 }
 0x5b6   :  { %v7225_v30 = vpop.f32.mrb[11].mxu0 }
 0x5b9   :  { %v1066_v31 = vpop.f32.mrb[12].mxu0 }
 0x5ba   :  { %v1227_v32 = vmul.f32 0.35355338, %v1066_v31  ;;  %v7235_v33 = vpop.f32.mrb[13].mxu0 }
 0x5bc   :  { %v1233_v34 = vsel %vm256_vm2, %v1227_v32, -inf }
 0x5bd   :  { %1234 = vmax.xlane.f32.xlu1 %v1233_v34  ;;  %v1222_v35 = vpop.f32.mrb[14].mxu0 }
 0x5be   :  { %v1229_v36 = vmul.f32 0.35355338, %v1222_v35  ;;  %v7245_v37 = vpop.f32.mrb[15].mxu0 }
 0x5c0   :  { %v1239_v38 = vsel %vm256_vm2, %v1229_v36, -inf }
 0x5c1   :  { %1240 = vmax.xlane.f32.xlu0 %v1239_v38 }
 0x5ce   :  { %1350 = vrot.lane.b32.xlu1 %v8092_v3, %s7948_s20 }
 0x5d2   :  { %1426 = vrot.lane.b32.xlu1 %v8100_v8, %s7948_s20 }
 0x5d6   :  { %1502 = vrot.lane.b32.xlu1 %v8104_v9, %s7948_s20 }
 0x5d7   :  { %1274 = vrot.lane.b32.xlu0 %v8094_v5, %s7948_s20 }
 0x5da   :  { %1658 = vrot.lane.b32.xlu1 %v8092_v3, %s9078_s21 }
 0x5db   :  { %1580 = vrot.lane.b32.xlu0 %v8094_v5, %s9078_s21 }
 0x61d   :  { %v1232_v39 = vpop.xlane.xlu0 %1231 }
 0x61e   :  { %v1242_v40 = vsub.f32 %v1226_v22, %v1232_v39 }
 0x620   :  { %v1246_v41 = vmul.f32 1.442695, %v1242_v40 }
 0x621   :  { %v1238_v42 = vpop.xlane.xlu0 %1237 }
 0x622   :  { %7743 = vpow2.f32 %v1246_v41  ;;  %v1244_v43 = vsub.f32 %v1228_v26, %v1238_v42 }
 0x624   :  { %v1250_v44 = vmul.f32 1.442695, %v1244_v43 }
 0x626   :  { %7745 = vpow2.f32 %v1250_v44 }
 0x62c   :  { %v7744_v45 = vpop.eup %7743 }
 0x62d   :  { %v1254_v46 = vsel %vm256_vm2, %v7744_v45, 0.0 }
 0x62e   :  { %1255 = vadd.xlane.f32.xlu0 %v1254_v46 }
 0x630   :  { %v7746_v47 = vpop.eup %7745 }
 0x631   :  { %v1260_v48 = vsel %vm256_vm2, %v7746_v47, 0.0 }
 0x632   :  { %1261 = vadd.xlane.f32.xlu0 %v1260_v48 }
 0x648   :  { %1578 = vrot.lane.b32.xlu0 %v8094_v5, %s9076_s22 }
 0x64a   :  { %v1235_v49 = vpop.xlane.xlu1 %1234 }
 0x64b   :  { %v1243_v50 = vsub.f32 %v1227_v32, %v1235_v49 }
 0x64c   :  { %1736 = vrot.lane.b32.xlu0 %v8100_v8, %s9078_s21 }
 0x64d   :  { %v1248_v51 = vmul.f32 1.442695, %v1243_v50 }
 0x64e   :  { %v1351_v52 = vpop.permute.xlu1 %1350  ;;  %v1241_v53 = vpop.xlane.xlu0 %1240 }
 0x64f   :  { %7747 = vpow2.f32 %v1248_v51  ;;  %v1245_v54 = vsub.f32 %v1229_v36, %v1241_v53  ;;  %7252 = vmatpush3.msra.mxu0 %v1351_v52 }
 0x650   :  { %1734 = vrot.lane.b32.xlu0 %v8100_v8, %s9076_s22  ;;  %7261 = vmatprep.subr.mxu0 %v7942_v0 }
 0x651   :  { %v1252_v55 = vmul.f32 1.442695, %v1245_v54 }
 0x652   :  { %v1275_v56 = vpop.permute.xlu0 %1274  ;;  %v1427_v4 = vpop.permute.xlu1 %1426 }
 0x653   :  { %7749 = vpow2.f32 %v1252_v55  ;;  %7247 = vmatpush3.msra.mxu1 %v1275_v56 }
 0x654   :  { %7256 = vmatprep.subr.mxu1 %v7942_v0 }
 0x656   :  { %v1581_v61 = vpop.permute.xlu0 %1580  ;;  %v1503_v13 = vpop.permute.xlu1 %1502 }
 0x659   :  { %v7748_v57 = vpop.eup %7747 }
 0x65a   :  { %v1257_v58 = vsel %vm256_vm2, %v7748_v57, 0.0  ;;  %v1659_v14 = vpop.permute.xlu1 %1658 }
 0x65b   :  { %1258 = vadd.xlane.f32.xlu1 %v1257_v58 }
 0x65d   :  { %v7750_v59 = vpop.eup %7749 }
 0x65e   :  { %v1263_v60 = vsel %vm256_vm2, %v7750_v59, 0.0 }
 0x65f   :  { %1264 = vadd.xlane.f32.xlu1 %v1263_v60 }
 0x670   :  { %1656 = vrot.lane.b32.xlu1 %v8092_v3, %s9076_s22 }
 0x674   :  { %1814 = vrot.lane.b32.xlu1 %v8104_v9, %s9078_s21  ;;  %s9080_s21 = smov 24  }
 0x678   :  { %1812 = vrot.lane.b32.xlu1 %v8104_v9, %s9076_s22 }
 0x6bb   :  { %v1256_v62 = vpop.xlane.xlu0 %1255 }
 0x6bc   :  { %7751 = vrcp.f32 %v1256_v62 }
 0x6bf   :  { %v1262_v63 = vpop.xlane.xlu0 %1261 }
 0x6c0   :  { %7753 = vrcp.f32 %v1262_v63 }
 0x6c3   :  { %v1579_v7 = vpop.permute.xlu0 %1578 }
 0x6c6   :  { %v7752_v1 = vpop.eup %7751 }
 0x6c7   :  { %v1270_v2 = vmul.f32 %v7752_v1, %v7744_v45  ;;  %v1737_v11 = vpop.permute.xlu0 %1736 }
 0x6c9   :  { %7249 = vmatmul.mubr.msk.f32.vlgmr.msra.gmra.mrb[12].mxu1 %vm256_vm2, %v1270_v2 }
 0x6ca   :  { %v7754_v6 = vpop.eup %7753  ;;  %7257 = vmatpush3.msra.mxu1 %v1427_v4  ;;  %7258 = vmatprep.mubr.msk.f32.mxu1 %vm7943_vm1, %v7942_v0 }
 0x6cb   :  { %v1272_v10 = vmul.f32 %v7754_v6, %v7746_v47  ;;  %7266 = vmatprep.subr.mxu1 %v7942_v0  ;;  %v1735_v12 = vpop.permute.xlu0 %1734 }
 0x6cd   :  { %7259 = vmatmul.mubr.msk.f32.vlgmr.msra.gmra.mrb[14].mxu1 %vm256_vm2, %v1272_v10 }
 0x6ce   :  { %7268 = vmatprep.mubr.msk.f32.mxu1 %vm7943_vm1, %v7942_v0 }
 0x6d1   :  { %7267 = vmatpush3.xpose.msk.msra.mxu1 %vm256_vm2, %v1581_v61 }
 0x6d2   :  { %7276 = vmatprep.subr.mxu1 %v7942_v0 }
 0x6d4   :  { %7269 = vmatmul.mubr.msk.f32.vlgmr.msra.gmra.mrb[16].mxu1 %vm256_vm2, %v1579_v7 }
 0x6d5   :  { %7277 = vmatpush3.xpose.msk.msra.mxu1 %vm256_vm2, %v1737_v11  ;;  %7278 = vmatprep.mubr.msk.f32.mxu1 %vm7943_vm1, %v7942_v0 }
 0x6d6   :  { %7286 = vmatprep.subr.mxu1 %v7942_v0 }
 0x6d8   :  { %7279 = vmatmul.mubr.msk.f32.vlgmr.msra.gmra.mrb[18].mxu1 %vm256_vm2, %v1735_v12 }
 0x6d9   :  { %7288 = vmatprep.mubr.msk.f32.mxu1 %vm7943_vm1, %v7942_v0 }
 0x6e8   :  { %v1259_v17 = vpop.xlane.xlu1 %1258 }
 0x6e9   :  { %7755 = vrcp.f32 %v1259_v17 }
 0x6ec   :  { %v1265_v18 = vpop.xlane.xlu1 %1264 }
 0x6ed   :  { %7757 = vrcp.f32 %v1265_v18 }
 0x6f0   :  { %v1657_v23 = vpop.permute.xlu1 %1656 }
 0x6f3   :  { %v7756_v20 = vpop.eup %7755 }
 0x6f4   :  { %v1271_v21 = vmul.f32 %v7756_v20, %v7748_v57  ;;  %v1815_v25 = vpop.permute.xlu1 %1814 }
 0x6f6   :  { %7254 = vmatmul.mubr.msk.f32.vlgmr.msra.gmra.mrb[16].mxu0 %vm256_vm2, %v1271_v21 }
 0x6f7   :  { %v7758_v22 = vpop.eup %7757  ;;  %7262 = vmatpush3.msra.mxu0 %v1503_v13  ;;  %7263 = vmatprep.mubr.msk.f32.mxu0 %vm7943_vm1, %v7942_v0 }
 0x6f8   :  { %v1273_v24 = vmul.f32 %v7758_v22, %v7750_v59  ;;  %7271 = vmatprep.subr.mxu0 %v7942_v0  ;;  %v1813_v26 = vpop.permute.xlu1 %1812 }
 0x6fa   :  { %7264 = vmatmul.mubr.msk.f32.vlgmr.msra.gmra.mrb[18].mxu0 %vm256_vm2, %v1273_v24 }
 0x6fb   :  { %7273 = vmatprep.mubr.msk.f32.mxu0 %vm7943_vm1, %v7942_v0 }
 0x6fe   :  { %7272 = vmatpush3.xpose.msk.msra.mxu0 %vm256_vm2, %v1659_v14 }
 0x6ff   :  { %7281 = vmatprep.subr.mxu0 %v7942_v0 }
 0x701   :  { %7274 = vmatmul.mubr.msk.f32.vlgmr.msra.gmra.mrb[20].mxu0 %vm256_vm2, %v1657_v23 }
 0x702   :  { %7282 = vmatpush3.xpose.msk.msra.mxu0 %vm256_vm2, %v1815_v25  ;;  %7283 = vmatprep.mubr.msk.f32.mxu0 %vm7943_vm1, %v7942_v0 }
 0x703   :  { %7291 = vmatprep.subr.mxu0 %v7942_v0 }
 0x705   :  { %7284 = vmatmul.mubr.msk.f32.vlgmr.msra.gmra.mrb[22].mxu0 %vm256_vm2, %v1813_v26 }
 0x706   :  { %7293 = vmatprep.mubr.msk.f32.mxu0 %vm7943_vm1, %v7942_v0 }
 0x79c   :  { %v8276_v27 = vpop.f32.mrb[12].mxu1 }
 0x79d   :  { %v7250_v28 = vpop.f32.mrb[13].mxu1 }
 0x7a0   :  { %v8278_v30 = vpop.f32.mrb[14].mxu1 }
 0x7a1   :  { %v7260_v31 = vpop.f32.mrb[15].mxu1 }
 0x7a7   :  { %v1652_v32 = vpop.f32.mrb[16].mxu1 }
 0x7a8   :  { %v1890_v33 = vmul.f32 0.35355338, %v1652_v32  ;;  %v7270_v34 = vpop.f32.mrb[17].mxu1 }
 0x7aa   :  { %v1894_v35 = vsel %vm256_vm2, %v1890_v33, -inf }
 0x7ab   :  { %1895 = vmax.xlane.f32.xlu0 %v1894_v35  ;;  %v1808_v36 = vpop.f32.mrb[18].mxu1 }
 0x7ac   :  { %v7280_v37 = vpop.f32.mrb[19].mxu1  ;;  %v1892_v49 = vmul.f32 0.35355338, %v1808_v36 }
 0x7ae   :  { %v1900_v51 = vsel %vm256_vm2, %v1892_v49, -inf }
 0x7c9   :  { %v8281_v38 = vpop.f32.mrb[16].mxu0 }
 0x7ca   :  { %v7255_v39 = vpop.f32.mrb[17].mxu0 }
 0x7cd   :  { %v8283_v40 = vpop.f32.mrb[18].mxu0 }
 0x7ce   :  { %v7265_v41 = vpop.f32.mrb[19].mxu0 }
 0x7d4   :  { %v1730_v42 = vpop.f32.mrb[20].mxu0 }
 0x7d5   :  { %v1891_v43 = vmul.f32 0.35355338, %v1730_v42  ;;  %v7275_v44 = vpop.f32.mrb[21].mxu0 }
 0x7d7   :  { %v1897_v45 = vsel %vm256_vm2, %v1891_v43, -inf }
 0x7d8   :  { %1898 = vmax.xlane.f32.xlu1 %v1897_v45  ;;  %v1886_v46 = vpop.f32.mrb[22].mxu0 }
 0x7d9   :  { %v1893_v47 = vmul.f32 0.35355338, %v1886_v46  ;;  %v7285_v48 = vpop.f32.mrb[23].mxu0 }
 0x7db   :  { %v1903_v50 = vsel %vm256_vm2, %v1893_v47, -inf }
 0x7dc   :  { %1904 = vmax.xlane.f32.xlu0 %v1903_v50 }
 0x7e0   :  { %1901 = vmax.xlane.f32.xlu0 %v1900_v51 }
 0x7e9   :  { %2014 = vrot.lane.b32.xlu1 %v8092_v3, %s9074_s23 }
 0x7ed   :  { %2090 = vrot.lane.b32.xlu1 %v8100_v8, %s9074_s23 }
 0x7f1   :  { %2166 = vrot.lane.b32.xlu1 %v8104_v9, %s9074_s23 }
 0x7f6   :  { %1938 = vrot.lane.b32.xlu0 %v8094_v5, %s9074_s23 }
 0x838   :  { %v1896_v52 = vpop.xlane.xlu0 %1895 }
 0x839   :  { %v1906_v53 = vsub.f32 %v1890_v33, %v1896_v52 }
 0x83b   :  { %v1910_v54 = vmul.f32 1.442695, %v1906_v53 }
 0x83d   :  { %7759 = vpow2.f32 %v1910_v54 }
 0x847   :  { %v7760_v55 = vpop.eup %7759 }
 0x848   :  { %v1918_v56 = vsel %vm256_vm2, %v7760_v55, 0.0 }
 0x849   :  { %1919 = vadd.xlane.f32.xlu0 %v1918_v56 }
 0x85f   :  { %2244 = vrot.lane.b32.xlu0 %v8094_v5, %s9072_s24 }
 0x865   :  { %v1899_v57 = vpop.xlane.xlu1 %1898 }
 0x866   :  { %v1907_v58 = vsub.f32 %v1891_v43, %v1899_v57 }
 0x868   :  { %v1912_v59 = vmul.f32 1.442695, %v1907_v58 }
 0x869   :  { %v2015_v60 = vpop.permute.xlu1 %2014  ;;  %v1905_v61 = vpop.xlane.xlu0 %1904 }
 0x86a   :  { %7761 = vpow2.f32 %v1912_v59  ;;  %7292 = vmatpush3.msra.mxu0 %v2015_v60  ;;  %v1909_v11 = vsub.f32 %v1893_v47, %v1905_v61 }
 0x86b   :  { %7301 = vmatprep.subr.mxu0 %v7942_v0 }
 0x86c   :  { %v1916_v12 = vmul.f32 1.442695, %v1909_v11 }
 0x86d   :  { %v1902_v62 = vpop.xlane.xlu0 %1901  ;;  %v2091_v21 = vpop.permute.xlu1 %2090 }
 0x86e   :  { %v1908_v63 = vsub.f32 %v1892_v49, %v1902_v62 }
 0x870   :  { %v1914_v1 = vmul.f32 1.442695, %v1908_v63 }
 0x871   :  { %v1939_v2 = vpop.permute.xlu0 %1938  ;;  %v2167_v22 = vpop.permute.xlu1 %2166 }
 0x872   :  { %7763 = vpow2.f32 %v1914_v1  ;;  %7287 = vmatpush3.msra.mxu1 %v1939_v2 }
 0x873   :  { %7296 = vmatprep.subr.mxu1 %v7942_v0  ;;  %7765 = vpow2.f32 %v1916_v12 }
 0x874   :  { %v7762_v4 = vpop.eup %7761 }
 0x875   :  { %v1921_v6 = vsel %vm256_vm2, %v7762_v4, 0.0 }
 0x876   :  { %1922 = vadd.xlane.f32.xlu1 %v1921_v6 }
 0x87c   :  { %v7764_v7 = vpop.eup %7763 }
 0x87d   :  { %v1924_v10 = vsel %vm256_vm2, %v7764_v7, 0.0  ;;  %v7766_v13 = vpop.eup %7765 }
 0x87e   :  { %1925 = vadd.xlane.f32.xlu0 %v1924_v10  ;;  %v1927_v14 = vsel %vm256_vm2, %v7766_v13, 0.0 }
 0x887   :  { %2322 = vrot.lane.b32.xlu1 %v8092_v3, %s9072_s24 }
 0x894   :  { %2242 = vrot.lane.b32.xlu0 %v8094_v5, %s9070_s25 }
 0x898   :  { %2400 = vrot.lane.b32.xlu0 %v8100_v8, %s9072_s24 }
 0x89c   :  { %2398 = vrot.lane.b32.xlu0 %v8100_v8, %s9070_s25 }
 0x8ab   :  { %1928 = vadd.xlane.f32.xlu1 %v1927_v14 }
 0x8bc   :  { %2320 = vrot.lane.b32.xlu1 %v8092_v3, %s9070_s25 }
 0x8c0   :  { %2478 = vrot.lane.b32.xlu1 %v8104_v9, %s9072_s24 }
 0x8c4   :  { %2476 = vrot.lane.b32.xlu1 %v8104_v9, %s9070_s25 }
 0x8d6   :  { %v1920_v17 = vpop.xlane.xlu0 %1919 }
 0x8d7   :  { %7767 = vrcp.f32 %v1920_v17 }
 0x8da   :  { %v2245_v24 = vpop.permute.xlu0 %2244 }
 0x8e1   :  { %v7768_v18 = vpop.eup %7767 }
 0x8e2   :  { %v1934_v20 = vmul.f32 %v7768_v18, %v7760_v55 }
 0x8e4   :  { %7289 = vmatmul.mubr.msk.f32.vlgmr.msra.gmra.mrb[20].mxu1 %vm256_vm2, %v1934_v20 }
 0x8e5   :  { %7297 = vmatpush3.msra.mxu1 %v2091_v21  ;;  %7298 = vmatprep.mubr.msk.f32.mxu1 %vm7943_vm1, %v7942_v0 }
 0x8e6   :  { %7306 = vmatprep.subr.mxu1 %v7942_v0 }
 0x903   :  { %v1923_v23 = vpop.xlane.xlu1 %1922 }
 0x904   :  { %7769 = vrcp.f32 %v1923_v23 }
 0x907   :  { %v2323_v36 = vpop.permute.xlu1 %2322 }
 0x90b   :  { %v1926_v25 = vpop.xlane.xlu0 %1925 }
 0x90c   :  { %7771 = vrcp.f32 %v1926_v25 }
 0x90e   :  { %v7770_v26 = vpop.eup %7769 }
 0x90f   :  { %v1935_v28 = vmul.f32 %v7770_v26, %v7762_v4  ;;  %v2243_v31 = vpop.permute.xlu0 %2242 }
 0x911   :  { %7294 = vmatmul.mubr.msk.f32.vlgmr.msra.gmra.mrb[24].mxu0 %vm256_vm2, %v1935_v28 }
 0x912   :  { %7302 = vmatpush3.msra.mxu0 %v2167_v22  ;;  %7303 = vmatprep.mubr.msk.f32.mxu0 %vm7943_vm1, %v7942_v0 }
 0x913   :  { %7311 = vmatprep.subr.mxu0 %v7942_v0  ;;  %v2401_v34 = vpop.permute.xlu0 %2400 }
 0x916   :  { %v7772_v32 = vpop.eup %7771 }
 0x917   :  { %v1936_v33 = vmul.f32 %v7772_v32, %v7764_v7  ;;  %v2399_v35 = vpop.permute.xlu0 %2398 }
 0x919   :  { %7299 = vmatmul.mubr.msk.f32.vlgmr.msra.gmra.mrb[22].mxu1 %vm256_vm2, %v1936_v33 }
 0x91a   :  { %7307 = vmatpush3.xpose.msk.msra.mxu1 %vm256_vm2, %v2245_v24  ;;  %7308 = vmatprep.mubr.msk.f32.mxu1 %vm7943_vm1, %v7942_v0 }
 0x91b   :  { %7316 = vmatprep.subr.mxu1 %v7942_v0 }
 0x91d   :  { %7309 = vmatmul.mubr.msk.f32.vlgmr.msra.gmra.mrb[24].mxu1 %vm256_vm2, %v2243_v31 }
 0x91e   :  { %7317 = vmatpush3.xpose.msk.msra.mxu1 %vm256_vm2, %v2401_v34  ;;  %7318 = vmatprep.mubr.msk.f32.mxu1 %vm7943_vm1, %v7942_v0 }
 0x91f   :  { %7326 = vmatprep.subr.mxu1 %v7942_v0 }
 0x921   :  { %7319 = vmatmul.mubr.msk.f32.vlgmr.msra.gmra.mrb[26].mxu1 %vm256_vm2, %v2399_v35 }
 0x922   :  { %7328 = vmatprep.mubr.msk.f32.mxu1 %vm7943_vm1, %v7942_v0 }
 0x938   :  { %v1929_v37 = vpop.xlane.xlu1 %1928 }
 0x939   :  { %7773 = vrcp.f32 %v1929_v37 }
 0x93c   :  { %v2321_v39 = vpop.permute.xlu1 %2320 }
 0x940   :  { %v2479_v43 = vpop.permute.xlu1 %2478 }
 0x943   :  { %v7774_v41 = vpop.eup %7773 }
 0x944   :  { %v1937_v42 = vmul.f32 %v7774_v41, %v7766_v13  ;;  %v2477_v44 = vpop.permute.xlu1 %2476 }
 0x946   :  { %7304 = vmatmul.mubr.msk.f32.vlgmr.msra.gmra.mrb[26].mxu0 %vm256_vm2, %v1937_v42 }
 0x947   :  { %7312 = vmatpush3.xpose.msk.msra.mxu0 %vm256_vm2, %v2323_v36  ;;  %7313 = vmatprep.mubr.msk.f32.mxu0 %vm7943_vm1, %v7942_v0 }
 0x948   :  { %7321 = vmatprep.subr.mxu0 %v7942_v0 }
 0x94a   :  { %7314 = vmatmul.mubr.msk.f32.vlgmr.msra.gmra.mrb[28].mxu0 %vm256_vm2, %v2321_v39 }
 0x94b   :  { %7322 = vmatpush3.xpose.msk.msra.mxu0 %vm256_vm2, %v2479_v43  ;;  %7323 = vmatprep.mubr.msk.f32.mxu0 %vm7943_vm1, %v7942_v0 }
 0x94c   :  { %7331 = vmatprep.subr.mxu0 %v7942_v0 }
 0x94e   :  { %7324 = vmatmul.mubr.msk.f32.vlgmr.msra.gmra.mrb[30].mxu0 %vm256_vm2, %v2477_v44 }
 0x94f   :  { %7333 = vmatprep.mubr.msk.f32.mxu0 %vm7943_vm1, %v7942_v0 }
 0x9b7   :  { %v2010_v45 = vpop.f32.mrb[20].mxu1 }
 0x9b8   :  { %v7290_v46 = vpop.f32.mrb[21].mxu1 }
 0x9e4   :  { %v2086_v47 = vpop.f32.mrb[24].mxu0 }
 0x9e5   :  { %v7295_v48 = vpop.f32.mrb[25].mxu0 }
 0x9e6   :  { %v2968_v48 = vld [vmem:[%s9054_s3] sm:$0xff] }
 0x9ec   :  { %v8352_v49 = vpop.f32.mrb[22].mxu1 }
 0x9ed   :  { %v7300_v50 = vpop.f32.mrb[23].mxu1 }
 0x9ee   :  { %v2969_v50 = vld [vmem:[%s9054_s3 + $0x8] sm:$0xff] }
 0x9f0   :  { %v2316_v51 = vpop.f32.mrb[24].mxu1 }
 0x9f1   :  { %v2554_v52 = vmul.f32 0.35355338, %v2316_v51  ;;  %v7310_v53 = vpop.f32.mrb[25].mxu1  ;;  %v2970_v51 = vld [vmem:[%s9054_s3 + $0x10] sm:$0xff] }
 0x9f2   :  { %v2971_v53 = vld [vmem:[%s9054_s3 + $0x18] sm:$0xff] }
 0x9f3   :  { %v2558_v54 = vsel %vm256_vm2, %v2554_v52, -inf }
 0x9f4   :  { %2559 = vmax.xlane.f32.xlu0 %v2558_v54  ;;  %v2472_v55 = vpop.f32.mrb[26].mxu1  ;;  %v7632_v54 = vpack.c.bf16 %v2971_v53, %v2970_v51 }
 0x9f5   :  { %v2556_v56 = vmul.f32 0.35355338, %v2472_v55  ;;  %v7320_v57 = vpop.f32.mrb[27].mxu1 }
 0x9f7   :  { %v2564_v58 = vsel %vm256_vm2, %v2556_v56, -inf }
 0x9f8   :  { %2565 = vmax.xlane.f32.xlu0 %v2564_v58 }
 0xa19   :  { %v8356_v59 = vpop.f32.mrb[26].mxu0 }
 0xa1a   :  { %v7305_v60 = vpop.f32.mrb[27].mxu0 }
 0xa1d   :  { %v2394_v61 = vpop.f32.mrb[28].mxu0 }
 0xa1e   :  { %v2555_v62 = vmul.f32 0.35355338, %v2394_v61  ;;  %v7315_v63 = vpop.f32.mrb[29].mxu0 }
 0xa20   :  { %v2561_v1 = vsel %vm256_vm2, %v2555_v62, -inf }
 0xa21   :  { %2562 = vmax.xlane.f32.xlu1 %v2561_v1  ;;  %v2550_v2 = vpop.f32.mrb[30].mxu0 }
 0xa22   :  { %v2557_v4 = vmul.f32 0.35355338, %v2550_v2  ;;  %v7325_v6 = vpop.f32.mrb[31].mxu0 }
 0xa24   :  { %v2567_v7 = vsel %vm256_vm2, %v2557_v4, -inf }
 0xa25   :  { %2568 = vmax.xlane.f32.xlu0 %v2567_v7 }
 0xa81   :  { %v2560_v10 = vpop.xlane.xlu0 %2559 }
 0xa82   :  { %v2570_v11 = vsub.f32 %v2554_v52, %v2560_v10  ;;  %v7628_v52 = vpack.c.bf16 %v2969_v50, %v2968_v48 }
 0xa84   :  { %v2574_v12 = vmul.f32 1.442695, %v2570_v11 }
 0xa85   :  { %v2566_v13 = vpop.xlane.xlu0 %2565 }
 0xa86   :  { %7775 = vpow2.f32 %v2574_v12  ;;  %v2572_v14 = vsub.f32 %v2556_v56, %v2566_v13 }
 0xa88   :  { %v2578_v17 = vmul.f32 1.442695, %v2572_v14 }
 0xa8a   :  { %7777 = vpow2.f32 %v2578_v17 }
 0xa90   :  { %v7776_v18 = vpop.eup %7775 }
 0xa91   :  { %v2582_v20 = vsel %vm256_vm2, %v7776_v18, 0.0 }
 0xa92   :  { %2583 = vadd.xlane.f32.xlu0 %v2582_v20 }
 0xa94   :  { %v7778_v21 = vpop.eup %7777 }
 0xa95   :  { %v2588_v22 = vsel %vm256_vm2, %v7778_v21, 0.0 }
 0xa96   :  { %2589 = vadd.xlane.f32.xlu0 %v2588_v22 }
 0xaac   :  { %2602 = vrot.lane.b32.xlu0 %v8094_v5, %s9068_s26 }
 0xaae   :  { %v2563_v23 = vpop.xlane.xlu1 %2562 }
 0xaaf   :  { %v2571_v24 = vsub.f32 %v2555_v62, %v2563_v23 }
 0xab0   :  { %2910 = vrot.lane.b32.xlu0 %v8276_v27, %s7941_s29 }
 0xab1   :  { %v2576_v25 = vmul.f32 1.442695, %v2571_v24 }
 0xab2   :  { %v2569_v26 = vpop.xlane.xlu0 %2568 }
 0xab3   :  { %7779 = vpow2.f32 %v2576_v25  ;;  %v2573_v28 = vsub.f32 %v2557_v4, %v2569_v26  ;;  %v6853_v25 = vld [vmem:[%s9055_s4] ss:$0 sm:$0xff] }
 0xab4   :  { %2926 = vrot.lane.b32.xlu0 %v2010_v45, %s9082_s27 }
 0xab5   :  { %v2580_v31 = vmul.f32 1.442695, %v2573_v28 }
 0xab7   :  { %7781 = vpow2.f32 %v2580_v31 }
 0xabd   :  { %v7780_v32 = vpop.eup %7779 }
 0xabe   :  { %v2585_v33 = vsel %vm256_vm2, %v7780_v32, 0.0 }
 0xabf   :  { %2586 = vadd.xlane.f32.xlu1 %v2585_v33  ;;  %v7887_v33 = vld [vmem:[#allocation2 + $0x8] sm:$0xff] }
 0xac1   :  { %v7782_v34 = vpop.eup %7781 }
 0xac2   :  { %v2591_v5 = vsel %vm256_vm2, %v7782_v34, 0.0 }
 0xac3   :  { %2592 = vadd.xlane.f32.xlu1 %v2591_v5  ;;  %v7888_v5 = vld [vmem:[#allocation2] sm:$0xff] }
 0xad4   :  { %2678 = vrot.lane.b32.xlu1 %v8092_v3, %s9068_s26 }
 0xad8   :  { %2754 = vrot.lane.b32.xlu1 %v8100_v8, %s9068_s26 }
 0xadc   :  { %2830 = vrot.lane.b32.xlu1 %v8104_v9, %s9068_s26  ;;  %s9090_s26 = smov 16  }
 0xae0   :  { %2912 = vrot.lane.b32.xlu1 %v8281_v38, %s7941_s29 }
 0xae4   :  { %2928 = vrot.lane.b32.xlu1 %v2086_v47, %s9082_s27 }
 0xb1f   :  { %v2584_v27 = vpop.xlane.xlu0 %2583 }
 0xb20   :  { %7783 = vrcp.f32 %v2584_v27 }
 0xb23   :  { %v2590_v35 = vpop.xlane.xlu0 %2589 }
 0xb24   :  { %7785 = vrcp.f32 %v2590_v35 }
 0xb27   :  { %v2603_v36 = vpop.permute.xlu0 %2602 }
 0xb28   :  { %7327 = vmatpush3.msra.mxu1 %v2603_v36 }
 0xb29   :  { %7336 = vmatprep.subr.mxu1 %v7942_v0 }
 0xb2a   :  { %v7784_v37 = vpop.eup %7783 }
 0xb2b   :  { %v2598_v3 = vmul.f32 %v7784_v37, %v7776_v18 }
 0xb2d   :  { %7329 = vmatmul.mubr.msk.f32.vlgmr.msra.gmra.mrb[28].mxu1 %vm256_vm2, %v2598_v3 }
 0xb2e   :  { %7338 = vmatprep.mubr.msk.f32.mxu1 %vm7943_vm1, %v7942_v0  ;;  %v7786_v39 = vpop.eup %7785 }
 0xb2f   :  { %v2600_v44 = vmul.f32 %v7786_v39, %v7778_v21  ;;  %v7890_v39 = vld [vmem:[#allocation2 + $0x18] sm:$0xff] }
 0xb4c   :  { %v2587_v8 = vpop.xlane.xlu1 %2586 }
 0xb4d   :  { %7787 = vrcp.f32 %v2587_v8 }
 0xb50   :  { %v2593_v9 = vpop.xlane.xlu1 %2592 }
 0xb51   :  { %7789 = vrcp.f32 %v2593_v9  ;;  %v7889_v9 = vld [vmem:[#allocation2 + $0x10] sm:$0xff] }
 0xb54   :  { %v2679_v38 = vpop.permute.xlu1 %2678 }
 0xb55   :  { %7332 = vmatpush3.msra.mxu0 %v2679_v38 }
 0xb56   :  { %7341 = vmatprep.subr.mxu0 %v7942_v0 }
 0xb57   :  { %v7788_v41 = vpop.eup %7787 }
 0xb58   :  { %v2755_v42 = vpop.permute.xlu1 %2754  ;;  %v2599_v43 = vmul.f32 %v7788_v41, %v7780_v32 }
 0xb59   :  { %7337 = vmatpush3.msra.mxu1 %v2755_v42 }
 0xb5a   :  { %7334 = vmatmul.mubr.msk.f32.vlgmr.msra.gmra.mrb[32].mxu0 %vm256_vm2, %v2599_v43  ;;  %7339 = vmatmul.mubr.msk.f32.vlgmr.msra.gmra.mrb[30].mxu1 %vm256_vm2, %v2600_v44 }
 0xb5b   :  { %v7790_v45 = vpop.eup %7789  ;;  %7343 = vmatprep.mubr.msk.f32.mxu0 %vm7943_vm1, %v7942_v0  ;;  %7629 = vmatprep.subr.bf16.mxu1 %v7628_v52 }
 0xb5c   :  { %v2831_v46 = vpop.permute.xlu1 %2830  ;;  %v2601_v47 = vmul.f32 %v7790_v45, %v7782_v34  ;;  %7631 = vmatpush3.bf16.msra.mxu1 %v7628_v52 }
 0xb5d   :  { %7342 = vmatpush3.msra.mxu0 %v2831_v46  ;;  %7633 = vmatprep.subr.bf16.mxu1 %v7632_v54 }
 0xb5e   :  { %7344 = vmatmul.mubr.msk.f32.vlgmr.msra.gmra.mrb[34].mxu0 %vm256_vm2, %v2601_v47 }
 0xb60   :  { %7635 = vmatpush3.bf16.msra.mxu1 %v7632_v54 }
 0xc00   :  { %v2674_v55 = vpop.f32.mrb[28].mxu1 }
 0xc01   :  { %2942 = vrot.lane.b32.xlu0 %v2674_v55, %s9080_s21  ;;  %v7330_v56 = vpop.f32.mrb[29].mxu1 }
 0xc05   :  { %2914 = vrot.lane.b32.xlu0 %v8278_v30, %s7941_s29  ;;  %v2911_v30 = vpop.permute.xlu0 %2910 }
 0xc06   :  { %v2954_v1 = vsel %vm256_vm2, %v8202_v16, %v2911_v30 }
 0xc09   :  { %2930 = vrot.lane.b32.xlu0 %v8352_v49, %s9082_s27  ;;  %v2927_v49 = vpop.permute.xlu0 %2926 }
 0xc0a   :  { %v2959_v2 = vsel %vm2958_vm3, %v2954_v1, %v2927_v49  ;;  %v3154_v1 = vld [vmem:[%s9060_s9] sm:$0xff] }
 0xc2d   :  { %v2750_v57 = vpop.f32.mrb[32].mxu0  ;;  %v2826_v58 = vpop.f32.mrb[30].mxu1 }
 0xc2e   :  { %2946 = vrot.lane.b32.xlu0 %v2826_v58, %s9080_s21  ;;  %v7340_v60 = vpop.f32.mrb[31].mxu1  ;;  %2944 = vrot.lane.b32.xlu1 %v2750_v57, %s9080_s21  ;;  %v7335_v61 = vpop.f32.mrb[33].mxu0 }
 0xc31   :  { %v2902_v62 = vpop.f32.mrb[34].mxu0 }
 0xc32   :  { %2916 = vrot.lane.b32.xlu1 %v8283_v40, %s7941_s29  ;;  %v7345_v63 = vpop.f32.mrb[35].mxu0  ;;  %v2913_v40 = vpop.permute.xlu1 %2912 }
 0xc33   :  { %v2955_v11 = vsel %vm256_vm2, %v8200_v15, %v2913_v40  ;;  %v3157_v40 = vld [vmem:[%s9060_s9 + $0x18] sm:$0xff] }
 0xc36   :  { %2932 = vrot.lane.b32.xlu1 %v8356_v59, %s9082_s27  ;;  %v2929_v10 = vpop.permute.xlu1 %2928 }
 0xc37   :  { %v2960_v13 = vsel %vm2958_vm3, %v2955_v11, %v2929_v10  ;;  %v3266_v10 = vld [vmem:[%s9062_s11] sm:$0xff]  ;;  %v3268_v11 = vld [vmem:[%s9062_s11 + $0x10] sm:$0xff] }
 0xc3a   :  { %2948 = vrot.lane.b32.xlu1 %v2902_v62, %s9080_s21 }
 0xc73   :  { %v2943_v4 = vpop.permute.xlu0 %2942 }
 0xc74   :  { %v2964_v6 = vsel %vm2963_vm4, %v2959_v2, %v2943_v4  ;;  %v3155_v2 = vld [vmem:[%s9060_s9 + $0x8] sm:$0xff] }
 0xc75   :  { %7354 = vmatprep.mubr.msk.f32.mxu1 %vm71_vm0, %v2964_v6  ;;  %v7636_v4 = vpack.c.bf16 %v3155_v2, %v3154_v1  ;;  %v3156_v6 = vld [vmem:[%s9060_s9 + $0x10] sm:$0xff] }
 0xc77   :  { %v2915_v7 = vpop.permute.xlu0 %2914  ;;  %7637 = vmatprep.subr.bf16.mxu0 %v7636_v4 }
 0xc78   :  { %v2956_v12 = vsel %vm256_vm2, %v8204_v19, %v2915_v7  ;;  %7639 = vmatpush3.bf16.msra.mxu0 %v7636_v4  ;;  %v7640_v7 = vpack.c.bf16 %v3157_v40, %v3156_v6  ;;  %v6865_v4 = vld [vmem:[%s9063_s12] ss:$0 sm:$0xff] }
 0xc7a   :  { %7641 = vmatprep.subr.bf16.mxu0 %v7640_v7 }
 0xc7b   :  { %v2931_v59 = vpop.permute.xlu0 %2930 }
 0xc7c   :  { %v2961_v16 = vsel %vm2958_vm3, %v2956_v12, %v2931_v59  ;;  %7643 = vmatpush3.bf16.msra.mxu0 %v7640_v7  ;;  %v3267_v59 = vld [vmem:[%s9062_s11 + $0x8] sm:$0xff] }
 0xc7d   :  { %v7644_v12 = vpack.c.bf16 %v3267_v59, %v3266_v10 }
 0xc7f   :  { %7645 = vmatprep.subr.bf16.mxu1 %v7644_v12 }
 0xca0   :  { %v2947_v14 = vpop.permute.xlu0 %2946  ;;  %v2945_v17 = vpop.permute.xlu1 %2944 }
 0xca1   :  { %v2966_v18 = vsel %vm2963_vm4, %v2961_v16, %v2947_v14  ;;  %v2965_v20 = vsel %vm2963_vm4, %v2960_v13, %v2945_v17  ;;  %v3269_v13 = vld [vmem:[%s9062_s11 + $0x18] sm:$0xff]  ;;  %v3270_v14 = vld [vmem:[%s9062_s11 + $0x20] sm:$0xff]  ;;  %v3271_v17 = vld [vmem:[%s9062_s11 + $0x28] sm:$0xff] }
 0xca2   :  { %7355 = vmatmul.mubr.msk.f32.vlgmr.msra.gmra.mrb[32].mxu1 %vm71_vm0, %v2965_v20  ;;  %v7648_v16 = vpack.c.bf16 %v3269_v13, %v3268_v11 }
 0xca3   :  { %7357 = vmatprep.mubr.msk.f32.mxu1 %vm71_vm0, %v2966_v18  ;;  %7647 = vmatpush3.bf16.msra.mxu1 %v7644_v12  ;;  %v7652_v18 = vpack.c.bf16 %v3271_v17, %v3270_v14 }
 0xca4   :  { %v2917_v21 = vpop.permute.xlu1 %2916  ;;  %7649 = vmatprep.subr.bf16.mxu1 %v7648_v16 }
 0xca5   :  { %v2957_v15 = vsel %vm256_vm2, %v8208_v29, %v2917_v21 }
 0xca7   :  { %7651 = vmatpush3.bf16.msra.mxu1 %v7648_v16 }
 0xca8   :  { %v2933_v22 = vpop.permute.xlu1 %2932  ;;  %7653 = vmatprep.subr.bf16.mxu1 %v7652_v18 }
 0xca9   :  { %v2962_v19 = vsel %vm2958_vm3, %v2957_v15, %v2933_v22 }
 0xcab   :  { %7655 = vmatpush3.bf16.msra.mxu1 %v7652_v18 }
 0xcac   :  { %v2949_v23 = vpop.permute.xlu1 %2948 }
 0xcad   :  { %v2967_v24 = vsel %vm2963_vm4, %v2962_v19, %v2949_v23 }
 0xcae   :  { %7358 = vmatmul.mubr.msk.f32.gmra.mrb[34].mxu1 %vm71_vm0, %v2967_v24 }
 0xd75   :  { %v7356_v26 = vpop.f32.mrb[32].mxu1 }
 0xd76   :  { %v3063_v28 = vadd.f32 %v7356_v26, %v6853_v25  ;;  %v3057_v31 = vpop.f32.mrb[33].mxu1 }
 0xd77   :  { %v3058_v32 = vadd.f32 %v6853_v25, %v3057_v31 }
 0xd78   :  { %v8435_v34 = vadd.f32 %v7887_v33, %v3063_v28  ;;  %v6858_v28 = vld [vmem:[%s9058_s7] ss:$0 sm:$0xff] }
 0xd79   :  { %v8437_v29 = vadd.f32 %v7888_v5, %v3058_v32 }
 0xd7a   :  { %v3085_v27 = vsel %vm71_vm0, %v8435_v34, 0.0 }
 0xd7b   :  { %3086 = vadd.xlane.f32.xlu1 %v3085_v27  ;;  %v3082_v35 = vsel %vm71_vm0, %v8437_v29, 0.0 }
 0xd7c   :  { %3083 = vadd.xlane.f32.xlu0 %v3082_v35 }
 0xd81   :  { %v7359_v36 = vpop.f32.mrb[34].mxu1 }
 0xd82   :  { %v3067_v37 = vpop.f32.mrb[35].mxu1  ;;  %v3073_v3 = vadd.f32 %v7359_v36, %v6853_v25  ;;  %v6859_v36 = vld [vmem:[%s9059_s8] ss:$0 sm:$0xff] }
 0xd83   :  { %v3068_v8 = vadd.f32 %v6853_v25, %v3067_v37 }
 0xd84   :  { %v8445_v41 = vadd.f32 %v7890_v39, %v3073_v3 }
 0xd85   :  { %v8443_v38 = vadd.f32 %v7889_v9, %v3068_v8 }
 0xd86   :  { %v3091_v43 = vsel %vm71_vm0, %v8445_v41, 0.0 }
 0xd87   :  { %v3088_v42 = vsel %vm71_vm0, %v8443_v38, 0.0 }
 0xd88   :  { %3089 = vadd.xlane.f32.xlu0 %v3088_v42 }
 0xd8c   :  { %3092 = vadd.xlane.f32.xlu0 %v3091_v43 }
 0xe08   :  { %v3087_v44 = vpop.xlane.xlu1 %3086 }
 0xe09   :  { %v3095_v45 = vmul.f32 0.03125, %v3087_v44  ;;  %v3084_v46 = vpop.xlane.xlu0 %3083 }
 0xe0a   :  { %v3094_v47 = vmul.f32 0.03125, %v3084_v46 }
 0xe0b   :  { %v3099_v48 = vsub.f32 %v8435_v34, %v3095_v45 }
 0xe0c   :  { %v3098_v50 = vsub.f32 %v8437_v29, %v3094_v47 }
 0xe0d   :  { %v3103_v51 = vmul.f32 %v3099_v48, %v3099_v48 }
 0xe0e   :  { %v3102_v52 = vmul.f32 %v3098_v50, %v3098_v50 }
 0xe0f   :  { %v3109_v53 = vsel %vm71_vm0, %v3103_v51, 0.0  ;;  %v3272_v51 = vld [vmem:[%s9062_s11 + $0x30] sm:$0xff] }
 0xe10   :  { %3110 = vadd.xlane.f32.xlu1 %v3109_v53  ;;  %v3106_v54 = vsel %vm71_vm0, %v3102_v52, 0.0  ;;  %v3273_v52 = vld [vmem:[%s9062_s11 + $0x38] sm:$0xff] }
 0xe11   :  { %3107 = vadd.xlane.f32.xlu0 %v3106_v54  ;;  %v7656_v53 = vpack.c.bf16 %v3273_v52, %v3272_v51  ;;  %v6860_v54 = vld [vmem:[%s9061_s10] ss:$0 sm:$0xff] }
 0xe13   :  { %7657 = vmatprep.subr.bf16.mxu1 %v7656_v53 }
 0xe14   :  { %7659 = vmatpush3.bf16.msra.mxu1 %v7656_v53 }
 0xe15   :  { %v3090_v55 = vpop.xlane.xlu0 %3089  ;;  %7420 = vmatprep.subr.mxu1 %v7942_v0 }
 0xe16   :  { %v3096_v56 = vmul.f32 0.03125, %v3090_v55 }
 0xe18   :  { %v8456_v57 = vsub.f32 %v8443_v38, %v3096_v56 }
 0xe19   :  { %v3093_v58 = vpop.xlane.xlu0 %3092 }
 0xe1a   :  { %v3097_v60 = vmul.f32 0.03125, %v3093_v58  ;;  %v3104_v61 = vmul.f32 %v8456_v57, %v8456_v57 }
 0xe1c   :  { %v8461_v62 = vsub.f32 %v8445_v41, %v3097_v60  ;;  %v3112_v63 = vsel %vm71_vm0, %v3104_v61, 0.0 }
 0xe1d   :  { %3113 = vadd.xlane.f32.xlu0 %v3112_v63 }
 0xe1e   :  { %v3105_v30 = vmul.f32 %v8461_v62, %v8461_v62 }
 0xe20   :  { %v3115_v49 = vsel %vm71_vm0, %v3105_v30, 0.0 }
 0xe21   :  { %3116 = vadd.xlane.f32.xlu1 %v3115_v49 }
 0xe9d   :  { %v3111_v20 = vpop.xlane.xlu1 %3110 }
 0xe9e   :  { %v3119_v21 = vmul.f32 0.03125, %v3111_v20  ;;  %v3108_v22 = vpop.xlane.xlu0 %3107 }
 0xe9f   :  { %v3118_v15 = vmul.f32 0.03125, %v3108_v22 }
 0xea0   :  { %v3123_v19 = vadd.f32 1e-05, %v3119_v21 }
 0xea1   :  { %v3122_v23 = vadd.f32 1e-05, %v3118_v15 }
 0xea2   :  { %7791 = vrsqrt.f32 %v3123_v19 }
 0xea3   :  { %7793 = vrsqrt.f32 %v3122_v23 }
 0xeaa   :  { %v3114_v24 = vpop.xlane.xlu0 %3113 }
 0xeab   :  { %v3120_v25 = vmul.f32 0.03125, %v3114_v24 }
 0xeac   :  { %v7792_v26 = vpop.eup %7791 }
 0xead   :  { %v7794_v31 = vpop.eup %7793  ;;  %v3131_v32 = vmul.f32 %v7792_v26, %v3099_v48  ;;  %v3124_v33 = vadd.f32 1e-05, %v3120_v25 }
 0xeae   :  { %v3117_v5 = vpop.xlane.xlu1 %3116  ;;  %v3130_v27 = vmul.f32 %v7794_v31, %v3098_v50 }
 0xeaf   :  { %7795 = vrsqrt.f32 %v3124_v33  ;;  %v3121_v35 = vmul.f32 0.03125, %v3117_v5  ;;  %v3141_v37 = vmul.f32 %v6858_v28, %v3131_v32 }
 0xeb0   :  { %v3140_v3 = vmul.f32 %v6858_v28, %v3130_v27 }
 0xeb1   :  { %v3125_v8 = vadd.f32 1e-05, %v3121_v35  ;;  %v3151_v39 = vadd.f32 %v6859_v36, %v3141_v37 }
 0xeb2   :  { %v3150_v9 = vadd.f32 %v6859_v36, %v3140_v3 }
 0xeb3   :  { %7797 = vrsqrt.f32 %v3125_v8 }
 0xeb4   :  { %7368 = vmatprep.mubr.msk.f32.mxu0 %vm71_vm0, %v3150_v9  ;;  %v6874_v9 = vld [vmem:[%s9052_s1 + $0x20] sm:$0xff] }
 0xeb5   :  { %7369 = vmatmul.mubr.msk.f32.vlgmr.msra.gmra.mrb[36].mxu0 %vm71_vm0, %v3151_v39  ;;  %v6875_v39 = vld [vmem:[%s9052_s1 + $0x28] sm:$0xff] }
 0xeb9   :  { %v7796_v42 = vpop.eup %7795 }
 0xeba   :  { %v3132_v43 = vmul.f32 %v7796_v42, %v8456_v57  ;;  %v7660_v42 = vpack.c.bf16 %v6875_v39, %v6874_v9 }
 0xebc   :  { %v3142_v44 = vmul.f32 %v6858_v28, %v3132_v43  ;;  %7661 = vmatprep.subr.bf16.mxu0 %v7660_v42  ;;  %v6876_v43 = vld [vmem:[%s9052_s1 + $0x30] sm:$0xff] }
 0xebd   :  { %v7798_v45 = vpop.eup %7797  ;;  %7663 = vmatpush3.bf16.msra.mxu0 %v7660_v42 }
 0xebe   :  { %v3152_v46 = vadd.f32 %v6859_v36, %v3142_v44  ;;  %v3133_v47 = vmul.f32 %v7798_v45, %v8461_v62  ;;  %v6877_v44 = vld [vmem:[%s9052_s1 + $0x38] sm:$0xff] }
 0xebf   :  { %v7664_v45 = vpack.c.bf16 %v6877_v44, %v6876_v43 }
 0xec0   :  { %7371 = vmatprep.mubr.msk.f32.mxu0 %vm71_vm0, %v3152_v46  ;;  %v3143_v48 = vmul.f32 %v6858_v28, %v3133_v47 }
 0xec1   :  { %7665 = vmatprep.subr.bf16.mxu0 %v7664_v45 }
 0xec2   :  { %v3153_v50 = vadd.f32 %v6859_v36, %v3143_v48  ;;  %7667 = vmatpush3.bf16.msra.mxu0 %v7664_v45 }
 0xec3   :  { %7410 = vmatprep.subr.mxu0 %v7942_v0 }
 0xec4   :  { %7372 = vmatmul.mubr.msk.f32.gmra.mrb[38].mxu0 %vm71_vm0, %v3153_v50 }
 0xf88   :  { %v7370_v55 = vpop.f32.mrb[36].mxu0 }
 0xf89   :  { %v3249_v56 = vadd.f32 %v7370_v55, %v6860_v54  ;;  %v3243_v57 = vpop.f32.mrb[37].mxu0  ;;  %v6872_v55 = vld [vmem:[%s9056_s5 + $0x1] ss:$0 sm:$0xff] }
 0xf8a   :  { %v3244_v58 = vadd.f32 %v6860_v54, %v3243_v57 }
 0xf8b   :  { %v3263_v61 = vmax.f32 %v3249_v56, 0.0 }
 0xf8c   :  { %v3262_v60 = vmax.f32 %v3244_v58, 0.0 }
 0xf8e   :  { %7390 = vmatprep.mubr.msk.f32.mxu1 %vm3281_vm5, %v3262_v60 }
 0xf8f   :  { %7391 = vmatmul.mubr.msk.f32.vlgmr.msra.gmra.mrb[36].mxu1 %vm3281_vm5, %v3263_v61 }
 0xf97   :  { %v7373_v62 = vpop.f32.mrb[38].mxu0 }
 0xf98   :  { %v3259_v63 = vadd.f32 %v7373_v62, %v6860_v54  ;;  %v3253_v30 = vpop.f32.mrb[39].mxu0 }
 0xf99   :  { %v3254_v49 = vadd.f32 %v6860_v54, %v3253_v30  ;;  %v6873_v30 = vld [vmem:[%s9057_s6 + $0x1] ss:$0 sm:$0xff] }
 0xf9a   :  { %v3265_v2 = vmax.f32 %v3259_v63, 0.0 }
 0xf9b   :  { %v3264_v1 = vmax.f32 %v3254_v49, 0.0 }
 0xf9d   :  { %7393 = vmatprep.mubr.msk.f32.mxu1 %vm3281_vm5, %v3264_v1 }
 0xf9e   :  { %7394 = vmatmul.mubr.msk.f32.gmra.mrb[38].mxu1 %vm3281_vm5, %v3265_v2 }
 0xf9f   :  { %7422 = vmatprep.mubr.msk.f32.mxu1 %vm7943_vm1, %v7942_v0 }
0x1062   :  { %v7392_v6 = vpop.f32.mrb[36].mxu1 }
0x1063   :  { %v3366_v40 = vadd.f32 %v7392_v6, %v6865_v4  ;;  %v3360_v7 = vpop.f32.mrb[37].mxu1 }
0x1064   :  { %v3361_v10 = vadd.f32 %v6865_v4, %v3360_v7 }
0x1065   :  { %v8529_v59 = vadd.f32 %v3366_v40, %v8435_v34 }
0x1066   :  { %v8532_v11 = vadd.f32 %v3361_v10, %v8437_v29 }
0x1067   :  { %v3390_v12 = vsel %vm71_vm0, %v8529_v59, 0.0 }
0x1068   :  { %3391 = vadd.xlane.f32.xlu1 %v3390_v12  ;;  %v3387_v13 = vsel %vm71_vm0, %v8532_v11, 0.0 }
0x1069   :  { %3388 = vadd.xlane.f32.xlu0 %v3387_v13 }
0x1071   :  { %v7395_v16 = vpop.f32.mrb[38].mxu1 }
0x1072   :  { %v3376_v14 = vadd.f32 %v7395_v16, %v6865_v4  ;;  %v3370_v17 = vpop.f32.mrb[39].mxu1 }
0x1073   :  { %v3371_v18 = vadd.f32 %v6865_v4, %v3370_v17 }
0x1074   :  { %v8539_v20 = vadd.f32 %v3376_v14, %v8445_v41 }
0x1075   :  { %v8542_v34 = vadd.f32 %v3371_v18, %v8443_v38  ;;  %v6879_v18 = vld [vmem:[%s9053_s2 + $0x1] ss:$0 sm:$0xff]  ;;  %s9084_s2 = smov 80  }
0x1076   :  { %v3396_v29 = vsel %vm71_vm0, %v8539_v20, 0.0 }
0x1077   :  { %3397 = vadd.xlane.f32.xlu1 %v3396_v29  ;;  %v3393_v21 = vsel %vm71_vm0, %v8542_v34, 0.0 }
0x1078   :  { %3394 = vadd.xlane.f32.xlu0 %v3393_v21 }
0x10f5   :  { %v3392_v22 = vpop.xlane.xlu1 %3391 }
0x10f6   :  { %v3400_v15 = vmul.f32 0.03125, %v3392_v22  ;;  %v3389_v19 = vpop.xlane.xlu0 %3388 }
0x10f7   :  { %v3399_v23 = vmul.f32 0.03125, %v3389_v19 }
0x10f8   :  { %v3404_v24 = vsub.f32 %v8529_v59, %v3400_v15 }
0x10f9   :  { %v3403_v41 = vsub.f32 %v8532_v11, %v3399_v23 }
0x10fa   :  { %v3408_v25 = vmul.f32 %v3404_v24, %v3404_v24 }
0x10fb   :  { %v3407_v26 = vmul.f32 %v3403_v41, %v3403_v41 }
0x10fc   :  { %v3414_v38 = vsel %vm71_vm0, %v3408_v25, 0.0 }
0x10fd   :  { %3415 = vadd.xlane.f32.xlu1 %v3414_v38  ;;  %v3411_v28 = vsel %vm71_vm0, %v3407_v26, 0.0 }
0x10fe   :  { %3412 = vadd.xlane.f32.xlu0 %v3411_v28 }
0x1104   :  { %v3398_v31 = vpop.xlane.xlu1 %3397 }
0x1105   :  { %v3402_v32 = vmul.f32 0.03125, %v3398_v31  ;;  %v3395_v33 = vpop.xlane.xlu0 %3394 }
0x1106   :  { %v3401_v5 = vmul.f32 0.03125, %v3395_v33 }
0x1107   :  { %v3406_v27 = vsub.f32 %v8539_v20, %v3402_v32 }
0x1108   :  { %v3405_v35 = vsub.f32 %v8542_v34, %v3401_v5 }
0x1109   :  { %v3410_v36 = vmul.f32 %v3406_v27, %v3406_v27 }
0x110a   :  { %v3409_v37 = vmul.f32 %v3405_v35, %v3405_v35 }
0x110b   :  { %v3420_v3 = vsel %vm71_vm0, %v3410_v36, 0.0 }
0x110c   :  { %3421 = vadd.xlane.f32.xlu1 %v3420_v3  ;;  %v3417_v8 = vsel %vm71_vm0, %v3409_v37, 0.0 }
0x110d   :  { %3418 = vadd.xlane.f32.xlu0 %v3417_v8 }
0x118a   :  { %v3416_v46 = vpop.xlane.xlu1 %3415 }
0x118b   :  { %v3424_v47 = vmul.f32 0.03125, %v3416_v46  ;;  %v3413_v48 = vpop.xlane.xlu0 %3412 }
0x118c   :  { %v3423_v50 = vmul.f32 0.03125, %v3413_v48 }
0x118d   :  { %v3428_v51 = vadd.f32 1e-05, %v3424_v47 }
0x118e   :  { %v3427_v52 = vadd.f32 1e-05, %v3423_v50 }
0x118f   :  { %7799 = vrsqrt.f32 %v3428_v51 }
0x1190   :  { %7801 = vrsqrt.f32 %v3427_v52 }
0x1199   :  { %v7800_v53 = vpop.eup %7799  ;;  %v3422_v54 = vpop.xlane.xlu1 %3421 }
0x119a   :  { %v7802_v56 = vpop.eup %7801  ;;  %v3436_v57 = vmul.f32 %v7800_v53, %v3404_v24  ;;  %v3426_v58 = vmul.f32 0.03125, %v3422_v54  ;;  %v3419_v60 = vpop.xlane.xlu0 %3418 }
0x119b   :  { %v3425_v61 = vmul.f32 0.03125, %v3419_v60  ;;  %v3435_v62 = vmul.f32 %v7802_v56, %v3403_v41 }
0x119c   :  { %v3430_v63 = vadd.f32 1e-05, %v3426_v58  ;;  %v3446_v49 = vmul.f32 %v6872_v55, %v3436_v57 }
0x119d   :  { %v3429_v1 = vadd.f32 1e-05, %v3425_v61  ;;  %v3445_v2 = vmul.f32 %v6872_v55, %v3435_v62 }
0x119e   :  { %7803 = vrsqrt.f32 %v3430_v63  ;;  %v3456_v6 = vadd.f32 %v6873_v30, %v3446_v49 }
0x119f   :  { %7805 = vrsqrt.f32 %v3429_v1  ;;  %v3455_v4 = vadd.f32 %v6873_v30, %v3445_v2 }
0x11a1   :  { %7404 = vmatprep.mubr.msk.f32.mxu0 %vm71_vm0, %v3455_v4 }
0x11a2   :  { %7405 = vmatmul.mubr.msk.f32.vlgmr.msra.gmra.mrb[40].mxu0 %vm71_vm0, %v3456_v6 }
0x11a8   :  { %v7804_v40 = vpop.eup %7803 }
0x11a9   :  { %v7806_v7 = vpop.eup %7805  ;;  %v3438_v10 = vmul.f32 %v7804_v40, %v3406_v27 }
0x11aa   :  { %v3437_v12 = vmul.f32 %v7806_v7, %v3405_v35 }
0x11ab   :  { %v3448_v13 = vmul.f32 %v6872_v55, %v3438_v10 }
0x11ac   :  { %v3447_v16 = vmul.f32 %v6872_v55, %v3437_v12 }
0x11ad   :  { %v3458_v17 = vadd.f32 %v6873_v30, %v3448_v13 }
0x11ae   :  { %v3457_v14 = vadd.f32 %v6873_v30, %v3447_v16 }
0x11b0   :  { %7407 = vmatprep.mubr.msk.f32.mxu0 %vm71_vm0, %v3457_v14 }
0x11b1   :  { %7408 = vmatmul.mubr.msk.f32.gmra.mrb[42].mxu0 %vm71_vm0, %v3458_v17 }
0x11b2   :  { %7412 = vmatprep.mubr.msk.f32.mxu0 %vm7943_vm1, %v7942_v0 }
0x1275   :  { %v7406_v29 = vpop.f32.mrb[40].mxu0 }
0x1276   :  { %v8584_v21 = vadd.f32 %v7406_v29, %v6879_v18  ;;  %v3550_v22 = vpop.f32.mrb[41].mxu0 }
0x1277   :  { %v8586_v15 = vadd.f32 %v6879_v18, %v3550_v22 }
0x1278   :  { %3647 = vrot.lane.b32.xlu1 %v8584_v21, %s7944_s0 }
0x1279   :  { %3570 = vrot.lane.b32.xlu0 %v8586_v15, %s7944_s0 }
0x1284   :  { %v7409_v19 = vpop.f32.mrb[42].mxu0 }
0x1285   :  { %v3560_v23 = vpop.f32.mrb[43].mxu0  ;;  %v8596_v41 = vadd.f32 %v7409_v19, %v6879_v18 }
0x1286   :  { %v8592_v24 = vadd.f32 %v6879_v18, %v3560_v23 }
0x1288   :  { %3724 = vrot.lane.b32.xlu1 %v8592_v24, %s7944_s0 }
0x128c   :  { %3801 = vrot.lane.b32.xlu1 %v8596_v41, %s7944_s0  ;;  %s9085_s0 = smov 112  }
0x12ea   :  { %v3648_v26 = vpop.permute.xlu1 %3647 }
0x12eb   :  { %v3571_v25 = vpop.permute.xlu0 %3570 }
0x12ec   :  { %7411 = vmatpush3.xpose.msk.msra.mxu0 %vm256_vm2, %v3571_v25 }
0x12ed   :  { %7415 = vmatprep.subr.mxu0 %v7942_v0 }
0x12ef   :  { %7413 = vmatmul.mubr.msk.f32.vlgmr.msra.gmra.mrb[44].mxu0 %vm256_vm2, %v8586_v15 }
0x12f0   :  { %7416 = vmatpush3.xpose.msk.msra.mxu0 %vm256_vm2, %v3648_v26  ;;  %7417 = vmatprep.mubr.msk.f32.mxu0 %vm7943_vm1, %v7942_v0 }
0x12f1   :  { %7425 = vmatprep.subr.mxu0 %v7942_v0 }
0x12f3   :  { %7418 = vmatmul.mubr.msk.f32.vlgmr.msra.gmra.mrb[46].mxu0 %vm256_vm2, %v8584_v21 }
0x12f4   :  { %7427 = vmatprep.mubr.msk.f32.mxu0 %vm7943_vm1, %v7942_v0 }
0x12fa   :  { %v3725_v38 = vpop.permute.xlu1 %3724 }
0x12fb   :  { %7421 = vmatpush3.xpose.msk.msra.mxu1 %vm256_vm2, %v3725_v38 }
0x12fc   :  { %7430 = vmatprep.subr.mxu1 %v7942_v0 }
0x12fe   :  { %7423 = vmatmul.mubr.msk.f32.vlgmr.msra.gmra.mrb[40].mxu1 %vm256_vm2, %v8592_v24  ;;  %v3802_v28 = vpop.permute.xlu1 %3801 }
0x12ff   :  { %7426 = vmatpush3.xpose.msk.msra.mxu0 %vm256_vm2, %v3802_v28  ;;  %7432 = vmatprep.mubr.msk.f32.mxu1 %vm7943_vm1, %v7942_v0 }
0x1300   :  { %7435 = vmatprep.subr.mxu0 %v7942_v0 }
0x1302   :  { %7428 = vmatmul.mubr.msk.f32.vlgmr.msra.gmra.mrb[48].mxu0 %vm256_vm2, %v8596_v41 }
0x1303   :  { %7437 = vmatprep.mubr.msk.f32.mxu0 %vm7943_vm1, %v7942_v0 }
0x13c2   :  { %v3642_v31 = vpop.f32.mrb[44].mxu0 }
0x13c3   :  { %v3877_v32 = vmul.f32 0.35355338, %v3642_v31  ;;  %v7414_v33 = vpop.f32.mrb[45].mxu0 }
0x13c5   :  { %v3881_v5 = vsel %vm256_vm2, %v3877_v32, -inf }
0x13c6   :  { %3882 = vmax.xlane.f32.xlu0 %v3881_v5  ;;  %v3719_v27 = vpop.f32.mrb[46].mxu0 }
0x13c7   :  { %v3878_v35 = vmul.f32 0.35355338, %v3719_v27  ;;  %v7419_v36 = vpop.f32.mrb[47].mxu0 }
0x13c9   :  { %v3884_v37 = vsel %vm256_vm2, %v3878_v35, -inf }
0x13ca   :  { %3885 = vmax.xlane.f32.xlu1 %v3884_v37 }
0x13d1   :  { %v3796_v3 = vpop.f32.mrb[40].mxu1 }
0x13d2   :  { %v3879_v8 = vmul.f32 0.35355338, %v3796_v3  ;;  %v7424_v9 = vpop.f32.mrb[41].mxu1 }
0x13d4   :  { %v3887_v39 = vsel %vm256_vm2, %v3879_v8, -inf }
0x13d5   :  { %3888 = vmax.xlane.f32.xlu0 %v3887_v39  ;;  %v3873_v42 = vpop.f32.mrb[48].mxu0 }
0x13d6   :  { %v3880_v43 = vmul.f32 0.35355338, %v3873_v42  ;;  %v7429_v44 = vpop.f32.mrb[49].mxu0 }
0x13d8   :  { %v3890_v45 = vsel %vm256_vm2, %v3880_v43, -inf }
0x13d9   :  { %3891 = vmax.xlane.f32.xlu0 %v3890_v45 }
0x13db   :  { %4001 = vrot.lane.b32.xlu1 %v8584_v21, %s7945_s17 }
0x13df   :  { %4077 = vrot.lane.b32.xlu1 %v8592_v24, %s7945_s17 }
0x13e3   :  { %4153 = vrot.lane.b32.xlu1 %v8596_v41, %s7945_s17 }
0x13e7   :  { %4309 = vrot.lane.b32.xlu1 %v8584_v21, %s7946_s18 }
0x13ef   :  { %3925 = vrot.lane.b32.xlu0 %v8586_v15, %s7945_s17  ;;  %s9086_s17 = smov 48  }
0x13f3   :  { %4231 = vrot.lane.b32.xlu0 %v8586_v15, %s7946_s18 }
0x1453   :  { %v3883_v46 = vpop.xlane.xlu0 %3882 }
0x1454   :  { %v3893_v47 = vsub.f32 %v3877_v32, %v3883_v46 }
0x1456   :  { %v3897_v48 = vmul.f32 1.442695, %v3893_v47 }
0x1457   :  { %v3886_v50 = vpop.xlane.xlu1 %3885 }
0x1458   :  { %7807 = vpow2.f32 %v3897_v48  ;;  %v3894_v51 = vsub.f32 %v3878_v35, %v3886_v50 }
0x145a   :  { %v3899_v52 = vmul.f32 1.442695, %v3894_v51 }
0x145b   :  { %v4002_v53 = vpop.permute.xlu1 %4001 }
0x145c   :  { %7809 = vpow2.f32 %v3899_v52  ;;  %7436 = vmatpush3.msra.mxu0 %v4002_v53 }
0x145d   :  { %7445 = vmatprep.subr.mxu0 %v7942_v0 }
0x145f   :  { %v4078_v40 = vpop.permute.xlu1 %4077 }
0x1462   :  { %v7808_v54 = vpop.eup %7807  ;;  %v3889_v55 = vpop.xlane.xlu0 %3888 }
0x1463   :  { %v3895_v56 = vsub.f32 %v3879_v8, %v3889_v55  ;;  %v3905_v57 = vsel %vm256_vm2, %v7808_v54, 0.0  ;;  %v4154_v7 = vpop.permute.xlu1 %4153 }
0x1464   :  { %3906 = vadd.xlane.f32.xlu0 %v3905_v57 }
0x1465   :  { %v3901_v58 = vmul.f32 1.442695, %v3895_v56 }
0x1466   :  { %v7810_v60 = vpop.eup %7809  ;;  %v3892_v61 = vpop.xlane.xlu0 %3891 }
0x1467   :  { %7811 = vpow2.f32 %v3901_v58  ;;  %v3908_v62 = vsel %vm256_vm2, %v7810_v60, 0.0  ;;  %v3896_v1 = vsub.f32 %v3880_v43, %v3892_v61  ;;  %v4310_v12 = vpop.permute.xlu1 %4309 }
0x1468   :  { %3909 = vadd.xlane.f32.xlu1 %v3908_v62 }
0x1469   :  { %v3903_v2 = vmul.f32 1.442695, %v3896_v1 }
0x146a   :  { %v3926_v63 = vpop.permute.xlu0 %3925 }
0x146b   :  { %7431 = vmatpush3.msra.mxu1 %v3926_v63  ;;  %7813 = vpow2.f32 %v3903_v2 }
0x146c   :  { %7440 = vmatprep.subr.mxu1 %v7942_v0 }
0x146e   :  { %v4232_v10 = vpop.permute.xlu0 %4231 }
0x1471   :  { %v7812_v30 = vpop.eup %7811 }
0x1472   :  { %v3911_v49 = vsel %vm256_vm2, %v7812_v30, 0.0 }
0x1473   :  { %3912 = vadd.xlane.f32.xlu0 %v3911_v49 }
0x1475   :  { %v7814_v4 = vpop.eup %7813 }
0x1476   :  { %v3914_v6 = vsel %vm256_vm2, %v7814_v4, 0.0 }
0x1479   :  { %4307 = vrot.lane.b32.xlu1 %v8584_v21, %s7947_s19 }
0x1489   :  { %4229 = vrot.lane.b32.xlu0 %v8586_v15, %s7947_s19 }
0x148d   :  { %4387 = vrot.lane.b32.xlu0 %v8592_v24, %s7946_s18 }
0x1491   :  { %4385 = vrot.lane.b32.xlu0 %v8592_v24, %s7947_s19 }
0x149d   :  { %3915 = vadd.xlane.f32.xlu1 %v3914_v6 }
0x14ae   :  { %4465 = vrot.lane.b32.xlu1 %v8596_v41, %s7946_s18  ;;  %s9087_s18 = smov 72  }
0x14b2   :  { %4463 = vrot.lane.b32.xlu1 %v8596_v41, %s7947_s19  ;;  %s9088_s19 = smov 104  }
0x14f1   :  { %v3907_v13 = vpop.xlane.xlu0 %3906 }
0x14f2   :  { %7815 = vrcp.f32 %v3907_v13 }
0x14f5   :  { %v3910_v16 = vpop.xlane.xlu1 %3909 }
0x14f6   :  { %7817 = vrcp.f32 %v3910_v16 }
0x14f9   :  { %v4308_v28 = vpop.permute.xlu1 %4307 }
0x14fc   :  { %v7816_v14 = vpop.eup %7815 }
0x14fd   :  { %v3921_v17 = vmul.f32 %v7816_v14, %v7808_v54 }
0x14ff   :  { %7433 = vmatmul.mubr.msk.f32.vlgmr.msra.gmra.mrb[42].mxu1 %vm256_vm2, %v3921_v17 }
0x1500   :  { %v7818_v18 = vpop.eup %7817  ;;  %7441 = vmatpush3.msra.mxu1 %v4078_v40  ;;  %v3913_v29 = vpop.xlane.xlu0 %3912  ;;  %7442 = vmatprep.mubr.msk.f32.mxu1 %vm7943_vm1, %v7942_v0 }
0x1501   :  { %v3922_v22 = vmul.f32 %v7818_v18, %v7810_v60  ;;  %7819 = vrcp.f32 %v3913_v29  ;;  %7450 = vmatprep.subr.mxu1 %v7942_v0 }
0x1503   :  { %7438 = vmatmul.mubr.msk.f32.vlgmr.msra.gmra.mrb[50].mxu0 %vm256_vm2, %v3922_v22 }
0x1504   :  { %7446 = vmatpush3.msra.mxu0 %v4154_v7  ;;  %7447 = vmatprep.mubr.msk.f32.mxu0 %vm7943_vm1, %v7942_v0  ;;  %v4230_v19 = vpop.permute.xlu0 %4229 }
0x1505   :  { %7455 = vmatprep.subr.mxu0 %v7942_v0 }
0x1508   :  { %v4388_v26 = vpop.permute.xlu0 %4387 }
0x150b   :  { %v7820_v23 = vpop.eup %7819 }
0x150c   :  { %v3923_v25 = vmul.f32 %v7820_v23, %v7812_v30  ;;  %v4386_v38 = vpop.permute.xlu0 %4385 }
0x150e   :  { %7443 = vmatmul.mubr.msk.f32.vlgmr.msra.gmra.mrb[44].mxu1 %vm256_vm2, %v3923_v25 }
0x150f   :  { %7451 = vmatpush3.xpose.msk.msra.mxu1 %vm256_vm2, %v4232_v10  ;;  %7452 = vmatprep.mubr.msk.f32.mxu1 %vm7943_vm1, %v7942_v0 }
0x1510   :  { %7460 = vmatprep.subr.mxu1 %v7942_v0 }
0x1512   :  { %7453 = vmatmul.mubr.msk.f32.vlgmr.msra.gmra.mrb[46].mxu1 %vm256_vm2, %v4230_v19 }
0x1513   :  { %7461 = vmatpush3.xpose.msk.msra.mxu1 %vm256_vm2, %v4388_v26  ;;  %7462 = vmatprep.mubr.msk.f32.mxu1 %vm7943_vm1, %v7942_v0 }
0x1514   :  { %7470 = vmatprep.subr.mxu1 %v7942_v0 }
0x1516   :  { %7463 = vmatmul.mubr.msk.f32.vlgmr.msra.gmra.mrb[48].mxu1 %vm256_vm2, %v4386_v38 }
0x1517   :  { %7472 = vmatprep.mubr.msk.f32.mxu1 %vm7943_vm1, %v7942_v0 }
0x152a   :  { %v3916_v31 = vpop.xlane.xlu1 %3915 }
0x152b   :  { %7821 = vrcp.f32 %v3916_v31 }
0x152e   :  { %v4466_v5 = vpop.permute.xlu1 %4465 }
0x1532   :  { %v4464_v27 = vpop.permute.xlu1 %4463 }
0x1535   :  { %v7822_v32 = vpop.eup %7821 }
0x1536   :  { %v3924_v33 = vmul.f32 %v7822_v32, %v7814_v4 }
0x1538   :  { %7448 = vmatmul.mubr.msk.f32.vlgmr.msra.gmra.mrb[52].mxu0 %vm256_vm2, %v3924_v33 }
0x1539   :  { %7456 = vmatpush3.xpose.msk.msra.mxu0 %vm256_vm2, %v4310_v12  ;;  %7457 = vmatprep.mubr.msk.f32.mxu0 %vm7943_vm1, %v7942_v0 }
0x153a   :  { %7465 = vmatprep.subr.mxu0 %v7942_v0 }
0x153c   :  { %7458 = vmatmul.mubr.msk.f32.vlgmr.msra.gmra.mrb[54].mxu0 %vm256_vm2, %v4308_v28 }
0x153d   :  { %7466 = vmatpush3.xpose.msk.msra.mxu0 %vm256_vm2, %v4466_v5  ;;  %7467 = vmatprep.mubr.msk.f32.mxu0 %vm7943_vm1, %v7942_v0 }
0x153e   :  { %7475 = vmatprep.subr.mxu0 %v7942_v0 }
0x1540   :  { %7468 = vmatmul.mubr.msk.f32.vlgmr.msra.gmra.mrb[56].mxu0 %vm256_vm2, %v4464_v27 }
0x1541   :  { %7477 = vmatprep.mubr.msk.f32.mxu0 %vm7943_vm1, %v7942_v0 }
0x15d2   :  { %v8692_v35 = vpop.f32.mrb[42].mxu1 }
0x15d3   :  { %v7434_v36 = vpop.f32.mrb[43].mxu1 }
0x15d6   :  { %v8694_v37 = vpop.f32.mrb[50].mxu0 }
0x15d7   :  { %v7439_v3 = vpop.f32.mrb[51].mxu0 }
0x15e1   :  { %v8696_v8 = vpop.f32.mrb[44].mxu1 }
0x15e2   :  { %v7444_v9 = vpop.f32.mrb[45].mxu1 }
0x15e5   :  { %v4303_v39 = vpop.f32.mrb[46].mxu1 }
0x15e6   :  { %v4541_v42 = vmul.f32 0.35355338, %v4303_v39  ;;  %v7454_v43 = vpop.f32.mrb[47].mxu1 }
0x15e8   :  { %v4545_v44 = vsel %vm256_vm2, %v4541_v42, -inf }
0x15e9   :  { %4546 = vmax.xlane.f32.xlu0 %v4545_v44  ;;  %v4459_v45 = vpop.f32.mrb[48].mxu1 }
0x15ea   :  { %v4543_v46 = vmul.f32 0.35355338, %v4459_v45  ;;  %v7464_v47 = vpop.f32.mrb[49].mxu1 }
0x15ec   :  { %v4551_v48 = vsel %vm256_vm2, %v4543_v46, -inf }
0x15ed   :  { %4552 = vmax.xlane.f32.xlu0 %v4551_v48 }
0x160b   :  { %v8700_v50 = vpop.f32.mrb[52].mxu0 }
0x160c   :  { %v7449_v51 = vpop.f32.mrb[53].mxu0 }
0x160f   :  { %v4381_v52 = vpop.f32.mrb[54].mxu0 }
0x1610   :  { %v4542_v53 = vmul.f32 0.35355338, %v4381_v52  ;;  %v7459_v54 = vpop.f32.mrb[55].mxu0 }
0x1612   :  { %v4548_v55 = vsel %vm256_vm2, %v4542_v53, -inf }
0x1613   :  { %4549 = vmax.xlane.f32.xlu1 %v4548_v55  ;;  %v4537_v56 = vpop.f32.mrb[56].mxu0 }
0x1614   :  { %v4544_v57 = vmul.f32 0.35355338, %v4537_v56  ;;  %v7469_v58 = vpop.f32.mrb[57].mxu0 }
0x1616   :  { %v4554_v60 = vsel %vm256_vm2, %v4544_v57, -inf }
0x1617   :  { %4555 = vmax.xlane.f32.xlu0 %v4554_v60 }
0x1624   :  { %4665 = vrot.lane.b32.xlu1 %v8584_v21, %s7948_s20 }
0x1628   :  { %4741 = vrot.lane.b32.xlu1 %v8592_v24, %s7948_s20 }
0x162c   :  { %4817 = vrot.lane.b32.xlu1 %v8596_v41, %s7948_s20 }
0x162d   :  { %4589 = vrot.lane.b32.xlu0 %v8586_v15, %s7948_s20  ;;  %s9089_s20 = smov 40  }
0x1630   :  { %4973 = vrot.lane.b32.xlu1 %v8584_v21, %s9084_s2 }
0x1631   :  { %4895 = vrot.lane.b32.xlu0 %v8586_v15, %s9084_s2 }
0x1676   :  { %v4547_v61 = vpop.xlane.xlu0 %4546 }
0x1677   :  { %v4557_v62 = vsub.f32 %v4541_v42, %v4547_v61 }
0x1679   :  { %v4561_v63 = vmul.f32 1.442695, %v4557_v62 }
0x167a   :  { %v4553_v30 = vpop.xlane.xlu0 %4552 }
0x167b   :  { %7823 = vpow2.f32 %v4561_v63  ;;  %v4559_v49 = vsub.f32 %v4543_v46, %v4553_v30 }
0x167d   :  { %v4565_v1 = vmul.f32 1.442695, %v4559_v49 }
0x167f   :  { %7825 = vpow2.f32 %v4565_v1 }
0x1685   :  { %v7824_v2 = vpop.eup %7823 }
0x1686   :  { %v4569_v4 = vsel %vm256_vm2, %v7824_v2, 0.0 }
0x1687   :  { %4570 = vadd.xlane.f32.xlu0 %v4569_v4 }
0x1689   :  { %v7826_v6 = vpop.eup %7825 }
0x168a   :  { %v4575_v40 = vsel %vm256_vm2, %v7826_v6, 0.0 }
0x168b   :  { %4576 = vadd.xlane.f32.xlu0 %v4575_v40 }
0x16a0   :  { %v4550_v7 = vpop.xlane.xlu1 %4549 }
0x16a1   :  { %v4558_v10 = vsub.f32 %v4542_v53, %v4550_v7  ;;  %4893 = vrot.lane.b32.xlu0 %v8586_v15, %s9085_s0 }
0x16a3   :  { %v4563_v12 = vmul.f32 1.442695, %v4558_v10 }
0x16a4   :  { %v4666_v13 = vpop.permute.xlu1 %4665  ;;  %v4556_v16 = vpop.xlane.xlu0 %4555 }
0x16a5   :  { %7827 = vpow2.f32 %v4563_v12  ;;  %7476 = vmatpush3.msra.mxu0 %v4666_v13  ;;  %5051 = vrot.lane.b32.xlu0 %v8592_v24, %s9084_s2  ;;  %v4560_v29 = vsub.f32 %v4544_v57, %v4556_v16 }
0x16a6   :  { %7485 = vmatprep.subr.mxu0 %v7942_v0 }
0x16a7   :  { %v4567_v22 = vmul.f32 1.442695, %v4560_v29 }
0x16a8   :  { %v4590_v14 = vpop.permute.xlu0 %4589  ;;  %v4742_v33 = vpop.permute.xlu1 %4741 }
0x16a9   :  { %5049 = vrot.lane.b32.xlu0 %v8592_v24, %s9085_s0  ;;  %7471 = vmatpush3.msra.mxu1 %v4590_v14  ;;  %7829 = vpow2.f32 %v4567_v22 }
0x16aa   :  { %7480 = vmatprep.subr.mxu1 %v7942_v0 }
0x16ac   :  { %v4896_v25 = vpop.permute.xlu0 %4895  ;;  %v4818_v39 = vpop.permute.xlu1 %4817 }
0x16ad   :  { %5253 = vrot.lane.b32.xlu0 %v8586_v15, %s9086_s17 }
0x16af   :  { %v7828_v17 = vpop.eup %7827 }
0x16b0   :  { %v4572_v18 = vsel %vm256_vm2, %v7828_v17, 0.0  ;;  %v4974_v42 = vpop.permute.xlu1 %4973 }
0x16b1   :  { %4573 = vadd.xlane.f32.xlu1 %v4572_v18 }
0x16b3   :  { %v7830_v19 = vpop.eup %7829 }
0x16b4   :  { %v4578_v23 = vsel %vm256_vm2, %v7830_v19, 0.0 }
0x16c2   :  { %4971 = vrot.lane.b32.xlu1 %v8584_v21, %s9085_s0 }
0x16e6   :  { %4579 = vadd.xlane.f32.xlu1 %v4578_v23 }
0x16f7   :  { %5129 = vrot.lane.b32.xlu1 %v8596_v41, %s9084_s2 }
0x16fb   :  { %5127 = vrot.lane.b32.xlu1 %v8596_v41, %s9085_s0 }
0x16ff   :  { %5329 = vrot.lane.b32.xlu1 %v8584_v21, %s9086_s17 }
0x1703   :  { %5405 = vrot.lane.b32.xlu1 %v8592_v24, %s9086_s17 }
0x1707   :  { %5481 = vrot.lane.b32.xlu1 %v8596_v41, %s9086_s17 }
0x1714   :  { %v4571_v26 = vpop.xlane.xlu0 %4570 }
0x1715   :  { %7831 = vrcp.f32 %v4571_v26 }
0x1718   :  { %v4577_v38 = vpop.xlane.xlu0 %4576 }
0x1719   :  { %7833 = vrcp.f32 %v4577_v38 }
0x171c   :  { %v4894_v31 = vpop.permute.xlu0 %4893 }
0x171f   :  { %v7832_v28 = vpop.eup %7831 }
0x1720   :  { %v4585_v32 = vmul.f32 %v7832_v28, %v7824_v2  ;;  %v5052_v36 = vpop.permute.xlu0 %5051 }
0x1722   :  { %7473 = vmatmul.mubr.msk.f32.vlgmr.msra.gmra.mrb[50].mxu1 %vm256_vm2, %v4585_v32 }
0x1723   :  { %v7834_v5 = vpop.eup %7833  ;;  %7481 = vmatpush3.msra.mxu1 %v4742_v33  ;;  %7482 = vmatprep.mubr.msk.f32.mxu1 %vm7943_vm1, %v7942_v0 }
0x1724   :  { %v4587_v27 = vmul.f32 %v7834_v5, %v7826_v6  ;;  %7490 = vmatprep.subr.mxu1 %v7942_v0  ;;  %v5050_v3 = vpop.permute.xlu0 %5049 }
0x1726   :  { %7483 = vmatmul.mubr.msk.f32.vlgmr.msra.gmra.mrb[52].mxu1 %vm256_vm2, %v4587_v27 }
0x1727   :  { %7492 = vmatprep.mubr.msk.f32.mxu1 %vm7943_vm1, %v7942_v0 }
0x1728   :  { %v5254_v9 = vpop.permute.xlu0 %5253 }
0x172a   :  { %7491 = vmatpush3.xpose.msk.msra.mxu1 %vm256_vm2, %v4896_v25 }
0x172b   :  { %7500 = vmatprep.subr.mxu1 %v7942_v0 }
0x172d   :  { %7493 = vmatmul.mubr.msk.f32.vlgmr.msra.gmra.mrb[54].mxu1 %vm256_vm2, %v4894_v31 }
0x172e   :  { %7501 = vmatpush3.xpose.msk.msra.mxu1 %vm256_vm2, %v5052_v36  ;;  %7502 = vmatprep.mubr.msk.f32.mxu1 %vm7943_vm1, %v7942_v0 }
0x172f   :  { %7510 = vmatprep.subr.mxu1 %v7942_v0 }
0x1731   :  { %7503 = vmatmul.mubr.msk.f32.vlgmr.msra.gmra.mrb[56].mxu1 %vm256_vm2, %v5050_v3 }
0x1732   :  { %7511 = vmatpush3.msra.mxu1 %v5254_v9  ;;  %7512 = vmatprep.mubr.msk.f32.mxu1 %vm7943_vm1, %v7942_v0 }
0x1733   :  { %7520 = vmatprep.subr.mxu1 %v7942_v0 }
0x173e   :  { %v4574_v43 = vpop.xlane.xlu1 %4573 }
0x173f   :  { %7835 = vrcp.f32 %v4574_v43 }
0x1742   :  { %v4972_v46 = vpop.permute.xlu1 %4971 }
0x1749   :  { %v7836_v44 = vpop.eup %7835 }
0x174a   :  { %v4586_v45 = vmul.f32 %v7836_v44, %v7828_v17 }
0x174c   :  { %7478 = vmatmul.mubr.msk.f32.vlgmr.msra.gmra.mrb[58].mxu0 %vm256_vm2, %v4586_v45 }
0x174d   :  { %7486 = vmatpush3.msra.mxu0 %v4818_v39  ;;  %7487 = vmatprep.mubr.msk.f32.mxu0 %vm7943_vm1, %v7942_v0 }
0x174e   :  { %7495 = vmatprep.subr.mxu0 %v7942_v0 }
0x1773   :  { %v4580_v47 = vpop.xlane.xlu1 %4579 }
0x1774   :  { %7837 = vrcp.f32 %v4580_v47 }
0x1777   :  { %v5130_v48 = vpop.permute.xlu1 %5129 }
0x177b   :  { %v5128_v53 = vpop.permute.xlu1 %5127 }
0x177e   :  { %v7838_v51 = vpop.eup %7837 }
0x177f   :  { %v4588_v52 = vmul.f32 %v7838_v51, %v7830_v19  ;;  %v5330_v54 = vpop.permute.xlu1 %5329 }
0x1781   :  { %7488 = vmatmul.mubr.msk.f32.vlgmr.msra.gmra.mrb[60].mxu0 %vm256_vm2, %v4588_v52 }
0x1782   :  { %7496 = vmatpush3.xpose.msk.msra.mxu0 %vm256_vm2, %v4974_v42  ;;  %7497 = vmatprep.mubr.msk.f32.mxu0 %vm7943_vm1, %v7942_v0 }
0x1783   :  { %7505 = vmatprep.subr.mxu0 %v7942_v0  ;;  %v5406_v5 = vpop.permute.xlu1 %5405 }
0x1785   :  { %7498 = vmatmul.mubr.msk.f32.vlgmr.msra.gmra.mrb[62].mxu0 %vm256_vm2, %v4972_v46 }
0x1786   :  { %7506 = vmatpush3.xpose.msk.msra.mxu0 %vm256_vm2, %v5130_v48  ;;  %7507 = vmatprep.mubr.msk.f32.mxu0 %vm7943_vm1, %v7942_v0 }
0x1787   :  { %7515 = vmatprep.subr.mxu0 %v7942_v0  ;;  %v5482_v27 = vpop.permute.xlu1 %5481 }
0x1789   :  { %7508 = vmatmul.mubr.msk.f32.vlgmr.msra.gmra.mrb[64].mxu0 %vm256_vm2, %v5128_v53 }
0x178a   :  { %7516 = vmatpush3.msra.mxu0 %v5330_v54  ;;  %7517 = vmatprep.mubr.msk.f32.mxu0 %vm7943_vm1, %v7942_v0 }
0x178b   :  { %7525 = vmatprep.subr.mxu0 %v7942_v0 }
0x17f5   :  { %v8778_v55 = vpop.f32.mrb[50].mxu1 }
0x17f6   :  { %v7474_v56 = vpop.f32.mrb[51].mxu1 }
0x17f9   :  { %v8780_v57 = vpop.f32.mrb[52].mxu1 }
0x17fa   :  { %v7484_v58 = vpop.f32.mrb[53].mxu1 }
0x1800   :  { %v4967_v60 = vpop.f32.mrb[54].mxu1 }
0x1801   :  { %v5205_v61 = vmul.f32 0.35355338, %v4967_v60  ;;  %v7494_v62 = vpop.f32.mrb[55].mxu1 }
0x1803   :  { %v5209_v63 = vsel %vm256_vm2, %v5205_v61, -inf }
0x1804   :  { %5210 = vmax.xlane.f32.xlu0 %v5209_v63  ;;  %v5123_v30 = vpop.f32.mrb[56].mxu1 }
0x1805   :  { %v5207_v49 = vmul.f32 0.35355338, %v5123_v30  ;;  %v7504_v1 = vpop.f32.mrb[57].mxu1 }
0x1807   :  { %v5215_v2 = vsel %vm256_vm2, %v5207_v49, -inf }
0x1808   :  { %5216 = vmax.xlane.f32.xlu0 %v5215_v2 }
0x181f   :  { %v8784_v4 = vpop.f32.mrb[58].mxu0 }
0x1820   :  { %v7479_v6 = vpop.f32.mrb[59].mxu0 }
0x1854   :  { %v8786_v40 = vpop.f32.mrb[60].mxu0 }
0x1855   :  { %v7489_v7 = vpop.f32.mrb[61].mxu0 }
0x1858   :  { %v5045_v10 = vpop.f32.mrb[62].mxu0 }
0x1859   :  { %v5206_v12 = vmul.f32 0.35355338, %v5045_v10  ;;  %v7499_v13 = vpop.f32.mrb[63].mxu0 }
0x185b   :  { %v5212_v16 = vsel %vm256_vm2, %v5206_v12, -inf }
0x185c   :  { %5213 = vmax.xlane.f32.xlu1 %v5212_v16  ;;  %v5201_v14 = vpop.f32.mrb[64].mxu0 }
0x185d   :  { %v5208_v17 = vmul.f32 0.35355338, %v5201_v14  ;;  %v7509_v18 = vpop.f32.mrb[65].mxu0 }
0x185f   :  { %v5218_v29 = vsel %vm256_vm2, %v5208_v17, -inf }
0x1860   :  { %5219 = vmax.xlane.f32.xlu0 %v5218_v29 }
0x186d   :  { %5637 = vrot.lane.b32.xlu1 %v8584_v21, %s9087_s18 }
0x1871   :  { %5635 = vrot.lane.b32.xlu1 %v8584_v21, %s9088_s19 }
0x1876   :  { %5559 = vrot.lane.b32.xlu0 %v8586_v15, %s9087_s18 }
0x1891   :  { %v5211_v22 = vpop.xlane.xlu0 %5210 }
0x1892   :  { %v5221_v19 = vsub.f32 %v5205_v61, %v5211_v22 }
0x1894   :  { %v5225_v23 = vmul.f32 1.442695, %v5221_v19 }
0x1895   :  { %v5217_v38 = vpop.xlane.xlu0 %5216 }
0x1896   :  { %7839 = vpow2.f32 %v5225_v23  ;;  %v5223_v28 = vsub.f32 %v5207_v49, %v5217_v38 }
0x1898   :  { %v5229_v31 = vmul.f32 1.442695, %v5223_v28 }
0x189a   :  { %7841 = vpow2.f32 %v5229_v31 }
0x18a0   :  { %v7840_v25 = vpop.eup %7839 }
0x18a1   :  { %v5233_v26 = vsel %vm256_vm2, %v7840_v25, 0.0 }
0x18a2   :  { %5234 = vadd.xlane.f32.xlu0 %v5233_v26 }
0x18a4   :  { %v7842_v32 = vpop.eup %7841 }
0x18a5   :  { %v5239_v33 = vsel %vm256_vm2, %v7842_v32, 0.0 }
0x18b8   :  { %5557 = vrot.lane.b32.xlu0 %v8586_v15, %s9088_s19 }
0x18d7   :  { %5240 = vadd.xlane.f32.xlu0 %v5239_v33 }
0x18e9   :  { %v5214_v36 = vpop.xlane.xlu1 %5213 }
0x18ea   :  { %v5222_v3 = vsub.f32 %v5206_v12, %v5214_v36 }
0x18ec   :  { %v5227_v9 = vmul.f32 1.442695, %v5222_v3 }
0x18ed   :  { %5715 = vrot.lane.b32.xlu0 %v8592_v24, %s9087_s18  ;;  %v5220_v43 = vpop.xlane.xlu0 %5219  ;;  %v5638_v63 = vpop.permute.xlu1 %5637 }
0x18ee   :  { %7843 = vpow2.f32 %v5227_v9  ;;  %v5224_v44 = vsub.f32 %v5208_v17, %v5220_v43 }
0x18f0   :  { %v5231_v45 = vmul.f32 1.442695, %v5224_v44 }
0x18f1   :  { %5713 = vrot.lane.b32.xlu0 %v8592_v24, %s9088_s19  ;;  %v5560_v47 = vpop.permute.xlu0 %5559  ;;  %v5636_v30 = vpop.permute.xlu1 %5635 }
0x18f2   :  { %7845 = vpow2.f32 %v5231_v45 }
0x18f8   :  { %v7844_v39 = vpop.eup %7843 }
0x18f9   :  { %v5236_v42 = vsel %vm256_vm2, %v7844_v39, 0.0 }
0x18fa   :  { %5237 = vadd.xlane.f32.xlu1 %v5236_v42 }
0x18fc   :  { %v7846_v46 = vpop.eup %7845 }
0x18fd   :  { %v5242_v48 = vsel %vm256_vm2, %v7846_v46, 0.0 }
0x190b   :  { %5793 = vrot.lane.b32.xlu1 %v8596_v41, %s9087_s18 }
0x192f   :  { %v5235_v51 = vpop.xlane.xlu0 %5234  ;;  %5243 = vadd.xlane.f32.xlu1 %v5242_v48 }
0x1930   :  { %7847 = vrcp.f32 %v5235_v51 }
0x1933   :  { %v5558_v54 = vpop.permute.xlu0 %5557 }
0x193a   :  { %v7848_v52 = vpop.eup %7847 }
0x193b   :  { %v5249_v53 = vmul.f32 %v7848_v52, %v7840_v25 }
0x193d   :  { %7513 = vmatmul.mubr.msk.f32.vlgmr.msra.gmra.mrb[58].mxu1 %vm256_vm2, %v5249_v53 }
0x193e   :  { %7521 = vmatpush3.msra.mxu1 %v5406_v5  ;;  %7522 = vmatprep.mubr.msk.f32.mxu1 %vm7943_vm1, %v7942_v0 }
0x193f   :  { %7530 = vmatprep.subr.mxu1 %v7942_v0 }
0x1940   :  { %5791 = vrot.lane.b32.xlu1 %v8596_v41, %s9088_s19 }
0x1964   :  { %v5241_v56 = vpop.xlane.xlu0 %5240 }
0x1965   :  { %7849 = vrcp.f32 %v5241_v56 }
0x1968   :  { %v5716_v61 = vpop.permute.xlu0 %5715 }
0x196c   :  { %v5714_v62 = vpop.permute.xlu0 %5713 }
0x196f   :  { %v7850_v58 = vpop.eup %7849 }
0x1970   :  { %v5251_v60 = vmul.f32 %v7850_v58, %v7842_v32 }
0x1972   :  { %7523 = vmatmul.mubr.msk.f32.vlgmr.msra.gmra.mrb[60].mxu1 %vm256_vm2, %v5251_v60 }
0x1973   :  { %7531 = vmatpush3.xpose.msk.msra.mxu1 %vm256_vm2, %v5560_v47  ;;  %7532 = vmatprep.mubr.msk.f32.mxu1 %vm7943_vm1, %v7942_v0 }
0x1974   :  { %7540 = vmatprep.subr.mxu1 %v7942_v0 }
0x1976   :  { %7533 = vmatmul.mubr.msk.f32.vlgmr.msra.gmra.mrb[62].mxu1 %vm256_vm2, %v5558_v54 }
0x1977   :  { %7541 = vmatpush3.xpose.msk.msra.mxu1 %vm256_vm2, %v5716_v61  ;;  %7542 = vmatprep.mubr.msk.f32.mxu1 %vm7943_vm1, %v7942_v0 }
0x1978   :  { %7550 = vmatprep.subr.mxu1 %v7942_v0 }
0x197a   :  { %7543 = vmatmul.mubr.msk.f32.vlgmr.msra.gmra.mrb[64].mxu1 %vm256_vm2, %v5714_v62 }
0x197b   :  { %7552 = vmatprep.mubr.msk.f32.mxu1 %vm7943_vm1, %v7942_v0 }
0x1987   :  { %v5238_v49 = vpop.xlane.xlu1 %5237 }
0x1988   :  { %7851 = vrcp.f32 %v5238_v49 }
0x198b   :  { %v5794_v6 = vpop.permute.xlu1 %5793 }
0x1992   :  { %v7852_v1 = vpop.eup %7851 }
0x1993   :  { %v5250_v2 = vmul.f32 %v7852_v1, %v7844_v39 }
0x1995   :  { %7518 = vmatmul.mubr.msk.f32.vlgmr.msra.gmra.mrb[66].mxu0 %vm256_vm2, %v5250_v2 }
0x1996   :  { %7526 = vmatpush3.msra.mxu0 %v5482_v27  ;;  %7527 = vmatprep.mubr.msk.f32.mxu0 %vm7943_vm1, %v7942_v0 }
0x1997   :  { %7535 = vmatprep.subr.mxu0 %v7942_v0 }
0x19bc   :  { %v5244_v7 = vpop.xlane.xlu1 %5243 }
0x19bd   :  { %7853 = vrcp.f32 %v5244_v7 }
0x19c0   :  { %v5792_v13 = vpop.permute.xlu1 %5791 }
0x19c7   :  { %v7854_v10 = vpop.eup %7853 }
0x19c8   :  { %v5252_v12 = vmul.f32 %v7854_v10, %v7846_v46 }
0x19ca   :  { %7528 = vmatmul.mubr.msk.f32.vlgmr.msra.gmra.mrb[68].mxu0 %vm256_vm2, %v5252_v12 }
0x19cb   :  { %7536 = vmatpush3.xpose.msk.msra.mxu0 %vm256_vm2, %v5638_v63  ;;  %7537 = vmatprep.mubr.msk.f32.mxu0 %vm7943_vm1, %v7942_v0 }
0x19cc   :  { %7545 = vmatprep.subr.mxu0 %v7942_v0 }
0x19ce   :  { %7538 = vmatmul.mubr.msk.f32.vlgmr.msra.gmra.mrb[70].mxu0 %vm256_vm2, %v5636_v30 }
0x19cf   :  { %7546 = vmatpush3.xpose.msk.msra.mxu0 %vm256_vm2, %v5794_v6  ;;  %7547 = vmatprep.mubr.msk.f32.mxu0 %vm7943_vm1, %v7942_v0 }
0x19d0   :  { %7555 = vmatprep.subr.mxu0 %v7942_v0 }
0x19d2   :  { %7548 = vmatmul.mubr.msk.f32.vlgmr.msra.gmra.mrb[72].mxu0 %vm256_vm2, %v5792_v13 }
0x19d3   :  { %7557 = vmatprep.mubr.msk.f32.mxu0 %vm7943_vm1, %v7942_v0 }
0x1a10   :  { %v5325_v16 = vpop.f32.mrb[58].mxu1 }
0x1a11   :  { %v7514_v14 = vpop.f32.mrb[59].mxu1 }
0x1a45   :  { %v5477_v17 = vpop.f32.mrb[60].mxu1 }
0x1a46   :  { %v7524_v18 = vpop.f32.mrb[61].mxu1 }
0x1a49   :  { %v5631_v29 = vpop.f32.mrb[62].mxu1 }
0x1a4a   :  { %v5869_v22 = vmul.f32 0.35355338, %v5631_v29  ;;  %v7534_v19 = vpop.f32.mrb[63].mxu1 }
0x1a4c   :  { %v5873_v23 = vsel %vm256_vm2, %v5869_v22, -inf }
0x1a4d   :  { %5874 = vmax.xlane.f32.xlu0 %v5873_v23  ;;  %v5787_v25 = vpop.f32.mrb[64].mxu1 }
0x1a4e   :  { %v5871_v26 = vmul.f32 0.35355338, %v5787_v25  ;;  %v7544_v38 = vpop.f32.mrb[65].mxu1 }
0x1a4f   :  { %v6932_v38 = vld [vmem:[%s9054_s3 + $0x20] sm:$0xff] }
0x1a50   :  { %v5879_v28 = vsel %vm256_vm2, %v5871_v26, -inf }
0x1a51   :  { %5880 = vmax.xlane.f32.xlu0 %v5879_v28 }
0x1a68   :  { %v8846_v31 = vpop.f32.mrb[66].mxu0 }
0x1a69   :  { %v7519_v32 = vpop.f32.mrb[67].mxu0 }
0x1a6a   :  { %v6935_v32 = vld [vmem:[%s9054_s3 + $0x38] sm:$0xff] }
0x1a9d   :  { %v8848_v33 = vpop.f32.mrb[68].mxu0 }
0x1a9e   :  { %v7529_v5 = vpop.f32.mrb[69].mxu0 }
0x1aa1   :  { %v5709_v27 = vpop.f32.mrb[70].mxu0 }
0x1aa2   :  { %v5870_v36 = vmul.f32 0.35355338, %v5709_v27  ;;  %v7539_v3 = vpop.f32.mrb[71].mxu0 }
0x1aa4   :  { %v5876_v9 = vsel %vm256_vm2, %v5870_v36, -inf }
0x1aa5   :  { %5877 = vmax.xlane.f32.xlu1 %v5876_v9  ;;  %v5865_v39 = vpop.f32.mrb[72].mxu0 }
0x1aa6   :  { %v5872_v42 = vmul.f32 0.35355338, %v5865_v39  ;;  %v7549_v43 = vpop.f32.mrb[73].mxu0 }
0x1aa8   :  { %v5882_v44 = vsel %vm256_vm2, %v5872_v42, -inf }
0x1aa9   :  { %5883 = vmax.xlane.f32.xlu0 %v5882_v44 }
0x1ada   :  { %v5875_v45 = vpop.xlane.xlu0 %5874 }
0x1adb   :  { %v5885_v46 = vsub.f32 %v5869_v22, %v5875_v45 }
0x1add   :  { %v5889_v47 = vmul.f32 1.442695, %v5885_v46 }
0x1ade   :  { %v5881_v48 = vpop.xlane.xlu0 %5880 }
0x1adf   :  { %7855 = vpow2.f32 %v5889_v47  ;;  %v5887_v51 = vsub.f32 %v5871_v26, %v5881_v48 }
0x1ae1   :  { %v5893_v52 = vmul.f32 1.442695, %v5887_v51 }
0x1ae3   :  { %7857 = vpow2.f32 %v5893_v52 }
0x1ae9   :  { %v7856_v53 = vpop.eup %7855 }
0x1aea   :  { %v5897_v54 = vsel %vm256_vm2, %v7856_v53, 0.0 }
0x1aeb   :  { %5898 = vadd.xlane.f32.xlu0 %v5897_v54 }
0x1aed   :  { %v7858_v56 = vpop.eup %7857 }
0x1aee   :  { %v5903_v58 = vsel %vm256_vm2, %v7858_v56, 0.0 }
0x1aef   :  { %5904 = vadd.xlane.f32.xlu0 %v5903_v58 }
0x1b05   :  { %5917 = vrot.lane.b32.xlu0 %v8586_v15, %s9089_s20 }
0x1b09   :  { %6225 = vrot.lane.b32.xlu0 %v8778_v55, %s7941_s29 }
0x1b0d   :  { %6241 = vrot.lane.b32.xlu0 %v5325_v16, %s9090_s26 }
0x1b11   :  { %6229 = vrot.lane.b32.xlu0 %v8780_v57, %s7941_s29 }
0x1b15   :  { %6245 = vrot.lane.b32.xlu0 %v5477_v17, %s9090_s26 }
0x1b32   :  { %v5878_v60 = vpop.xlane.xlu1 %5877 }
0x1b33   :  { %v5886_v61 = vsub.f32 %v5870_v36, %v5878_v60 }
0x1b35   :  { %v5891_v62 = vmul.f32 1.442695, %v5886_v61 }
0x1b36   :  { %v5884_v15 = vpop.xlane.xlu0 %5883 }
0x1b37   :  { %7859 = vpow2.f32 %v5891_v62  ;;  %v5888_v55 = vsub.f32 %v5872_v42, %v5884_v15  ;;  %v6937_v15 = vld [vmem:[%s9055_s4 + $0x1] ss:$0 sm:$0xff] }
0x1b39   :  { %v5895_v49 = vmul.f32 1.442695, %v5888_v55 }
0x1b3b   :  { %7861 = vpow2.f32 %v5895_v49 }
0x1b41   :  { %v7860_v63 = vpop.eup %7859 }
0x1b42   :  { %v5900_v30 = vsel %vm256_vm2, %v7860_v63, 0.0 }
0x1b43   :  { %5901 = vadd.xlane.f32.xlu1 %v5900_v30 }
0x1b45   :  { %v7862_v57 = vpop.eup %7861 }
0x1b46   :  { %v5906_v2 = vsel %vm256_vm2, %v7862_v57, 0.0 }
0x1b54   :  { %5993 = vrot.lane.b32.xlu1 %v8584_v21, %s9089_s20 }
0x1b58   :  { %6069 = vrot.lane.b32.xlu1 %v8592_v24, %s9089_s20 }
0x1b78   :  { %v5899_v1 = vpop.xlane.xlu0 %5898 }
0x1b79   :  { %7863 = vrcp.f32 %v5899_v1 }
0x1b7c   :  { %v5905_v6 = vpop.xlane.xlu0 %5904  ;;  %5907 = vadd.xlane.f32.xlu1 %v5906_v2 }
0x1b7d   :  { %7865 = vrcp.f32 %v5905_v6 }
0x1b80   :  { %v5918_v7 = vpop.permute.xlu0 %5917 }
0x1b81   :  { %7551 = vmatpush3.msra.mxu1 %v5918_v7 }
0x1b82   :  { %7560 = vmatprep.subr.mxu1 %v7942_v0 }
0x1b83   :  { %v7864_v10 = vpop.eup %7863 }
0x1b84   :  { %v5913_v21 = vmul.f32 %v7864_v10, %v7856_v53  ;;  %v6226_v12 = vpop.permute.xlu0 %6225 }
0x1b85   :  { %v6269_v39 = vsel %vm256_vm2, %v8692_v35, %v6226_v12 }
0x1b86   :  { %7553 = vmatmul.mubr.msk.f32.vlgmr.msra.gmra.mrb[66].mxu1 %vm256_vm2, %v5913_v21 }
0x1b87   :  { %7562 = vmatprep.mubr.msk.f32.mxu1 %vm7943_vm1, %v7942_v0  ;;  %v7866_v17 = vpop.eup %7865 }
0x1b88   :  { %v6242_v24 = vpop.permute.xlu0 %6241 }
0x1b89   :  { %v6273_v42 = vsel %vm2958_vm3, %v6269_v39, %v6242_v24  ;;  %v6956_v39 = vld [vmem:[%s9062_s11 + $0x40] sm:$0xff] }
0x1b8c   :  { %v6230_v13 = vpop.permute.xlu0 %6229 }
0x1b8d   :  { %v8874_v16 = vsel %vm256_vm2, %v8696_v8, %v6230_v13  ;;  %6145 = vrot.lane.b32.xlu1 %v8596_v41, %s9089_s20  ;;  %v5915_v41 = vmul.f32 %v7866_v17, %v7858_v56 }
0x1b90   :  { %v6246_v9 = vpop.permute.xlu0 %6245 }
0x1b91   :  { %6227 = vrot.lane.b32.xlu1 %v8784_v4, %s7941_s29  ;;  %v6275_v58 = vsel %vm2958_vm3, %v8874_v16, %v6246_v9 }
0x1b95   :  { %6243 = vrot.lane.b32.xlu1 %v8846_v31, %s9090_s26  ;;  %v6934_v31 = vld [vmem:[%s9054_s3 + $0x30] sm:$0xff] }
0x1b99   :  { %6231 = vrot.lane.b32.xlu1 %v8786_v40, %s7941_s29 }
0x1b9d   :  { %6247 = vrot.lane.b32.xlu1 %v8848_v33, %s9090_s26  ;;  %v7672_v33 = vpack.c.bf16 %v6935_v32, %v6934_v31 }
0x1bd0   :  { %v5902_v14 = vpop.xlane.xlu1 %5901 }
0x1bd1   :  { %7867 = vrcp.f32 %v5902_v14 }
0x1bd4   :  { %v5994_v8 = vpop.permute.xlu1 %5993 }
0x1bd5   :  { %7556 = vmatpush3.msra.mxu0 %v5994_v8 }
0x1bd6   :  { %7565 = vmatprep.subr.mxu0 %v7942_v0 }
0x1bd8   :  { %v6070_v18 = vpop.permute.xlu1 %6069 }
0x1bd9   :  { %7561 = vmatpush3.msra.mxu1 %v6070_v18 }
0x1bda   :  { %7563 = vmatmul.mubr.msk.f32.vlgmr.msra.gmra.mrb[68].mxu1 %vm256_vm2, %v5915_v41 }
0x1bdb   :  { %v7868_v4 = vpop.eup %7867 }
0x1bdc   :  { %v5914_v29 = vmul.f32 %v7868_v4, %v7860_v63 }
0x1bde   :  { %7558 = vmatmul.mubr.msk.f32.vlgmr.msra.gmra.mrb[74].mxu0 %vm256_vm2, %v5914_v29 }
0x1bdf   :  { %7567 = vmatprep.mubr.msk.f32.mxu0 %vm7943_vm1, %v7942_v0  ;;  %v6933_v0 = vld [vmem:[%s9054_s3 + $0x28] sm:$0xff] }
0x1be0   :  { %v7668_v28 = vpack.c.bf16 %v6933_v0, %v6932_v38 }
0x1be2   :  { %7669 = vmatprep.subr.bf16.mxu1 %v7668_v28 }
0x1be3   :  { %7671 = vmatpush3.bf16.msra.mxu1 %v7668_v28 }
0x1be4   :  { %7673 = vmatprep.subr.bf16.mxu1 %v7672_v33 }
0x1be7   :  { %7675 = vmatpush3.bf16.msra.mxu1 %v7672_v33 }
0x1c09   :  { %v5908_v40 = vpop.xlane.xlu1 %5907 }
0x1c0a   :  { %7869 = vrcp.f32 %v5908_v40 }
0x1c0d   :  { %v6146_v22 = vpop.permute.xlu1 %6145 }
0x1c0e   :  { %7566 = vmatpush3.msra.mxu0 %v6146_v22  ;;  %v6946_v22 = vld [vmem:[%s9060_s9 + $0x20] sm:$0xff] }
0x1c11   :  { %v6228_v47 = vpop.permute.xlu1 %6227 }
0x1c12   :  { %v6270_v53 = vsel %vm256_vm2, %v8694_v37, %v6228_v47  ;;  %v6960_v47 = vld [vmem:[%s9062_s11 + $0x60] sm:$0xff] }
0x1c14   :  { %v7870_v19 = vpop.eup %7869 }
0x1c15   :  { %v5916_v23 = vmul.f32 %v7870_v19, %v7862_v57  ;;  %v6244_v48 = vpop.permute.xlu1 %6243  ;;  %v6947_v19 = vld [vmem:[%s9060_s9 + $0x28] sm:$0xff] }
0x1c16   :  { %v6274_v35 = vsel %vm2958_vm3, %v6270_v53, %v6244_v48  ;;  %v6961_v48 = vld [vmem:[%s9062_s11 + $0x68] sm:$0xff] }
0x1c17   :  { %7568 = vmatmul.mubr.msk.f32.vlgmr.msra.gmra.mrb[76].mxu0 %vm256_vm2, %v5916_v23  ;;  %v7676_v23 = vpack.c.bf16 %v6947_v19, %v6946_v22 }
0x1c19   :  { %v6232_v51 = vpop.permute.xlu1 %6231  ;;  %7677 = vmatprep.subr.bf16.mxu0 %v7676_v23 }
0x1c1a   :  { %v6272_v62 = vsel %vm256_vm2, %v8700_v50, %v6232_v51  ;;  %7679 = vmatpush3.bf16.msra.mxu0 %v7676_v23  ;;  %v7692_v51 = vpack.c.bf16 %v6961_v48, %v6960_v47 }
0x1c1d   :  { %v6248_v52 = vpop.permute.xlu1 %6247 }
0x1c1e   :  { %v6276_v37 = vsel %vm2958_vm3, %v6272_v62, %v6248_v52 }
0x1c59   :  { %v5989_v25 = vpop.f32.mrb[66].mxu1 }
0x1c5a   :  { %6257 = vrot.lane.b32.xlu0 %v5989_v25, %s9091_s30  ;;  %v7554_v26 = vpop.f32.mrb[67].mxu1  ;;  %v6948_v25 = vld [vmem:[%s9060_s9 + $0x30] sm:$0xff] }
0x1c5b   :  { %v6949_v26 = vld [vmem:[%s9060_s9 + $0x38] sm:$0xff] }
0x1c5c   :  { %v7680_v38 = vpack.c.bf16 %v6949_v26, %v6948_v25 }
0x1c5e   :  { %7681 = vmatprep.subr.bf16.mxu0 %v7680_v38 }
0x1c5f   :  { %7683 = vmatpush3.bf16.msra.mxu0 %v7680_v38 }
0x1cad   :  { %v6141_v5 = vpop.f32.mrb[68].mxu1 }
0x1cae   :  { %6261 = vrot.lane.b32.xlu0 %v6141_v5, %s9091_s30  ;;  %v7564_v27 = vpop.f32.mrb[69].mxu1 }
0x1cb1   :  { %v6065_v36 = vpop.f32.mrb[74].mxu0 }
0x1cb2   :  { %6259 = vrot.lane.b32.xlu1 %v6065_v36, %s9091_s30  ;;  %v7559_v3 = vpop.f32.mrb[75].mxu0 }
0x1ccc   :  { %v6258_v43 = vpop.permute.xlu0 %6257 }
0x1ccd   :  { %v6277_v44 = vsel %vm2963_vm4, %v6273_v42, %v6258_v43  ;;  %v6957_v42 = vld [vmem:[%s9062_s11 + $0x48] sm:$0xff]  ;;  %v6958_v43 = vld [vmem:[%s9062_s11 + $0x50] sm:$0xff] }
0x1cce   :  { %7578 = vmatprep.mubr.msk.f32.mxu1 %vm71_vm0, %v6277_v44  ;;  %v7684_v44 = vpack.c.bf16 %v6957_v42, %v6956_v39 }
0x1cd0   :  { %7685 = vmatprep.subr.bf16.mxu1 %v7684_v44 }
0x1cea   :  { %v6217_v45 = vpop.f32.mrb[76].mxu0 }
0x1ceb   :  { %6263 = vrot.lane.b32.xlu1 %v6217_v45, %s9091_s30  ;;  %v7569_v46 = vpop.f32.mrb[77].mxu0  ;;  %v6959_v45 = vld [vmem:[%s9062_s11 + $0x58] sm:$0xff] }
0x1cec   :  { %v7688_v46 = vpack.c.bf16 %v6959_v45, %v6958_v43 }
0x1d20   :  { %v6262_v54 = vpop.permute.xlu0 %6261 }
0x1d21   :  { %v6279_v61 = vsel %vm2963_vm4, %v6275_v58, %v6262_v54 }
0x1d24   :  { %v6260_v56 = vpop.permute.xlu1 %6259 }
0x1d25   :  { %v6278_v60 = vsel %vm2963_vm4, %v6274_v35, %v6260_v56 }
0x1d26   :  { %7579 = vmatmul.mubr.msk.f32.vlgmr.msra.gmra.mrb[70].mxu1 %vm71_vm0, %v6278_v60 }
0x1d27   :  { %7581 = vmatprep.mubr.msk.f32.mxu1 %vm71_vm0, %v6279_v61  ;;  %7687 = vmatpush3.bf16.msra.mxu1 %v7684_v44  ;;  %v6944_v61 = vld [vmem:[%s9058_s7 + $0x1] ss:$0 sm:$0xff] }
0x1d28   :  { %7689 = vmatprep.subr.bf16.mxu1 %v7688_v46 }
0x1d2b   :  { %7691 = vmatpush3.bf16.msra.mxu1 %v7688_v46 }
0x1d2c   :  { %7693 = vmatprep.subr.bf16.mxu1 %v7692_v51 }
0x1d2f   :  { %7695 = vmatpush3.bf16.msra.mxu1 %v7692_v51 }
0x1d5d   :  { %v6264_v63 = vpop.permute.xlu1 %6263 }
0x1d5e   :  { %v6280_v30 = vsel %vm2963_vm4, %v6276_v37, %v6264_v63 }
0x1d5f   :  { %7582 = vmatmul.mubr.msk.f32.gmra.mrb[72].mxu1 %vm71_vm0, %v6280_v30  ;;  %v6945_v30 = vld [vmem:[%s9059_s8 + $0x1] ss:$0 sm:$0xff] }
0x1df9   :  { %v7580_v55 = vpop.f32.mrb[70].mxu1 }
0x1dfa   :  { %v6378_v49 = vadd.f32 %v7580_v55, %v6937_v15  ;;  %v6372_v57 = vpop.f32.mrb[71].mxu1 }
0x1dfb   :  { %v6373_v1 = vadd.f32 %v6937_v15, %v6372_v57 }
0x1dfc   :  { %v8931_v2 = vadd.f32 %v6378_v49, %v8529_v59 }
0x1dfd   :  { %v8934_v50 = vadd.f32 %v6373_v1, %v8532_v11 }
0x1dfe   :  { %v6402_v6 = vsel %vm71_vm0, %v8931_v2, 0.0 }
0x1dff   :  { %6403 = vadd.xlane.f32.xlu1 %v6402_v6  ;;  %v6399_v7 = vsel %vm71_vm0, %v8934_v50, 0.0 }
0x1e00   :  { %6400 = vadd.xlane.f32.xlu0 %v6399_v7 }
0x1e32   :  { %v7583_v10 = vpop.f32.mrb[72].mxu1 }
0x1e33   :  { %v6382_v21 = vpop.f32.mrb[73].mxu1  ;;  %v6388_v12 = vadd.f32 %v7583_v10, %v6937_v15 }
0x1e34   :  { %v6383_v24 = vadd.f32 %v6937_v15, %v6382_v21 }
0x1e35   :  { %v8944_v59 = vadd.f32 %v6388_v12, %v8539_v20 }
0x1e36   :  { %v8941_v13 = vadd.f32 %v6383_v24, %v8542_v34 }
0x1e37   :  { %v6408_v16 = vsel %vm71_vm0, %v8944_v59, 0.0 }
0x1e38   :  { %v6405_v11 = vsel %vm71_vm0, %v8941_v13, 0.0 }
0x1e39   :  { %6406 = vadd.xlane.f32.xlu0 %v6405_v11 }
0x1e3d   :  { %6409 = vadd.xlane.f32.xlu0 %v6408_v16 }
0x1e8c   :  { %v6404_v14 = vpop.xlane.xlu1 %6403 }
0x1e8d   :  { %v6412_v8 = vmul.f32 0.03125, %v6404_v14  ;;  %v6401_v17 = vpop.xlane.xlu0 %6400 }
0x1e8e   :  { %v6411_v41 = vmul.f32 0.03125, %v6401_v17 }
0x1e8f   :  { %v6416_v18 = vsub.f32 %v8931_v2, %v6412_v8 }
0x1e90   :  { %v6415_v34 = vsub.f32 %v8934_v50, %v6411_v41 }
0x1e91   :  { %v6420_v4 = vmul.f32 %v6416_v18, %v6416_v18 }
0x1e92   :  { %v6419_v29 = vmul.f32 %v6415_v34, %v6415_v34 }
0x1e93   :  { %v6426_v20 = vsel %vm71_vm0, %v6420_v4, 0.0  ;;  %v6963_v4 = vld [vmem:[%s9062_s11 + $0x78] sm:$0xff] }
0x1e94   :  { %6427 = vadd.xlane.f32.xlu1 %v6426_v20  ;;  %v6423_v40 = vsel %vm71_vm0, %v6419_v29, 0.0  ;;  %v6951_v20 = vld [vmem:[%s9061_s10 + $0x1] ss:$0 sm:$0xff] }
0x1e95   :  { %6424 = vadd.xlane.f32.xlu0 %v6423_v40 }
0x1ec6   :  { %v6407_v0 = vpop.xlane.xlu0 %6406 }
0x1ec7   :  { %v6413_v28 = vmul.f32 0.03125, %v6407_v0 }
0x1ec9   :  { %v6417_v31 = vsub.f32 %v8941_v13, %v6413_v28 }
0x1eca   :  { %v6410_v32 = vpop.xlane.xlu0 %6409 }
0x1ecb   :  { %v6414_v33 = vmul.f32 0.03125, %v6410_v32  ;;  %v6421_v5 = vmul.f32 %v6417_v31, %v6417_v31 }
0x1ecd   :  { %v6418_v27 = vsub.f32 %v8944_v59, %v6414_v33  ;;  %v6429_v36 = vsel %vm71_vm0, %v6421_v5, 0.0  ;;  %v6965_v5 = vld [vmem:[%s9063_s12 + $0x1] ss:$0 sm:$0xff] }
0x1ece   :  { %6430 = vadd.xlane.f32.xlu0 %v6429_v36 }
0x1ecf   :  { %v6422_v3 = vmul.f32 %v6418_v27, %v6418_v27 }
0x1ed1   :  { %v6432_v9 = vsel %vm71_vm0, %v6422_v3, 0.0 }
0x1ed2   :  { %6433 = vadd.xlane.f32.xlu1 %v6432_v9 }
0x1f21   :  { %v6428_v52 = vpop.xlane.xlu1 %6427 }
0x1f22   :  { %v6436_v53 = vmul.f32 0.03125, %v6428_v52  ;;  %v6425_v54 = vpop.xlane.xlu0 %6424 }
0x1f23   :  { %v6435_v35 = vmul.f32 0.03125, %v6425_v54 }
0x1f24   :  { %v6440_v56 = vadd.f32 1e-05, %v6436_v53 }
0x1f25   :  { %v6439_v58 = vadd.f32 1e-05, %v6435_v35 }
0x1f26   :  { %7871 = vrsqrt.f32 %v6440_v56 }
0x1f27   :  { %7873 = vrsqrt.f32 %v6439_v58 }
0x1f30   :  { %v7872_v60 = vpop.eup %7871 }
0x1f31   :  { %v7874_v62 = vpop.eup %7873  ;;  %v6448_v37 = vmul.f32 %v7872_v60, %v6416_v18 }
0x1f32   :  { %v6447_v63 = vmul.f32 %v7874_v62, %v6415_v34  ;;  %v6962_v34 = vld [vmem:[%s9062_s11 + $0x70] sm:$0xff] }
0x1f33   :  { %v6458_v15 = vmul.f32 %v6944_v61, %v6448_v37  ;;  %v7696_v29 = vpack.c.bf16 %v6963_v4, %v6962_v34  ;;  %v6971_v34 = vld [vmem:[%s9065_s14] ss:$0 sm:$0xff] }
0x1f34   :  { %v6457_v55 = vmul.f32 %v6944_v61, %v6447_v63 }
0x1f35   :  { %v6468_v57 = vadd.f32 %v6945_v30, %v6458_v15  ;;  %7697 = vmatprep.subr.bf16.mxu1 %v7696_v29 }
0x1f36   :  { %v6467_v49 = vadd.f32 %v6945_v30, %v6457_v55  ;;  %7699 = vmatpush3.bf16.msra.mxu1 %v7696_v29 }
0x1f38   :  { %7592 = vmatprep.mubr.msk.f32.mxu0 %vm71_vm0, %v6467_v49 }
0x1f39   :  { %7593 = vmatmul.mubr.msk.f32.vlgmr.msra.gmra.mrb[78].mxu0 %vm71_vm0, %v6468_v57 }
0x1f5b   :  { %v6431_v1 = vpop.xlane.xlu0 %6430 }
0x1f5c   :  { %v6437_v6 = vmul.f32 0.03125, %v6431_v1 }
0x1f5e   :  { %v6441_v7 = vadd.f32 1e-05, %v6437_v6 }
0x1f5f   :  { %v6434_v10 = vpop.xlane.xlu1 %6433 }
0x1f60   :  { %7875 = vrsqrt.f32 %v6441_v7  ;;  %v6438_v21 = vmul.f32 0.03125, %v6434_v10 }
0x1f62   :  { %v6442_v12 = vadd.f32 1e-05, %v6438_v21 }
0x1f64   :  { %7877 = vrsqrt.f32 %v6442_v12 }
0x1f6a   :  { %v7876_v24 = vpop.eup %7875 }
0x1f6b   :  { %v6449_v11 = vmul.f32 %v7876_v24, %v6417_v31 }
0x1f6d   :  { %v6459_v16 = vmul.f32 %v6944_v61, %v6449_v11 }
0x1f6e   :  { %v7878_v14 = vpop.eup %7877 }
0x1f6f   :  { %v6469_v8 = vadd.f32 %v6945_v30, %v6459_v16  ;;  %v6450_v17 = vmul.f32 %v7878_v14, %v6418_v27 }
0x1f71   :  { %7595 = vmatprep.mubr.msk.f32.mxu0 %vm71_vm0, %v6469_v8  ;;  %v6460_v41 = vmul.f32 %v6944_v61, %v6450_v17  ;;  %v6970_v8 = vld [vmem:[%s9064_s13] ss:$0 sm:$0xff]  ;;  %s7957_s13 = smov [#allocation5]  }
0x1f72   :  { %s6786_s14 = sshll.u32 %s7957_s13, 4  ;;  %s6787_s14 = int_to_ptr.vmem [resolvable:$true] %s6786_s14 }
0x1f73   :  { %v6470_v18 = vadd.f32 %v6945_v30, %v6460_v41  ;;  %s7913_s20 = scalar_lea.vmem %s6787_s14, 512  ;;  %p7918_p9 = scmp.lt.s32.totalorder %s6787_s14, %s6787_s14 }
0x1f74   :  { %p7914_p8 = scmp.ne.s32.totalorder %s6787_s14, %s7913_s20  ;;  %p7919_p10 = scmp.lt.s32.totalorder %s7913_s20, %s7913_s20 }
0x1f75   :  { %7596 = vmatmul.mubr.msk.f32.gmra.mrb[80].mxu0 %vm71_vm0, %v6470_v18 }
0x1f76   :  { %p7920_p11 = por %p7919_p10, %p7918_p9 }
0x1f78   :  { %p7921_p12 = pnand %p7920_p11, %p7914_p8 }
0x200c   :  { %v7594_v40 = vpop.f32.mrb[78].mxu0 }
0x200d   :  { %v6568_v22 = vadd.f32 %v7594_v40, %v6951_v20  ;;  %v6562_v19 = vpop.f32.mrb[79].mxu0 }
0x200e   :  { %v6563_v23 = vadd.f32 %v6951_v20, %v6562_v19 }
0x200f   :  { %v6582_v26 = vmax.f32 %v6568_v22, 0.0 }
0x2010   :  { %v6581_v25 = vmax.f32 %v6563_v23, 0.0 }
0x2012   :  { %7614 = vmatprep.mubr.msk.f32.mxu1 %vm3281_vm5, %v6581_v25 }
0x2013   :  { %7615 = vmatmul.mubr.msk.f32.vlgmr.msra.gmra.mrb[74].mxu1 %vm3281_vm5, %v6582_v26 }
0x2048   :  { %v7597_v38 = vpop.f32.mrb[80].mxu0 }
0x2049   :  { %v6578_v0 = vadd.f32 %v7597_v38, %v6951_v20  ;;  %v6572_v28 = vpop.f32.mrb[81].mxu0 }
0x204a   :  { %v6573_v31 = vadd.f32 %v6951_v20, %v6572_v28 }
0x204b   :  { %v6584_v33 = vmax.f32 %v6578_v0, 0.0 }
0x204c   :  { %v6583_v32 = vmax.f32 %v6573_v31, 0.0 }
0x204e   :  { %7617 = vmatprep.mubr.msk.f32.mxu1 %vm3281_vm5, %v6583_v32 }
0x204f   :  { %7618 = vmatmul.mubr.msk.f32.gmra.mrb[76].mxu1 %vm3281_vm5, %v6584_v33 }
0x20e6   :  { %v7616_v27 = vpop.f32.mrb[74].mxu1 }
0x20e7   :  { %v6686_v36 = vadd.f32 %v7616_v27, %v6965_v5  ;;  %v6680_v3 = vpop.f32.mrb[75].mxu1 }
0x20e8   :  { %v6681_v9 = vadd.f32 %v6965_v5, %v6680_v3 }
0x20e9   :  { %v6700_v39 = vadd.f32 %v6686_v36, %v8931_v2 }
0x20ea   :  { %v6699_v42 = vadd.f32 %v6681_v9, %v8934_v50 }
0x20eb   :  { %v6708_v43 = vsel %vm71_vm0, %v6700_v39, 0.0 }
0x20ec   :  { %6709 = vadd.xlane.f32.xlu1 %v6708_v43  ;;  %v6705_v44 = vsel %vm71_vm0, %v6699_v42, 0.0 }
0x20ed   :  { %6706 = vadd.xlane.f32.xlu0 %v6705_v44 }
0x2122   :  { %v7619_v45 = vpop.f32.mrb[76].mxu1 }
0x2123   :  { %v6696_v46 = vadd.f32 %v7619_v45, %v6965_v5  ;;  %v6690_v47 = vpop.f32.mrb[77].mxu1 }
0x2124   :  { %v6691_v48 = vadd.f32 %v6965_v5, %v6690_v47 }
0x2125   :  { %v6702_v51 = vadd.f32 %v6696_v46, %v8944_v59 }
0x2126   :  { %v6701_v52 = vadd.f32 %v6691_v48, %v8941_v13 }
0x2127   :  { %v6714_v53 = vsel %vm71_vm0, %v6702_v51, 0.0 }
0x2128   :  { %6715 = vadd.xlane.f32.xlu1 %v6714_v53  ;;  %v6711_v2 = vsel %vm71_vm0, %v6701_v52, 0.0 }
0x2129   :  { %6712 = vadd.xlane.f32.xlu0 %v6711_v2 }
0x2179   :  { %v6710_v50 = vpop.xlane.xlu1 %6709 }
0x217a   :  { %v6718_v54 = vmul.f32 0.03125, %v6710_v50  ;;  %v6707_v35 = vpop.xlane.xlu0 %6706 }
0x217b   :  { %v6717_v56 = vmul.f32 0.03125, %v6707_v35 }
0x217c   :  { %v6722_v58 = vsub.f32 %v6700_v39, %v6718_v54 }
0x217d   :  { %v6721_v60 = vsub.f32 %v6699_v42, %v6717_v56 }
0x217e   :  { %v6726_v61 = vmul.f32 %v6722_v58, %v6722_v58 }
0x217f   :  { %v6725_v62 = vmul.f32 %v6721_v60, %v6721_v60 }
0x2180   :  { %v6732_v37 = vsel %vm71_vm0, %v6726_v61, 0.0 }
0x2181   :  { %6733 = vadd.xlane.f32.xlu1 %v6732_v37  ;;  %v6729_v59 = vsel %vm71_vm0, %v6725_v62, 0.0 }
0x2182   :  { %6730 = vadd.xlane.f32.xlu0 %v6729_v59 }
0x21b5   :  { %v6716_v13 = vpop.xlane.xlu1 %6715 }
0x21b6   :  { %v6720_v63 = vmul.f32 0.03125, %v6716_v13  ;;  %v6713_v30 = vpop.xlane.xlu0 %6712 }
0x21b7   :  { %v6719_v15 = vmul.f32 0.03125, %v6713_v30 }
0x21b8   :  { %v6724_v55 = vsub.f32 %v6702_v51, %v6720_v63 }
0x21b9   :  { %v6723_v49 = vsub.f32 %v6701_v52, %v6719_v15 }
0x21ba   :  { %v6728_v57 = vmul.f32 %v6724_v55, %v6724_v55 }
0x21bb   :  { %v6727_v1 = vmul.f32 %v6723_v49, %v6723_v49 }
0x21bc   :  { %v6738_v6 = vsel %vm71_vm0, %v6728_v57, 0.0 }
0x21bd   :  { %6739 = vadd.xlane.f32.xlu1 %v6738_v6  ;;  %v6735_v7 = vsel %vm71_vm0, %v6727_v1, 0.0 }
0x21be   :  { %6736 = vadd.xlane.f32.xlu0 %v6735_v7 }
0x220e   :  { %v6734_v10 = vpop.xlane.xlu1 %6733 }
0x220f   :  { %v6742_v21 = vmul.f32 0.03125, %v6734_v10  ;;  %v6731_v12 = vpop.xlane.xlu0 %6730 }
0x2210   :  { %v6741_v24 = vmul.f32 0.03125, %v6731_v12 }
0x2211   :  { %v6746_v11 = vadd.f32 1e-05, %v6742_v21 }
0x2212   :  { %v6745_v16 = vadd.f32 1e-05, %v6741_v24 }
0x2213   :  { %7879 = vrsqrt.f32 %v6746_v11 }
0x2214   :  { %7881 = vrsqrt.f32 %v6745_v16 }
0x221d   :  { %v7880_v14 = vpop.eup %7879 }
0x221e   :  { %v7882_v17 = vpop.eup %7881  ;;  %v6754_v41 = vmul.f32 %v7880_v14, %v6722_v58 }
0x221f   :  { %v6753_v18 = vmul.f32 %v7882_v17, %v6721_v60 }
0x2220   :  { %v6764_v4 = vmul.f32 %v6970_v8, %v6754_v41 }
0x2221   :  { %v6763_v29 = vmul.f32 %v6970_v8, %v6753_v18 }
0x2222   :  { %v6774_v20 = vadd.f32 %v6971_v34, %v6764_v4 }
0x2223   :  { %v6773_v40 = vadd.f32 %v6971_v34, %v6763_v29 }
0x2224   :  { %6778 = vst.msk [vmem:[#allocation5 + $0x8] sm:$0xff] %vm71_vm0, %v6774_v20 }
0x2225   :  { %6777 = vst.msk [vmem:[#allocation5] sm:$0xff] %vm71_vm0, %v6773_v40 }
0x224a   :  { %v6740_v22 = vpop.xlane.xlu1 %6739 }
0x224b   :  { %v6744_v19 = vmul.f32 0.03125, %v6740_v22  ;;  %v6737_v23 = vpop.xlane.xlu0 %6736 }
0x224c   :  { %v6743_v25 = vmul.f32 0.03125, %v6737_v23 }
0x224d   :  { %v6748_v26 = vadd.f32 1e-05, %v6744_v19 }
0x224e   :  { %v6747_v38 = vadd.f32 1e-05, %v6743_v25 }
0x224f   :  { %7883 = vrsqrt.f32 %v6748_v26 }
0x2250   :  { %7885 = vrsqrt.f32 %v6747_v38 }
0x2259   :  { %v7884_v0 = vpop.eup %7883 }
0x225a   :  { %v7886_v28 = vpop.eup %7885  ;;  %v6756_v31 = vmul.f32 %v7884_v0, %v6724_v55 }
0x225b   :  { %v6755_v32 = vmul.f32 %v7886_v28, %v6723_v49 }
0x225c   :  { %v6766_v33 = vmul.f32 %v6970_v8, %v6756_v31 }
0x225d   :  { %v6765_v5 = vmul.f32 %v6970_v8, %v6755_v32 }
0x225e   :  { %v6776_v27 = vadd.f32 %v6971_v34, %v6766_v33 }
0x225f   :  { %v6775_v36 = vadd.f32 %v6971_v34, %v6765_v5 }
0x2260   :  { %6780 = vst.msk [vmem:[#allocation5 + $0x18] sm:$0xff] %vm71_vm0, %v6776_v27 }
0x2261   :  { %6779 = vst.msk [vmem:[#allocation5 + $0x10] sm:$0xff] %vm71_vm0, %v6775_v36 }
0x2262   :  { %7924 = shalt.err (!%p7921_p12)
}
0x2263   :  { %s7925_s16 = scalar_lea.hbm %s9066_s15, 512 }
0x2264   :  { %p7926_p13 = scmp.ne.s32.totalorder %s9066_s15, %s7925_s16  ;;  %p7929_p0 = scmp.lt.u32.totalorder %s7925_s16, %s9066_s15 }
0x2266   :  { %p7931_p1 = pnand %p7929_p0, %p7926_p13 }
0x2268   :  { %7934 = shalt.err (!%p7931_p1)
}
0x2269   :  { %s9092_s21 = smov 128  }
0x226a   :  { %6792 = dma.vmem_to_hbm [thread:$0]  %s6787_s14, 512, %s9066_s15, [#allocation4], %s9092_s21, %s9092_s21, %s7941_s29  }
0x226b   :  { %7937 = dma.done.wait [#allocation4], 512  }
0x226c   :  { %7938 = vsyncadd [#allocation4], 4294966784 }
0x226d   :  { %6796 = vsyncpa [#allocation3], 1 }
0x226e   :  { %6797 = vsyncpa [#allocation4], 1 }

</bundles_post_ra>
